<compile_context>
chip_gen: v6e
topology: v6e:2x2x1
jax: 0.10.0
libtpu: 0.0.40
codegen_flags: <defaults>
</compile_context>

<pallas_src>
import functools

import jax
import jax.numpy as jnp
from jax import lax
from jax.experimental import pallas as pl
from jax.experimental.pallas import tpu as pltpu


_LANE = 128
_SUBLANE = 8
_ROW_TILE_1X1 = 1024     # target flattened-row tile for the HBM-bound 1x1 stages
_ROW_TILE_3X3 = 512      # target flattened-row tile for the 3x3 stage


def _round_up(x, m):
    return (x + m - 1) // m * m


def _largest_divisor_tile(m, target, step=_SUBLANE):
    """Largest multiple-of-`step` divisor of m that is <= target (fallback: m).

    Exact divisors mean no jnp.pad copy in front of the pallas_call and no
    tail-row masking inside the kernels."""
    t = (min(m, target) // step) * step
    while t >= step:
        if m % t == 0:
            return t
        t -= step
    return m


def _row_block_3x3(hdim, wdim, target=_ROW_TILE_3X3):
    """Image rows per stage-2 tile: largest divisor of hdim with tr*wdim <= target."""
    tr = max(1, min(hdim, target // max(wdim, 1)))
    while hdim % tr:
        tr -= 1
    return tr


def _vmem_limit(block_bytes, scratch_bytes=0):
    """Request roughly the double-buffered footprint (+slack), not all of VMEM."""
    need = 2 * block_bytes + scratch_bytes + (4 << 20)
    return int(min(64 << 20, max(16 << 20, need)))


def _pad_channels(a, axis, target):
    pad = target - a.shape[axis]
    if pad == 0:
        return a
    widths = [(0, 0)] * a.ndim
    widths[axis] = (0, pad)
    return jnp.pad(a, widths)


# ----------------------------- Pallas kernels ------------------------------ #

def _stage1_kernel(x_ref, s_ref, b_ref, w_ref, o_ref, sum_ref, sq_ref):
    """relu(x*scale+bias) @ w (bf16 MXU dot) + per-tile sums for the next BN."""
    h = jnp.maximum(x_ref[...] * s_ref[...] + b_ref[...], 0.0)
    y = jnp.dot(h.astype(jnp.bfloat16), w_ref[...],
                preferred_element_type=jnp.float32)
    o_ref[...] = y.astype(o_ref.dtype)
    sum_ref[0] = jnp.sum(y, axis=0, keepdims=True)
    sq_ref[0] = jnp.sum(y * y, axis=0, keepdims=True)


def _stage2_kernel(x_ref, s_ref, b_ref, w_ref, o_ref, sum_ref, sq_ref, pad_ref, *,
                   hdim, wdim, rows_per_tile):
    """Fused bn-affine + ReLU + 3x3/pad-1 conv (stride 1), row-tiled per image.

    At t==0 the whole image's affine+ReLU activation is written once into a
    row-padded VMEM scratch (zero halo row top/bottom + small guard). Each row
    tile then does 3 MXU dots (one per ky) with K = 3*C built by lane-concatenating
    the kx-shifted slabs; only the kx=+/-1 column masks remain on the VPU.
    """
    hw = hdim * wdim
    c = x_ref.shape[1]
    cout = w_ref.shape[2]
    tm = rows_per_tile
    guard = _SUBLANE
    t = pl.program_id(1)

    @pl.when(t == 0)
    def _fill():
        pad_ref[pl.ds(0, guard + wdim), :] = jnp.zeros((guard + wdim, c),
                                                       jnp.float32)
        pad_ref[pl.ds(guard + wdim + hw, wdim + guard), :] = jnp.zeros(
            (wdim + guard, c), jnp.float32)
        a = jnp.maximum(x_ref[...].astype(jnp.float32) * s_ref[...] + b_ref[...],
                        0.0)
        pad_ref[pl.ds(guard + wdim, hw), :] = a

    base = t * tm
    ow = lax.broadcasted_iota(jnp.int32, (tm, 1), 0) % wdim
    left_ok = ow > 0
    right_ok = ow < (wdim - 1)

    acc = jnp.zeros((tm, cout), jnp.float32)
    for ky in range(3):
        off = guard + base + ky * wdim
        off_c = pl.multiple_of(off, _SUBLANE) if wdim % _SUBLANE == 0 else off
        cen = pad_ref[pl.ds(off_c, tm), :]
        lft = pad_ref[pl.ds(off - 1, tm), :]
        rgt = pad_ref[pl.ds(off + 1, tm), :]
        lft = jnp.where(left_ok, lft, 0.0).astype(jnp.bfloat16)
        rgt = jnp.where(right_ok, rgt, 0.0).astype(jnp.bfloat16)
        win = jnp.concatenate([lft, cen.astype(jnp.bfloat16), rgt], axis=1)
        acc = acc + jnp.dot(win, w_ref[ky], preferred_element_type=jnp.float32)

    o_ref[...] = acc.astype(o_ref.dtype)
    sum_ref[0] = jnp.sum(acc, axis=0, keepdims=True)
    sq_ref[0] = jnp.sum(acc * acc, axis=0, keepdims=True)


def _stage3_proj_kernel(x_ref, s_ref, b_ref, w_ref, id_ref, wp_ref, o_ref):
    """relu(x*s+b) @ w3  +  identity(bf16) @ w_proj  (projection fused)."""
    h = jnp.maximum(x_ref[...].astype(jnp.float32) * s_ref[...] + b_ref[...], 0.0)
    out = jnp.dot(h.astype(jnp.bfloat16), w_ref[...],
                  preferred_element_type=jnp.float32)
    out = out + jnp.dot(id_ref[...], wp_ref[...],
                        preferred_element_type=jnp.float32)
    o_ref[...] = out.astype(o_ref.dtype)


def _stage3_add_kernel(x_ref, s_ref, b_ref, w_ref, id_ref, o_ref):
    """relu(x*s+b) @ w3  +  identity   (no projection)."""
    h = jnp.maximum(x_ref[...].astype(jnp.float32) * s_ref[...] + b_ref[...], 0.0)
    out = jnp.dot(h.astype(jnp.bfloat16), w_ref[...],
                  preferred_element_type=jnp.float32)
    o_ref[...] = (out + id_ref[...]).astype(o_ref.dtype)


# ------------------------------ kernel wrappers ----------------------------- #

def bn_relu_conv1x1(x2d, scale, bias, w_bf16):
    m, cin = x2d.shape
    cout = w_bf16.shape[1]
    tm = _largest_divisor_tile(m, _ROW_TILE_1X1)
    gm = m // tm
    block_bytes = tm * cin * 4 + tm * cout * 2 + cin * cout * 2 + 2 * cout * 4
    out, ssum, ssq = pl.pallas_call(
        _stage1_kernel,
        out_shape=(jax.ShapeDtypeStruct((m, cout), jnp.bfloat16),
                   jax.ShapeDtypeStruct((gm, 1, cout), jnp.float32),
                   jax.ShapeDtypeStruct((gm, 1, cout), jnp.float32)),
        grid=(gm,),
        in_specs=[pl.BlockSpec((tm, cin), lambda i: (i, 0)),
                  pl.BlockSpec((1, cin), lambda i: (0, 0)),
                  pl.BlockSpec((1, cin), lambda i: (0, 0)),
                  pl.BlockSpec((cin, cout), lambda i: (0, 0))],
        out_specs=(pl.BlockSpec((tm, cout), lambda i: (i, 0)),
                   pl.BlockSpec((1, 1, cout), lambda i: (i, 0, 0)),
                   pl.BlockSpec((1, 1, cout), lambda i: (i, 0, 0))),
        compiler_params=pltpu.CompilerParams(
            dimension_semantics=("parallel",),
            vmem_limit_bytes=_vmem_limit(block_bytes)),
        cost_estimate=pl.CostEstimate(
            flops=2 * m * cin * cout + 5 * m * cin,
            transcendentals=0,
            bytes_accessed=m * cin * 4 + m * cout * 2 + cin * cout * 2),
    )(x2d, scale.reshape(1, cin), bias.reshape(1, cin), w_bf16)
    return out, ssum, ssq


def bn_relu_conv3x3(h1, scale, bias, w2_slabs, n, hdim, wdim):
    m, c = h1.shape
    cout = w2_slabs.shape[2]
    hw = hdim * wdim
    tr = _row_block_3x3(hdim, wdim)
    tm = tr * wdim
    nt = hdim // tr
    pad_rows = hw + 2 * wdim + 2 * _SUBLANE
    kernel = functools.partial(_stage2_kernel, hdim=hdim, wdim=wdim,
                               rows_per_tile=tm)
    block_bytes = hw * c * 2 + 9 * c * cout * 2 + tm * cout * 2 + 2 * cout * 4
    scratch_bytes = pad_rows * c * 4
    out, ssum, ssq = pl.pallas_call(
        kernel,
        out_shape=(jax.ShapeDtypeStruct((m, cout), jnp.bfloat16),
                   jax.ShapeDtypeStruct((n * nt, 1, cout), jnp.float32),
                   jax.ShapeDtypeStruct((n * nt, 1, cout), jnp.float32)),
        grid=(n, nt),
        in_specs=[pl.BlockSpec((hw, c), lambda b, t: (b, 0)),
                  pl.BlockSpec((1, c), lambda b, t: (0, 0)),
                  pl.BlockSpec((1, c), lambda b, t: (0, 0)),
                  pl.BlockSpec((3, 3 * c, cout), lambda b, t: (0, 0, 0))],
        out_specs=(pl.BlockSpec((tm, cout), lambda b, t: (b * nt + t, 0)),
                   pl.BlockSpec((1, 1, cout), lambda b, t: (b * nt + t, 0, 0)),
                   pl.BlockSpec((1, 1, cout), lambda b, t: (b * nt + t, 0, 0))),
        scratch_shapes=[pltpu.VMEM((pad_rows, c), jnp.float32)],
        compiler_params=pltpu.CompilerParams(
            dimension_semantics=("parallel", "arbitrary"),
            vmem_limit_bytes=_vmem_limit(block_bytes, scratch_bytes)),
        cost_estimate=pl.CostEstimate(
            flops=2 * m * (9 * c) * cout + 10 * m * c,
            transcendentals=0,
            bytes_accessed=(m * c * 2 + m * cout * 2 + 9 * c * cout * 2
                            + m * c * 8)),
    )(h1, scale.reshape(1, c), bias.reshape(1, c), w2_slabs)
    return out, ssum, ssq


def bn_relu_conv1x1_residual(h2, scale, bias, w3_bf16, identity, wp_bf16=None):
    m, c = h2.shape
    cout = w3_bf16.shape[1]
    cid = identity.shape[1]
    tm = _largest_divisor_tile(m, _ROW_TILE_1X1)
    gm = m // tm
    id_bytes = identity.dtype.itemsize
    in_specs = [pl.BlockSpec((tm, c), lambda i: (i, 0)),
                pl.BlockSpec((1, c), lambda i: (0, 0)),
                pl.BlockSpec((1, c), lambda i: (0, 0)),
                pl.BlockSpec((c, cout), lambda i: (0, 0)),
                pl.BlockSpec((tm, cid), lambda i: (i, 0))]
    args = [h2, scale.reshape(1, c), bias.reshape(1, c), w3_bf16, identity]
    if wp_bf16 is not None:
        in_specs.append(pl.BlockSpec((cid, cout), lambda i: (0, 0)))
        args.append(wp_bf16)
        kernel = _stage3_proj_kernel
        flops = 2 * m * cout * (c + cid) + 5 * m * c
    else:
        kernel = _stage3_add_kernel
        flops = 2 * m * c * cout + 5 * m * c + m * cout
    block_bytes = (tm * c * 2 + tm * cid * id_bytes + tm * cout * 4
                   + c * cout * 2 + cid * cout * 2)
    out = pl.pallas_call(
        kernel,
        out_shape=jax.ShapeDtypeStruct((m, cout), jnp.float32),
        grid=(gm,),
        in_specs=in_specs,
        out_specs=pl.BlockSpec((tm, cout), lambda i: (i, 0)),
        compiler_params=pltpu.CompilerParams(
            dimension_semantics=("parallel",),
            vmem_limit_bytes=_vmem_limit(block_bytes)),
        cost_estimate=pl.CostEstimate(
            flops=flops,
            transcendentals=0,
            bytes_accessed=m * (c * 2 + cid * id_bytes + cout * 4)),
    )(*args)
    return out


# ------------------------------- JAX glue ----------------------------------- #

def _bn_scale_bias(x2d, gamma, beta, eps=1e-5):
    """Training-mode BN on the block input, folded to per-channel scale/bias."""
    mean = jnp.mean(x2d, axis=0)
    var = jnp.var(x2d, axis=0)          # biased variance, as PyTorch uses
    scale = gamma * lax.rsqrt(var + eps)
    bias = beta - mean * scale
    return scale, bias


def _bn_scale_bias_from_sums(ssum, ssq, count, gamma, beta, eps=1e-5):
    """BN scale/bias from kernel-produced sum / sum-of-squares partials."""
    mean = ssum / count
    var = jnp.maximum(ssq / count - mean * mean, 0.0)
    scale = gamma * lax.rsqrt(var + eps)
    bias = beta - mean * scale
    return scale, bias


def bottleneck_forward(x_nchw, params, stride=1, pad_lanes=None):
    # NCHW <-> NHWC only at the block boundary. When chaining blocks keep NHWC
    # end-to-end so these two transposes disappear.
    x = jnp.transpose(x_nchw, (0, 2, 3, 1)).astype(jnp.float32)
    n, h, w, c_in = x.shape
    c_mid = params["conv1_w"].shape[0]
    c_exp = params["conv3_w"].shape[0]
    proj = (c_in != c_exp) or (stride > 1)

    # Zero-pad channel dims up to 128 lanes when the block is narrow, so the MXU
    # dots are full-width and every store is lane-dense. Padded channels carry
    # exact zeros (weights/gammas padded with 0), so real-channel numerics are
    # bitwise unaffected. Real ResNet widths (>=128) skip this automatically.
    if pad_lanes is None:
        pad_lanes = max(c_in, c_mid, c_exp) < _LANE
    def _ch(c):
        return _round_up(c, _LANE) if pad_lanes else c
    cip, cmp_, cep = _ch(c_in), _ch(c_mid), _ch(c_exp)

    g1 = _pad_channels(params["bn1_gamma"], 0, cip)
    bt1 = _pad_channels(params["bn1_beta"], 0, cip)
    g2 = _pad_channels(params["bn2_gamma"], 0, cmp_)
    bt2 = _pad_channels(params["bn2_beta"], 0, cmp_)
    g3 = _pad_channels(params["bn3_gamma"], 0, cmp_)
    bt3 = _pad_channels(params["bn3_beta"], 0, cmp_)

    w1 = params["conv1_w"][:, :, 0, 0].T                          # (c_in, c_mid)
    w1 = _pad_channels(_pad_channels(w1, 0, cip), 1, cmp_).astype(jnp.bfloat16)
    w2 = jnp.transpose(params["conv2_w"], (2, 3, 1, 0))           # (ky,kx,cin,cout)
    w2 = _pad_channels(_pad_channels(w2, 2, cmp_), 3, cmp_)
    w2 = w2.reshape(3, 3 * cmp_, cmp_).astype(jnp.bfloat16)       # per-ky (3c,cout)
    w3 = params["conv3_w"][:, :, 0, 0].T                          # (c_mid, c_exp)
    w3 = _pad_channels(_pad_channels(w3, 0, cmp_), 1, cep).astype(jnp.bfloat16)

    xp = _pad_channels(x, 3, cip)
    m = n * h * w
    x2d = xp.reshape(m, cip)

    # ---- stage 1: bn1 -> relu -> conv1 (1x1), fused, + bn2 partial stats ----
    s1, b1 = _bn_scale_bias(x2d, g1, bt1)
    h1, ssum1, ssq1 = bn_relu_conv1x1(x2d, s1, b1, w1)
    s2, b2 = _bn_scale_bias_from_sums(jnp.sum(ssum1, axis=(0, 1)),
                                      jnp.sum(ssq1, axis=(0, 1)), m, g2, bt2)

    # ---- stage 2: bn2 -> relu -> conv2 (3x3) as 3 folded MXU dots per tile ----
    h2d, ssum2, ssq2 = bn_relu_conv3x3(h1, s2, b2, w2, n, h, w)
    if stride == 1:
        ho, wo, m2 = h, w, m
        h2 = h2d
        sum2 = jnp.sum(ssum2, axis=(0, 1))
        sq2 = jnp.sum(ssq2, axis=(0, 1))
    else:
        # TODO(synk): stride>1 computes the dense stride-1 conv and subsamples in
        # XLA (re-deriving bn3 stats); a production kernel would fold the stride
        # into the stage-2 output indexing instead.
        ho = (h - 1) // stride + 1
        wo = (w - 1) // stride + 1
        m2 = n * ho * wo
        h2 = h2d.reshape(n, h, w, cmp_)[:, ::stride, ::stride, :].reshape(m2, cmp_)
        h2f = h2.astype(jnp.float32)
        sum2 = jnp.sum(h2f, axis=0)
        sq2 = jnp.sum(h2f * h2f, axis=0)
    s3, b3 = _bn_scale_bias_from_sums(sum2, sq2, m2, g3, bt3)

    # ---- stage 3: bn3 -> relu -> conv3 (1x1) + projection + residual, fused ----
    if proj:
        wp = params["conv_proj_w"][:, :, 0, 0].T
        wp = _pad_channels(_pad_channels(wp, 0, cip), 1, cep).astype(jnp.bfloat16)
        idn = xp if stride == 1 else xp[:, ::stride, ::stride, :]
        idn2d = idn.reshape(m2, cip).astype(jnp.bfloat16)   # bf16 identity: half DMA
        out2d = bn_relu_conv1x1_residual(h2, s3, b3, w3, idn2d, wp)
    else:
        out2d = bn_relu_conv1x1_residual(h2, s3, b3, w3, xp.reshape(m2, cep))

    out = out2d.reshape(n, ho, wo, cep)[..., :c_exp]
    return jnp.transpose(out, (0, 3, 1, 2))  # back to NCHW


# ------------------------- pure-JAX reference ------------------------------- #

def reference_forward(x_nchw, params, stride=1):
    hp = lax.Precision.HIGHEST

    def bn(x, g, b, eps=1e-5):
        mean = jnp.mean(x, axis=(0, 2, 3), keepdims=True)
        var = jnp.var(x, axis=(0, 2, 3), keepdims=True)
        return ((x - mean) / jnp.sqrt(var + eps) * g.reshape(1, -1, 1, 1)
                + b.reshape(1, -1, 1, 1))

    def conv(x, w, stride=1, pad=0):
        return lax.conv_general_dilated(
            x, w, (stride, stride), [(pad, pad), (pad, pad)],
            dimension_numbers=("NCHW", "OIHW", "NCHW"), precision=hp)

    identity = x_nchw
    h = jax.nn.relu(bn(x_nchw, params["bn1_gamma"], params["bn1_beta"]))
    h = conv(h, params["conv1_w"])
    h = jax.nn.relu(bn(h, params["bn2_gamma"], params["bn2_beta"]))
    h = conv(h, params["conv2_w"], stride=stride, pad=1)
    h = jax.nn.relu(bn(h, params["bn3_gamma"], params["bn3_beta"]))
    h = conv(h, params["conv3_w"])
    c_exp = params["conv3_w"].shape[0]
    if x_nchw.shape[1] != c_exp or stride > 1:
        identity = conv(identity, params["conv_proj_w"], stride=stride)
    return h + identity


# ----------------------------------- main ------------------------------------ #

if __name__ == "__main__":
    # Module config (defaults): c_in=4, c_out=4, stride=1, expansion=4
    #   => c_mid (= c_out_wide) = 4, output channels = 16, projection active.
    N, C_IN, H, W = 2, 4, 16, 16
    C_OUT, EXPANSION, STRIDE = 4, 4, 1
    C_MID = C_OUT
    C_EXP = C_OUT * EXPANSION

    key = jax.random.PRNGKey(0)
    keys = jax.random.split(key, 12)

    params = {
        "bn1_gamma": 1.0 + 0.1 * jax.random.normal(keys[0], (C_IN,), jnp.float32),
        "bn1_beta": 0.1 * jax.random.normal(keys[1], (C_IN,), jnp.float32),
        "conv1_w": 0.1 * jax.random.normal(keys[2], (C_MID, C_IN, 1, 1), jnp.float32),
        "bn2_gamma": 1.0 + 0.1 * jax.random.normal(keys[3], (C_MID,), jnp.float32),
        "bn2_beta": 0.1 * jax.random.normal(keys[4], (C_MID,), jnp.float32),
        "conv2_w": 0.1 * jax.random.normal(keys[5], (C_MID, C_MID, 3, 3), jnp.float32),
        "bn3_gamma": 1.0 + 0.1 * jax.random.normal(keys[6], (C_MID,), jnp.float32),
        "bn3_beta": 0.1 * jax.random.normal(keys[7], (C_MID,), jnp.float32),
        "conv3_w": 0.1 * jax.random.normal(keys[8], (C_EXP, C_MID, 1, 1), jnp.float32),
        "conv_proj_w": 0.1 * jax.random.normal(keys[9], (C_EXP, C_IN, 1, 1), jnp.float32),
    }

    x = jax.random.normal(keys[10], (N, C_IN, H, W), jnp.float32)

    fwd = jax.jit(functools.partial(bottleneck_forward, stride=STRIDE))
    out = jax.block_until_ready(fwd(x, params))

    ref = jax.block_until_ready(reference_forward(x, params, stride=STRIDE))
    assert out.shape == (N, C_EXP, H // STRIDE, W // STRIDE), out.shape
    max_err = float(jnp.max(jnp.abs(out - ref)))
    # bf16 MXU inputs (f32 accumulation) vs HIGHEST-precision f32 reference.
    assert jnp.allclose(out, ref, rtol=3e-2, atol=3e-2), max_err

    print("KERNEL_OK")
</pallas_src>

<mosaic_0001>
module attributes {stable_mosaic.version = 11 : i64} {
  func.func @_stage1_kernel(%arg0: i32, %arg1: memref<512x128xf32, #tpu.memory_space<vmem>>, %arg2: memref<1x128xf32, #tpu.memory_space<vmem>>, %arg3: memref<1x128xf32, #tpu.memory_space<vmem>>, %arg4: memref<128x128xbf16, #tpu.memory_space<vmem>>, %arg5: memref<512x128xbf16, #tpu.memory_space<vmem>>, %arg6: memref<1x1x128xf32, #tpu.memory_space<vmem>>, %arg7: memref<1x1x128xf32, #tpu.memory_space<vmem>>) attributes {dimension_semantics = [#tpu.dimension_semantics<parallel>], iteration_bounds = array<i64: 1>, scalar_prefetch = 0 : i64, scratch_operands = 0 : i64, tpu.core_type = #tpu.core_type<tc>, window_params = [{transform_indices = @transform_0, window_bounds = array<i64: 512, 128>}, {pipeline_mode = #tpu.pipeline_mode<synchronous>, transform_indices = @transform_1, window_bounds = array<i64: 1, 128>}, {pipeline_mode = #tpu.pipeline_mode<synchronous>, transform_indices = @transform_2, window_bounds = array<i64: 1, 128>}, {pipeline_mode = #tpu.pipeline_mode<synchronous>, transform_indices = @transform_3, window_bounds = array<i64: 128, 128>}, {transform_indices = @transform_4, window_bounds = array<i64: 512, 128>}, {transform_indices = @transform_5, window_bounds = array<i64: 1, 1, 128>}, {transform_indices = @transform_6, window_bounds = array<i64: 1, 1, 128>}]} {
    %c0 = arith.constant 0 : index
    %c0_0 = arith.constant 0 : index
    %0 = vector.load %arg1[%c0, %c0_0] : memref<512x128xf32, #tpu.memory_space<vmem>>, vector<512x128xf32>
    %c0_1 = arith.constant 0 : index
    %c0_2 = arith.constant 0 : index
    %1 = vector.load %arg2[%c0_1, %c0_2] : memref<1x128xf32, #tpu.memory_space<vmem>>, vector<1x128xf32>
    %2 = vector.broadcast %1 : vector<1x128xf32> to vector<512x128xf32>
    %3 = arith.mulf %0, %2 : vector<512x128xf32>
    %c0_3 = arith.constant 0 : index
    %c0_4 = arith.constant 0 : index
    %4 = vector.load %arg3[%c0_3, %c0_4] : memref<1x128xf32, #tpu.memory_space<vmem>>, vector<1x128xf32>
    %5 = vector.broadcast %4 : vector<1x128xf32> to vector<512x128xf32>
    %6 = arith.addf %3, %5 : vector<512x128xf32>
    %cst = arith.constant 0.000000e+00 : f32
    %7 = vector.broadcast %cst : f32 to vector<512x128xf32>
    %8 = arith.maximumf %6, %7 : vector<512x128xf32>
    %9 = arith.truncf %8 : vector<512x128xf32> to vector<512x128xbf16>
    %c0_5 = arith.constant 0 : index
    %c0_6 = arith.constant 0 : index
    %10 = vector.load %arg4[%c0_5, %c0_6] : memref<128x128xbf16, #tpu.memory_space<vmem>>, vector<128x128xbf16>
    %cst_7 = arith.constant dense<0.000000e+00> : vector<512x128xf32>
    %11 = tpu.matmul %9, %10, %cst_7 {dimension_numbers = #tpu.dot_dimension_numbers<[1], [0], [0], [1], [0, 0, 1, 1], [], []>} : vector<512x128xbf16>, vector<128x128xbf16>, vector<512x128xf32> -> vector<512x128xf32>
    %12 = arith.truncf %11 : vector<512x128xf32> to vector<512x128xbf16>
    %c0_8 = arith.constant 0 : index
    %c0_9 = arith.constant 0 : index
    %13 = vector.load %arg5[%c0_8, %c0_9] : memref<512x128xbf16, #tpu.memory_space<vmem>>, vector<512x128xbf16>
    tpu.vector_store %arg5[%c0_8, %c0_9], %12 {strides = array<i32>} : memref<512x128xbf16, #tpu.memory_space<vmem>>, vector<512x128xbf16>,
    %cst_10 = arith.constant dense<0.000000e+00> : vector<128xf32>
    %14 = vector.multi_reduction <add>, %11, %cst_10 [0] : vector<512x128xf32> to vector<128xf32>
    %15 = vector.shape_cast %14 : vector<128xf32> to vector<1x128xf32>
    %c0_11 = arith.constant 0 : index
    %c0_12 = arith.constant 0 : index
    %c0_13 = arith.constant 0 : index
    %16 = vector.load %arg6[%c0_11, %c0_12, %c0_13] : memref<1x1x128xf32, #tpu.memory_space<vmem>>, vector<1x1x128xf32>
    %17 = vector.shape_cast %16 : vector<1x1x128xf32> to vector<1x128xf32>
    %18 = vector.shape_cast %15 : vector<1x128xf32> to vector<1x1x128xf32>
    tpu.vector_store %arg6[%c0_11, %c0_12, %c0_13], %18 {strides = array<i32>} : memref<1x1x128xf32, #tpu.memory_space<vmem>>, vector<1x1x128xf32>,
    %19 = arith.mulf %11, %11 : vector<512x128xf32>
    %cst_14 = arith.constant dense<0.000000e+00> : vector<128xf32>
    %20 = vector.multi_reduction <add>, %19, %cst_14 [0] : vector<512x128xf32> to vector<128xf32>
    %21 = vector.shape_cast %20 : vector<128xf32> to vector<1x128xf32>
    %c0_15 = arith.constant 0 : index
    %c0_16 = arith.constant 0 : index
    %c0_17 = arith.constant 0 : index
    %22 = vector.load %arg7[%c0_15, %c0_16, %c0_17] : memref<1x1x128xf32, #tpu.memory_space<vmem>>, vector<1x1x128xf32>
    %23 = vector.shape_cast %22 : vector<1x1x128xf32> to vector<1x128xf32>
    %24 = vector.shape_cast %21 : vector<1x128xf32> to vector<1x1x128xf32>
    tpu.vector_store %arg7[%c0_15, %c0_16, %c0_17], %24 {strides = array<i32>} : memref<1x1x128xf32, #tpu.memory_space<vmem>>, vector<1x1x128xf32>,
    return
  }
  func.func @transform_0(%arg0: i32) -> (i32, i32) {
    %c0_i32 = arith.constant 0 : i32
    %c0_i32_0 = arith.constant 0 : i32
    return %arg0, %c0_i32 : i32, i32
  }
  func.func @transform_1(%arg0: i32) -> (i32, i32) {
    %c0_i32 = arith.constant 0 : i32
    %c0_i32_0 = arith.constant 0 : i32
    %c0_i32_1 = arith.constant 0 : i32
    return %c0_i32, %c0_i32_0 : i32, i32
  }
  func.func @transform_2(%arg0: i32) -> (i32, i32) {
    %c0_i32 = arith.constant 0 : i32
    %c0_i32_0 = arith.constant 0 : i32
    %c0_i32_1 = arith.constant 0 : i32
    return %c0_i32, %c0_i32_0 : i32, i32
  }
  func.func @transform_3(%arg0: i32) -> (i32, i32) {
    %c0_i32 = arith.constant 0 : i32
    %c0_i32_0 = arith.constant 0 : i32
    %c0_i32_1 = arith.constant 0 : i32
    return %c0_i32, %c0_i32_0 : i32, i32
  }
  func.func @transform_4(%arg0: i32) -> (i32, i32) {
    %c0_i32 = arith.constant 0 : i32
    %c0_i32_0 = arith.constant 0 : i32
    return %arg0, %c0_i32 : i32, i32
  }
  func.func @transform_5(%arg0: i32) -> (i32, i32, i32) {
    %c0_i32 = arith.constant 0 : i32
    %c0_i32_0 = arith.constant 0 : i32
    %c0_i32_1 = arith.constant 0 : i32
    return %arg0, %c0_i32, %c0_i32_0 : i32, i32, i32
  }
  func.func @transform_6(%arg0: i32) -> (i32, i32, i32) {
    %c0_i32 = arith.constant 0 : i32
    %c0_i32_0 = arith.constant 0 : i32
    %c0_i32_1 = arith.constant 0 : i32
    return %arg0, %c0_i32, %c0_i32_0 : i32, i32, i32
  }
}

module attributes {stable_mosaic.version = 11 : i64} {
  func.func @_stage2_kernel(%arg0: i32, %arg1: i32, %arg2: memref<256x128xbf16, #tpu.memory_space<vmem>>, %arg3: memref<1x128xf32, #tpu.memory_space<vmem>>, %arg4: memref<1x128xf32, #tpu.memory_space<vmem>>, %arg5: memref<3x384x128xbf16, #tpu.memory_space<vmem>>, %arg6: memref<256x128xbf16, #tpu.memory_space<vmem>>, %arg7: memref<1x1x128xf32, #tpu.memory_space<vmem>>, %arg8: memref<1x1x128xf32, #tpu.memory_space<vmem>>, %arg9: memref<304x128xf32, #tpu.memory_space<vmem>>) attributes {dimension_semantics = [#tpu.dimension_semantics<parallel>, #tpu.dimension_semantics<arbitrary>], iteration_bounds = array<i64: 2, 1>, scalar_prefetch = 0 : i64, scratch_operands = 1 : i64, tpu.core_type = #tpu.core_type<tc>, window_params = [{transform_indices = @transform_0, window_bounds = array<i64: 256, 128>}, {pipeline_mode = #tpu.pipeline_mode<synchronous>, transform_indices = @transform_1, window_bounds = array<i64: 1, 128>}, {pipeline_mode = #tpu.pipeline_mode<synchronous>, transform_indices = @transform_2, window_bounds = array<i64: 1, 128>}, {pipeline_mode = #tpu.pipeline_mode<synchronous>, transform_indices = @transform_3, window_bounds = array<i64: 3, 384, 128>}, {transform_indices = @transform_4, window_bounds = array<i64: 256, 128>}, {transform_indices = @transform_5, window_bounds = array<i64: 1, 1, 128>}, {transform_indices = @transform_6, window_bounds = array<i64: 1, 1, 128>}]} {
    %c0_i32 = arith.constant 0 : i32
    %0 = arith.cmpi eq, %arg1, %c0_i32 : i32
    %1 = arith.extui %0 : i1 to i32
    %c0_i32_0 = arith.constant 0 : i32
    %2 = arith.cmpi ne, %1, %c0_i32_0 : i32
    scf.if %2 {
      %cst_50 = arith.constant 0.000000e+00 : f32
      %120 = vector.broadcast %cst_50 : f32 to vector<24x128xf32>
      %c0_51 = arith.constant 0 : index
      %c0_52 = arith.constant 0 : index
      %121 = vector.load %arg9[%c0_51, %c0_52] : memref<304x128xf32, #tpu.memory_space<vmem>>, vector<24x128xf32>
      tpu.vector_store %arg9[%c0_51, %c0_52], %120 {strides = array<i32>} : memref<304x128xf32, #tpu.memory_space<vmem>>, vector<24x128xf32>,
      %cst_53 = arith.constant 0.000000e+00 : f32
      %122 = vector.broadcast %cst_53 : f32 to vector<24x128xf32>
      %c280 = arith.constant 280 : index
      %c0_54 = arith.constant 0 : index
      %123 = vector.load %arg9[%c280, %c0_54] : memref<304x128xf32, #tpu.memory_space<vmem>>, vector<24x128xf32>
      tpu.vector_store %arg9[%c280, %c0_54], %122 {strides = array<i32>} : memref<304x128xf32, #tpu.memory_space<vmem>>, vector<24x128xf32>,
      %c0_55 = arith.constant 0 : index
      %c0_56 = arith.constant 0 : index
      %124 = vector.load %arg2[%c0_55, %c0_56] : memref<256x128xbf16, #tpu.memory_space<vmem>>, vector<256x128xbf16>
      %125 = arith.extf %124 : vector<256x128xbf16> to vector<256x128xf32>
      %c0_57 = arith.constant 0 : index
      %c0_58 = arith.constant 0 : index
      %126 = vector.load %arg3[%c0_57, %c0_58] : memref<1x128xf32, #tpu.memory_space<vmem>>, vector<1x128xf32>
      %127 = vector.broadcast %126 : vector<1x128xf32> to vector<256x128xf32>
      %128 = arith.mulf %125, %127 : vector<256x128xf32>
      %c0_59 = arith.constant 0 : index
      %c0_60 = arith.constant 0 : index
      %129 = vector.load %arg4[%c0_59, %c0_60] : memref<1x128xf32, #tpu.memory_space<vmem>>, vector<1x128xf32>
      %130 = vector.broadcast %129 : vector<1x128xf32> to vector<256x128xf32>
      %131 = arith.addf %128, %130 : vector<256x128xf32>
      %cst_61 = arith.constant 0.000000e+00 : f32
      %132 = vector.broadcast %cst_61 : f32 to vector<256x128xf32>
      %133 = arith.maximumf %131, %132 : vector<256x128xf32>
      %c24 = arith.constant 24 : index
      %c0_62 = arith.constant 0 : index
      %134 = vector.load %arg9[%c24, %c0_62] : memref<304x128xf32, #tpu.memory_space<vmem>>, vector<256x128xf32>
      tpu.vector_store %arg9[%c24, %c0_62], %133 {strides = array<i32>} : memref<304x128xf32, #tpu.memory_space<vmem>>, vector<256x128xf32>,
    } else {
    }
    %c256_i32 = arith.constant 256 : i32
    %3 = arith.muli %arg1, %c256_i32 : i32
    %4 = tpu.iota {dimensions = array<i32: 0>} : vector<256x1xi32>
    %c16_i32 = arith.constant 16 : i32
    %c0_i32_1 = arith.constant 0 : i32
    %5 = arith.cmpi eq, %c16_i32, %c0_i32_1 : i32
    %c1_i32 = arith.constant 1 : i32
    %6 = arith.select %5, %c1_i32, %c16_i32 : i32
    %7 = vector.broadcast %6 : i32 to vector<256x1xi32>
    %8 = arith.remsi %4, %7 : vector<256x1xi32>
    %c0_i32_2 = arith.constant 0 : i32
    %9 = vector.broadcast %c0_i32_2 : i32 to vector<256x1xi32>
    %10 = arith.cmpi ne, %8, %9 : vector<256x1xi32>
    %c0_i32_3 = arith.constant 0 : i32
    %11 = vector.broadcast %c0_i32_3 : i32 to vector<256x1xi32>
    %12 = arith.cmpi slt, %8, %11 : vector<256x1xi32>
    %c0_i32_4 = arith.constant 0 : i32
    %13 = arith.cmpi slt, %6, %c0_i32_4 : i32
    %14 = vector.broadcast %13 : i1 to vector<256x1xi1>
    %15 = vector.broadcast %14 : vector<256x1xi1> to vector<256x1xi1>
    %16 = arith.xori %12, %15 : vector<256x1xi1>
    %17 = arith.andi %16, %10 : vector<256x1xi1>
    %18 = vector.broadcast %6 : i32 to vector<256x1xi32>
    %19 = arith.addi %8, %18 : vector<256x1xi32>
    %20 = arith.select %17, %19, %8 : vector<256x1xi1>, vector<256x1xi32>
    %c0_i32_5 = arith.constant 0 : i32
    %21 = vector.broadcast %c0_i32_5 : i32 to vector<256x1xi32>
    %22 = arith.cmpi sgt, %20, %21 : vector<256x1xi32>
    %c15_i32 = arith.constant 15 : i32
    %23 = vector.broadcast %c15_i32 : i32 to vector<256x1xi32>
    %24 = arith.cmpi slt, %20, %23 : vector<256x1xi32>
    %cst = arith.constant 0.000000e+00 : f32
    %25 = vector.broadcast %cst : f32 to vector<256x128xf32>
    %c8_i32 = arith.constant 8 : i32
    %26 = arith.addi %c8_i32, %3 : i32
    %c0_i32_6 = arith.constant 0 : i32
    %27 = arith.addi %26, %c0_i32_6 : i32
    %28 = tpu.assume_multiple %27, 8 : i32
    %29 = arith.index_cast %28 : i32 to index
    %c0 = arith.constant 0 : index
    %30 = vector.load %arg9[%29, %c0] : memref<304x128xf32, #tpu.memory_space<vmem>>, vector<256x128xf32>
    %c1_i32_7 = arith.constant 1 : i32
    %31 = arith.subi %27, %c1_i32_7 : i32
    %32 = arith.index_cast %31 : i32 to index
    %c0_8 = arith.constant 0 : index
    %33 = vector.load %arg9[%32, %c0_8] : memref<304x128xf32, #tpu.memory_space<vmem>>, vector<256x128xf32>
    %c1_i32_9 = arith.constant 1 : i32
    %34 = arith.addi %27, %c1_i32_9 : i32
    %35 = arith.index_cast %34 : i32 to index
    %c0_10 = arith.constant 0 : index
    %36 = vector.load %arg9[%35, %c0_10] : memref<304x128xf32, #tpu.memory_space<vmem>>, vector<256x128xf32>
    %cst_11 = arith.constant 0.000000e+00 : f32
    %37 = vector.shape_cast %22 : vector<256x1xi1> to vector<256x1xi1>
    %38 = vector.broadcast %37 : vector<256x1xi1> to vector<256x128xi1>
    %39 = vector.broadcast %cst_11 : f32 to vector<256x128xf32>
    %40 = arith.select %38, %33, %39 : vector<256x128xi1>, vector<256x128xf32>
    %41 = arith.truncf %40 : vector<256x128xf32> to vector<256x128xbf16>
    %cst_12 = arith.constant 0.000000e+00 : f32
    %42 = vector.shape_cast %24 : vector<256x1xi1> to vector<256x1xi1>
    %43 = vector.broadcast %42 : vector<256x1xi1> to vector<256x128xi1>
    %44 = vector.broadcast %cst_12 : f32 to vector<256x128xf32>
    %45 = arith.select %43, %36, %44 : vector<256x128xi1>, vector<256x128xf32>
    %46 = arith.truncf %45 : vector<256x128xf32> to vector<256x128xbf16>
    %47 = arith.truncf %30 : vector<256x128xf32> to vector<256x128xbf16>
    %48 = tpu.concatenate %41, %47, %46 in 1 : vector<256x128xbf16>, vector<256x128xbf16>, vector<256x128xbf16> -> vector<256x384xbf16>
    %c0_13 = arith.constant 0 : index
    %c0_14 = arith.constant 0 : index
    %c0_15 = arith.constant 0 : index
    %49 = vector.load %arg5[%c0_13, %c0_14, %c0_15] : memref<3x384x128xbf16, #tpu.memory_space<vmem>>, vector<1x384x128xbf16>
    %50 = vector.shape_cast %49 : vector<1x384x128xbf16> to vector<384x128xbf16>
    %cst_16 = arith.constant dense<0.000000e+00> : vector<256x128xf32>
    %51 = tpu.matmul %48, %50, %cst_16 {dimension_numbers = #tpu.dot_dimension_numbers<[1], [0], [0], [1], [0, 0, 1, 1], [], []>} : vector<256x384xbf16>, vector<384x128xbf16>, vector<256x128xf32> -> vector<256x128xf32>
    %52 = arith.addf %25, %51 : vector<256x128xf32>
    %c8_i32_17 = arith.constant 8 : i32
    %53 = arith.addi %c8_i32_17, %3 : i32
    %c16_i32_18 = arith.constant 16 : i32
    %54 = arith.addi %53, %c16_i32_18 : i32
    %55 = tpu.assume_multiple %54, 8 : i32
    %56 = arith.index_cast %55 : i32 to index
    %c0_19 = arith.constant 0 : index
    %57 = vector.load %arg9[%56, %c0_19] : memref<304x128xf32, #tpu.memory_space<vmem>>, vector<256x128xf32>
    %c1_i32_20 = arith.constant 1 : i32
    %58 = arith.subi %54, %c1_i32_20 : i32
    %59 = arith.index_cast %58 : i32 to index
    %c0_21 = arith.constant 0 : index
    %60 = vector.load %arg9[%59, %c0_21] : memref<304x128xf32, #tpu.memory_space<vmem>>, vector<256x128xf32>
    %c1_i32_22 = arith.constant 1 : i32
    %61 = arith.addi %54, %c1_i32_22 : i32
    %62 = arith.index_cast %61 : i32 to index
    %c0_23 = arith.constant 0 : index
    %63 = vector.load %arg9[%62, %c0_23] : memref<304x128xf32, #tpu.memory_space<vmem>>, vector<256x128xf32>
    %cst_24 = arith.constant 0.000000e+00 : f32
    %64 = vector.shape_cast %22 : vector<256x1xi1> to vector<256x1xi1>
    %65 = vector.broadcast %64 : vector<256x1xi1> to vector<256x128xi1>
    %66 = vector.broadcast %cst_24 : f32 to vector<256x128xf32>
    %67 = arith.select %65, %60, %66 : vector<256x128xi1>, vector<256x128xf32>
    %68 = arith.truncf %67 : vector<256x128xf32> to vector<256x128xbf16>
    %cst_25 = arith.constant 0.000000e+00 : f32
    %69 = vector.shape_cast %24 : vector<256x1xi1> to vector<256x1xi1>
    %70 = vector.broadcast %69 : vector<256x1xi1> to vector<256x128xi1>
    %71 = vector.broadcast %cst_25 : f32 to vector<256x128xf32>
    %72 = arith.select %70, %63, %71 : vector<256x128xi1>, vector<256x128xf32>
    %73 = arith.truncf %72 : vector<256x128xf32> to vector<256x128xbf16>
    %74 = arith.truncf %57 : vector<256x128xf32> to vector<256x128xbf16>
    %75 = tpu.concatenate %68, %74, %73 in 1 : vector<256x128xbf16>, vector<256x128xbf16>, vector<256x128xbf16> -> vector<256x384xbf16>
    %c1 = arith.constant 1 : index
    %c0_26 = arith.constant 0 : index
    %c0_27 = arith.constant 0 : index
    %76 = vector.load %arg5[%c1, %c0_26, %c0_27] : memref<3x384x128xbf16, #tpu.memory_space<vmem>>, vector<1x384x128xbf16>
    %77 = vector.shape_cast %76 : vector<1x384x128xbf16> to vector<384x128xbf16>
    %cst_28 = arith.constant dense<0.000000e+00> : vector<256x128xf32>
    %78 = tpu.matmul %75, %77, %cst_28 {dimension_numbers = #tpu.dot_dimension_numbers<[1], [0], [0], [1], [0, 0, 1, 1], [], []>} : vector<256x384xbf16>, vector<384x128xbf16>, vector<256x128xf32> -> vector<256x128xf32>
    %79 = arith.addf %52, %78 : vector<256x128xf32>
    %c8_i32_29 = arith.constant 8 : i32
    %80 = arith.addi %c8_i32_29, %3 : i32
    %c32_i32 = arith.constant 32 : i32
    %81 = arith.addi %80, %c32_i32 : i32
    %82 = tpu.assume_multiple %81, 8 : i32
    %83 = arith.index_cast %82 : i32 to index
    %c0_30 = arith.constant 0 : index
    %84 = vector.load %arg9[%83, %c0_30] : memref<304x128xf32, #tpu.memory_space<vmem>>, vector<256x128xf32>
    %c1_i32_31 = arith.constant 1 : i32
    %85 = arith.subi %81, %c1_i32_31 : i32
    %86 = arith.index_cast %85 : i32 to index
    %c0_32 = arith.constant 0 : index
    %87 = vector.load %arg9[%86, %c0_32] : memref<304x128xf32, #tpu.memory_space<vmem>>, vector<256x128xf32>
    %c1_i32_33 = arith.constant 1 : i32
    %88 = arith.addi %81, %c1_i32_33 : i32
    %89 = arith.index_cast %88 : i32 to index
    %c0_34 = arith.constant 0 : index
    %90 = vector.load %arg9[%89, %c0_34] : memref<304x128xf32, #tpu.memory_space<vmem>>, vector<256x128xf32>
    %cst_35 = arith.constant 0.000000e+00 : f32
    %91 = vector.shape_cast %22 : vector<256x1xi1> to vector<256x1xi1>
    %92 = vector.broadcast %91 : vector<256x1xi1> to vector<256x128xi1>
    %93 = vector.broadcast %cst_35 : f32 to vector<256x128xf32>
    %94 = arith.select %92, %87, %93 : vector<256x128xi1>, vector<256x128xf32>
    %95 = arith.truncf %94 : vector<256x128xf32> to vector<256x128xbf16>
    %cst_36 = arith.constant 0.000000e+00 : f32
    %96 = vector.shape_cast %24 : vector<256x1xi1> to vector<256x1xi1>
    %97 = vector.broadcast %96 : vector<256x1xi1> to vector<256x128xi1>
    %98 = vector.broadcast %cst_36 : f32 to vector<256x128xf32>
    %99 = arith.select %97, %90, %98 : vector<256x128xi1>, vector<256x128xf32>
    %100 = arith.truncf %99 : vector<256x128xf32> to vector<256x128xbf16>
    %101 = arith.truncf %84 : vector<256x128xf32> to vector<256x128xbf16>
    %102 = tpu.concatenate %95, %101, %100 in 1 : vector<256x128xbf16>, vector<256x128xbf16>, vector<256x128xbf16> -> vector<256x384xbf16>
    %c2 = arith.constant 2 : index
    %c0_37 = arith.constant 0 : index
    %c0_38 = arith.constant 0 : index
    %103 = vector.load %arg5[%c2, %c0_37, %c0_38] : memref<3x384x128xbf16, #tpu.memory_space<vmem>>, vector<1x384x128xbf16>
    %104 = vector.shape_cast %103 : vector<1x384x128xbf16> to vector<384x128xbf16>
    %cst_39 = arith.constant dense<0.000000e+00> : vector<256x128xf32>
    %105 = tpu.matmul %102, %104, %cst_39 {dimension_numbers = #tpu.dot_dimension_numbers<[1], [0], [0], [1], [0, 0, 1, 1], [], []>} : vector<256x384xbf16>, vector<384x128xbf16>, vector<256x128xf32> -> vector<256x128xf32>
    %106 = arith.addf %79, %105 : vector<256x128xf32>
    %107 = arith.truncf %106 : vector<256x128xf32> to vector<256x128xbf16>
    %c0_40 = arith.constant 0 : index
    %c0_41 = arith.constant 0 : index
    %108 = vector.load %arg6[%c0_40, %c0_41] : memref<256x128xbf16, #tpu.memory_space<vmem>>, vector<256x128xbf16>
    tpu.vector_store %arg6[%c0_40, %c0_41], %107 {strides = array<i32>} : memref<256x128xbf16, #tpu.memory_space<vmem>>, vector<256x128xbf16>,
    %cst_42 = arith.constant dense<0.000000e+00> : vector<128xf32>
    %109 = vector.multi_reduction <add>, %106, %cst_42 [0] : vector<256x128xf32> to vector<128xf32>
    %110 = vector.shape_cast %109 : vector<128xf32> to vector<1x128xf32>
    %c0_43 = arith.constant 0 : index
    %c0_44 = arith.constant 0 : index
    %c0_45 = arith.constant 0 : index
    %111 = vector.load %arg7[%c0_43, %c0_44, %c0_45] : memref<1x1x128xf32, #tpu.memory_space<vmem>>, vector<1x1x128xf32>
    %112 = vector.shape_cast %111 : vector<1x1x128xf32> to vector<1x128xf32>
    %113 = vector.shape_cast %110 : vector<1x128xf32> to vector<1x1x128xf32>
    tpu.vector_store %arg7[%c0_43, %c0_44, %c0_45], %113 {strides = array<i32>} : memref<1x1x128xf32, #tpu.memory_space<vmem>>, vector<1x1x128xf32>,
    %114 = arith.mulf %106, %106 : vector<256x128xf32>
    %cst_46 = arith.constant dense<0.000000e+00> : vector<128xf32>
    %115 = vector.multi_reduction <add>, %114, %cst_46 [0] : vector<256x128xf32> to vector<128xf32>
    %116 = vector.shape_cast %115 : vector<128xf32> to vector<1x128xf32>
    %c0_47 = arith.constant 0 : index
    %c0_48 = arith.constant 0 : index
    %c0_49 = arith.constant 0 : index
    %117 = vector.load %arg8[%c0_47, %c0_48, %c0_49] : memref<1x1x128xf32, #tpu.memory_space<vmem>>, vector<1x1x128xf32>
    %118 = vector.shape_cast %117 : vector<1x1x128xf32> to vector<1x128xf32>
    %119 = vector.shape_cast %116 : vector<1x128xf32> to vector<1x1x128xf32>
    tpu.vector_store %arg8[%c0_47, %c0_48, %c0_49], %119 {strides = array<i32>} : memref<1x1x128xf32, #tpu.memory_space<vmem>>, vector<1x1x128xf32>,
    return
  }
  func.func @transform_0(%arg0: i32, %arg1: i32) -> (i32, i32) {
    %c0_i32 = arith.constant 0 : i32
    %c0_i32_0 = arith.constant 0 : i32
    return %arg0, %c0_i32 : i32, i32
  }
  func.func @transform_1(%arg0: i32, %arg1: i32) -> (i32, i32) {
    %c0_i32 = arith.constant 0 : i32
    %c0_i32_0 = arith.constant 0 : i32
    %c0_i32_1 = arith.constant 0 : i32
    return %c0_i32, %c0_i32_0 : i32, i32
  }
  func.func @transform_2(%arg0: i32, %arg1: i32) -> (i32, i32) {
    %c0_i32 = arith.constant 0 : i32
    %c0_i32_0 = arith.constant 0 : i32
    %c0_i32_1 = arith.constant 0 : i32
    return %c0_i32, %c0_i32_0 : i32, i32
  }
  func.func @transform_3(%arg0: i32, %arg1: i32) -> (i32, i32, i32) {
    %c0_i32 = arith.constant 0 : i32
    %c0_i32_0 = arith.constant 0 : i32
    %c0_i32_1 = arith.constant 0 : i32
    %c0_i32_2 = arith.constant 0 : i32
    return %c0_i32, %c0_i32_0, %c0_i32_1 : i32, i32, i32
  }
  func.func @transform_4(%arg0: i32, %arg1: i32) -> (i32, i32) {
    %c1_i32 = arith.constant 1 : i32
    %0 = arith.muli %arg0, %c1_i32 : i32
    %1 = arith.addi %0, %arg1 : i32
    %c0_i32 = arith.constant 0 : i32
    %c0_i32_0 = arith.constant 0 : i32
    return %1, %c0_i32 : i32, i32
  }
  func.func @transform_5(%arg0: i32, %arg1: i32) -> (i32, i32, i32) {
    %c1_i32 = arith.constant 1 : i32
    %0 = arith.muli %arg0, %c1_i32 : i32
    %1 = arith.addi %0, %arg1 : i32
    %c0_i32 = arith.constant 0 : i32
    %c0_i32_0 = arith.constant 0 : i32
    %c0_i32_1 = arith.constant 0 : i32
    return %1, %c0_i32, %c0_i32_0 : i32, i32, i32
  }
  func.func @transform_6(%arg0: i32, %arg1: i32) -> (i32, i32, i32) {
    %c1_i32 = arith.constant 1 : i32
    %0 = arith.muli %arg0, %c1_i32 : i32
    %1 = arith.addi %0, %arg1 : i32
    %c0_i32 = arith.constant 0 : i32
    %c0_i32_0 = arith.constant 0 : i32
    %c0_i32_1 = arith.constant 0 : i32
    return %1, %c0_i32, %c0_i32_0 : i32, i32, i32
  }
}

module attributes {stable_mosaic.version = 11 : i64} {
  func.func @_stage3_proj_kernel(%arg0: i32, %arg1: memref<512x128xbf16, #tpu.memory_space<vmem>>, %arg2: memref<1x128xf32, #tpu.memory_space<vmem>>, %arg3: memref<1x128xf32, #tpu.memory_space<vmem>>, %arg4: memref<128x128xbf16, #tpu.memory_space<vmem>>, %arg5: memref<512x128xbf16, #tpu.memory_space<vmem>>, %arg6: memref<128x128xbf16, #tpu.memory_space<vmem>>, %arg7: memref<512x128xf32, #tpu.memory_space<vmem>>) attributes {dimension_semantics = [#tpu.dimension_semantics<parallel>], iteration_bounds = array<i64: 1>, scalar_prefetch = 0 : i64, scratch_operands = 0 : i64, tpu.core_type = #tpu.core_type<tc>, window_params = [{transform_indices = @transform_0, window_bounds = array<i64: 512, 128>}, {pipeline_mode = #tpu.pipeline_mode<synchronous>, transform_indices = @transform_1, window_bounds = array<i64: 1, 128>}, {pipeline_mode = #tpu.pipeline_mode<synchronous>, transform_indices = @transform_2, window_bounds = array<i64: 1, 128>}, {pipeline_mode = #tpu.pipeline_mode<synchronous>, transform_indices = @transform_3, window_bounds = array<i64: 128, 128>}, {transform_indices = @transform_4, window_bounds = array<i64: 512, 128>}, {pipeline_mode = #tpu.pipeline_mode<synchronous>, transform_indices = @transform_5, window_bounds = array<i64: 128, 128>}, {transform_indices = @transform_6, window_bounds = array<i64: 512, 128>}]} {
    %c0 = arith.constant 0 : index
    %c0_0 = arith.constant 0 : index
    %0 = vector.load %arg1[%c0, %c0_0] : memref<512x128xbf16, #tpu.memory_space<vmem>>, vector<512x128xbf16>
    %1 = arith.extf %0 : vector<512x128xbf16> to vector<512x128xf32>
    %c0_1 = arith.constant 0 : index
    %c0_2 = arith.constant 0 : index
    %2 = vector.load %arg2[%c0_1, %c0_2] : memref<1x128xf32, #tpu.memory_space<vmem>>, vector<1x128xf32>
    %3 = vector.broadcast %2 : vector<1x128xf32> to vector<512x128xf32>
    %4 = arith.mulf %1, %3 : vector<512x128xf32>
    %c0_3 = arith.constant 0 : index
    %c0_4 = arith.constant 0 : index
    %5 = vector.load %arg3[%c0_3, %c0_4] : memref<1x128xf32, #tpu.memory_space<vmem>>, vector<1x128xf32>
    %6 = vector.broadcast %5 : vector<1x128xf32> to vector<512x128xf32>
    %7 = arith.addf %4, %6 : vector<512x128xf32>
    %cst = arith.constant 0.000000e+00 : f32
    %8 = vector.broadcast %cst : f32 to vector<512x128xf32>
    %9 = arith.maximumf %7, %8 : vector<512x128xf32>
    %10 = arith.truncf %9 : vector<512x128xf32> to vector<512x128xbf16>
    %c0_5 = arith.constant 0 : index
    %c0_6 = arith.constant 0 : index
    %11 = vector.load %arg4[%c0_5, %c0_6] : memref<128x128xbf16, #tpu.memory_space<vmem>>, vector<128x128xbf16>
    %cst_7 = arith.constant dense<0.000000e+00> : vector<512x128xf32>
    %12 = tpu.matmul %10, %11, %cst_7 {dimension_numbers = #tpu.dot_dimension_numbers<[1], [0], [0], [1], [0, 0, 1, 1], [], []>} : vector<512x128xbf16>, vector<128x128xbf16>, vector<512x128xf32> -> vector<512x128xf32>
    %c0_8 = arith.constant 0 : index
    %c0_9 = arith.constant 0 : index
    %13 = vector.load %arg5[%c0_8, %c0_9] : memref<512x128xbf16, #tpu.memory_space<vmem>>, vector<512x128xbf16>
    %c0_10 = arith.constant 0 : index
    %c0_11 = arith.constant 0 : index
    %14 = vector.load %arg6[%c0_10, %c0_11] : memref<128x128xbf16, #tpu.memory_space<vmem>>, vector<128x128xbf16>
    %cst_12 = arith.constant dense<0.000000e+00> : vector<512x128xf32>
    %15 = tpu.matmul %13, %14, %cst_12 {dimension_numbers = #tpu.dot_dimension_numbers<[1], [0], [0], [1], [0, 0, 1, 1], [], []>} : vector<512x128xbf16>, vector<128x128xbf16>, vector<512x128xf32> -> vector<512x128xf32>
    %16 = arith.addf %12, %15 : vector<512x128xf32>
    %c0_13 = arith.constant 0 : index
    %c0_14 = arith.constant 0 : index
    %17 = vector.load %arg7[%c0_13, %c0_14] : memref<512x128xf32, #tpu.memory_space<vmem>>, vector<512x128xf32>
    tpu.vector_store %arg7[%c0_13, %c0_14], %16 {strides = array<i32>} : memref<512x128xf32, #tpu.memory_space<vmem>>, vector<512x128xf32>,
    return
  }
  func.func @transform_0(%arg0: i32) -> (i32, i32) {
    %c0_i32 = arith.constant 0 : i32
    %c0_i32_0 = arith.constant 0 : i32
    return %arg0, %c0_i32 : i32, i32
  }
  func.func @transform_1(%arg0: i32) -> (i32, i32) {
    %c0_i32 = arith.constant 0 : i32
    %c0_i32_0 = arith.constant 0 : i32
    %c0_i32_1 = arith.constant 0 : i32
    return %c0_i32, %c0_i32_0 : i32, i32
  }
  func.func @transform_2(%arg0: i32) -> (i32, i32) {
    %c0_i32 = arith.constant 0 : i32
    %c0_i32_0 = arith.constant 0 : i32
    %c0_i32_1 = arith.constant 0 : i32
    return %c0_i32, %c0_i32_0 : i32, i32
  }
  func.func @transform_3(%arg0: i32) -> (i32, i32) {
    %c0_i32 = arith.constant 0 : i32
    %c0_i32_0 = arith.constant 0 : i32
    %c0_i32_1 = arith.constant 0 : i32
    return %c0_i32, %c0_i32_0 : i32, i32
  }
  func.func @transform_4(%arg0: i32) -> (i32, i32) {
    %c0_i32 = arith.constant 0 : i32
    %c0_i32_0 = arith.constant 0 : i32
    return %arg0, %c0_i32 : i32, i32
  }
  func.func @transform_5(%arg0: i32) -> (i32, i32) {
    %c0_i32 = arith.constant 0 : i32
    %c0_i32_0 = arith.constant 0 : i32
    %c0_i32_1 = arith.constant 0 : i32
    return %c0_i32, %c0_i32_0 : i32, i32
  }
  func.func @transform_6(%arg0: i32) -> (i32, i32) {
    %c0_i32 = arith.constant 0 : i32
    %c0_i32_0 = arith.constant 0 : i32
    return %arg0, %c0_i32 : i32, i32
  }
}

</mosaic_0001>

<bundles_post_ra>
// kernel: bottleneck_forward.3
= control target key start
LH: loop header
LB: loop body
LE: loop exit
PB: predicated region body
PF: predicated region fallthrough
CT: control target
= control target key end

     0   :  { %s2471_s3 = inlined_call_operand.vmem [shape: bf16[128,128], index: 3, kind: input, shape index: {}]   ;;  %s2472_s0 = inlined_call_operand.vmem [shape: f32[512,128], index: 0, kind: input, shape index: {}]   ;;  %s2473_s1 = inlined_call_operand.vmem [shape: f32[1,128], index: 1, kind: input, shape index: {}]   ;;  %s2474_s2 = inlined_call_operand.vmem [shape: f32[1,128], index: 2, kind: input, shape index: {}]   ;;  %s2475_s4 = inlined_call_operand.vmem [shape: bf16[512,128], index: 4, kind: output, shape index: {0}]   ;;  %s2476_s5 = inlined_call_operand.vmem [shape: f32[1,1,128], index: 5, kind: output, shape index: {1}]   ;;  %s2477_s6 = inlined_call_operand.vmem [shape: f32[1,1,128], index: 6, kind: output, shape index: {2}]  }
   0x1   :  { %v1677_v0 = vld [vmem:[%s2471_s3 + $0x38] sm:$0xff]   ;;  %v1678_v1 = vld [vmem:[%s2471_s3 + $0x30] sm:$0xff]   ;;  %v1679_v2 = vld [vmem:[%s2471_s3 + $0x28] sm:$0xff]  }
   0x2   :  { %1581 = vmatprep.subr.bf16.mxu0 %v1677_v0  ;;  %1661 = vmatprep.subr.bf16.mxu1 %v1677_v0  ;;  %v1680_v3 = vld [vmem:[%s2471_s3 + $0x20] sm:$0xff]   ;;  %v22_v5 = vld [vmem:[%s2472_s0 + $0x8] sm:$0xff]  ;;  %v23_v10 = vld [vmem:[%s2472_s0 + $0x10] sm:$0xff] }
   0x3   :  { %1582 = vmatpush3.bf16.msra.mxu0 %v1677_v0  ;;  %1669 = vmatpush3.bf16.msra.mxu1 %v1677_v0  ;;  %v21_v4 = vld [vmem:[%s2472_s0] sm:$0xff]  ;;  %v1756_v11 = vld [vmem:[%s2471_s3 + $0x18] sm:$0xff]   ;;  %v26_v16 = vld [vmem:[%s2472_s0 + $0x28] sm:$0xff] }
   0x4   :  { %1583 = vmatprep.subr.bf16.mxu0 %v1678_v1  ;;  %1662 = vmatprep.subr.bf16.mxu1 %v1678_v1  ;;  %v1741_v6 = vld [vmem:[%s2473_s1] ss:$0 sm:$0xff]  ;;  %v24_v14 = vld [vmem:[%s2472_s0 + $0x18] sm:$0xff]  ;;  %v27_v17 = vld [vmem:[%s2472_s0 + $0x30] sm:$0xff] }
   0x5   :  { %v92_v7 = vmul.f32 %v1741_v6, %v21_v4  ;;  %v93_v8 = vmul.f32 %v1741_v6, %v22_v5  ;;  %v1748_v9 = vld [vmem:[%s2474_s2] ss:$0 sm:$0xff]  ;;  %v28_v18 = vld [vmem:[%s2472_s0 + $0x38] sm:$0xff]  ;;  %v94_v21 = vmul.f32 %v1741_v6, %v23_v10  ;;  %v30_v23 = vld [vmem:[%s2472_s0 + $0x48] sm:$0xff]  ;;  %v95_v24 = vmul.f32 %v1741_v6, %v24_v14 }
   0x6   :  { %v25_v15 = vld [vmem:[%s2472_s0 + $0x20] sm:$0xff]  ;;  %v31_v26 = vld [vmem:[%s2472_s0 + $0x50] sm:$0xff]  ;;  %v32_v27 = vld [vmem:[%s2472_s0 + $0x58] sm:$0xff]  ;;  %v97_v29 = vmul.f32 %v1741_v6, %v26_v16  ;;  %v98_v30 = vmul.f32 %v1741_v6, %v27_v17  ;;  %v99_v31 = vmul.f32 %v1741_v6, %v28_v18  ;;  %v101_v36 = vmul.f32 %v1741_v6, %v30_v23 }
   0x7   :  { %1584 = vmatpush3.bf16.msra.mxu0 %v1678_v1  ;;  %1670 = vmatpush3.bf16.msra.mxu1 %v1678_v1  ;;  %v163_v12 = vadd.f32 %v1748_v9, %v92_v7  ;;  %v164_v13 = vadd.f32 %v1748_v9, %v93_v8  ;;  %v29_v22 = vld [vmem:[%s2472_s0 + $0x40] sm:$0xff]  ;;  %v96_v25 = vmul.f32 %v1741_v6, %v25_v15  ;;  %v34_v33 = vld [vmem:[%s2472_s0 + $0x68] sm:$0xff]  ;;  %v1682_v34 = vld [vmem:[%s2471_s3 + $0x10] sm:$0xff]  }
   0x8   :  { %1585 = vmatprep.subr.bf16.mxu0 %v1679_v2  ;;  %1663 = vmatprep.subr.bf16.mxu1 %v1679_v2  ;;  %v33_v32 = vld [vmem:[%s2472_s0 + $0x60] sm:$0xff]  ;;  %v100_v35 = vmul.f32 %v1741_v6, %v29_v22  ;;  %v165_v37 = vadd.f32 %v1748_v9, %v94_v21  ;;  %v102_v38 = vmul.f32 %v1741_v6, %v31_v26  ;;  %v35_v44 = vld [vmem:[%s2472_s0 + $0x70] sm:$0xff]  ;;  %v36_v48 = vld [vmem:[%s2472_s0 + $0x78] sm:$0xff] }
   0x9   :  { %v227_v19 = vmax.f32 %v163_v12, 0.0  ;;  %v228_v20 = vmax.f32 %v164_v13, 0.0  ;;  %v103_v39 = vmul.f32 %v1741_v6, %v32_v27  ;;  %v166_v40 = vadd.f32 %v1748_v9, %v95_v24  ;;  %v37_v49 = vld [vmem:[%s2472_s0 + $0x80] sm:$0xff]  ;;  %v1829_v50 = vld [vmem:[%s2471_s3 + $0x8] sm:$0xff]   ;;  %v39_v0 = vld [vmem:[%s2472_s0 + $0x90] sm:$0xff] }
   0xa   :  { %v167_v41 = vadd.f32 %v1748_v9, %v96_v25  ;;  %v104_v42 = vmul.f32 %v1741_v6, %v33_v32  ;;  %v105_v43 = vmul.f32 %v1741_v6, %v34_v33  ;;  %v168_v45 = vadd.f32 %v1748_v9, %v97_v29  ;;  %v38_v55 = vld [vmem:[%s2472_s0 + $0x88] sm:$0xff]  ;;  %v40_v5 = vld [vmem:[%s2472_s0 + $0x98] sm:$0xff]  ;;  %v1684_v7 = vld [vmem:[%s2471_s3] sm:$0xff]  }
   0xb   :  { %1586 = vmatpush3.bf16.msra.mxu0 %v1679_v2  ;;  %1671 = vmatpush3.bf16.msra.mxu1 %v1679_v2  ;;  %v291_v28 = vpack.c.bf16 %v228_v20, %v227_v19  ;;  %v169_v46 = vadd.f32 %v1748_v9, %v98_v30  ;;  %v170_v47 = vadd.f32 %v1748_v9, %v99_v31  ;;  %v229_v56 = vmax.f32 %v165_v37, 0.0  ;;  %v41_v13 = vld [vmem:[%s2472_s0 + $0xa0] sm:$0xff]  ;;  %v42_v18 = vld [vmem:[%s2472_s0 + $0xa8] sm:$0xff]  ;;  %v43_v25 = vld [vmem:[%s2472_s0 + $0xb0] sm:$0xff] }
   0xc   :  { %1587 = vmatprep.subr.bf16.mxu0 %v1680_v3  ;;  %1664 = vmatprep.subr.bf16.mxu1 %v1680_v3  ;;  %v171_v51 = vadd.f32 %v1748_v9, %v100_v35  ;;  %v172_v52 = vadd.f32 %v1748_v9, %v101_v36  ;;  %v173_v53 = vadd.f32 %v1748_v9, %v102_v38  ;;  %v230_v60 = vmax.f32 %v166_v40, 0.0  ;;  %v47_v30 = vld [vmem:[%s2472_s0 + $0xd0] sm:$0xff]  ;;  %v48_v31 = vld [vmem:[%s2472_s0 + $0xd8] sm:$0xff]  ;;  %v49_v37 = vld [vmem:[%s2472_s0 + $0xe0] sm:$0xff] }
   0xd   :  { %1597 = vmatprep.mubr.bf16.mxu0 %v291_v28  ;;  %v174_v54 = vadd.f32 %v1748_v9, %v103_v39  ;;  %v175_v57 = vadd.f32 %v1748_v9, %v104_v42  ;;  %v176_v58 = vadd.f32 %v1748_v9, %v105_v43  ;;  %v106_v59 = vmul.f32 %v1741_v6, %v35_v44  ;;  %v44_v36 = vld [vmem:[%s2472_s0 + $0xb8] sm:$0xff]  ;;  %v50_v38 = vld [vmem:[%s2472_s0 + $0xe8] sm:$0xff]  ;;  %v51_v43 = vld [vmem:[%s2472_s0 + $0xf0] sm:$0xff] }
   0xe   :  { %v231_v61 = vmax.f32 %v167_v41, 0.0  ;;  %v107_v62 = vmul.f32 %v1741_v6, %v36_v48  ;;  %v108_v63 = vmul.f32 %v1741_v6, %v37_v49  ;;  %v232_v1 = vmax.f32 %v168_v45, 0.0  ;;  %v52_v48 = vld [vmem:[%s2472_s0 + $0xf8] sm:$0xff] }
   0xf   :  { %1588 = vmatpush3.bf16.msra.mxu0 %v1680_v3  ;;  %1672 = vmatpush3.bf16.msra.mxu1 %v1680_v3  ;;  %v233_v2 = vmax.f32 %v169_v46, 0.0  ;;  %v234_v3 = vmax.f32 %v170_v47, 0.0  ;;  %v109_v4 = vmul.f32 %v1741_v6, %v38_v55  ;;  %v235_v8 = vmax.f32 %v171_v51, 0.0 }
  0x10   :  { %1589 = vmatprep.subr.bf16.mxu0 %v1756_v11  ;;  %1665 = vmatprep.subr.bf16.mxu1 %v1756_v11  ;;  %v236_v10 = vmax.f32 %v172_v52, 0.0  ;;  %v238_v12 = vmax.f32 %v174_v54, 0.0  ;;  %v239_v14 = vmax.f32 %v175_v57, 0.0  ;;  %v240_v15 = vmax.f32 %v176_v58, 0.0 }
  0x11   :  { %v1859_v16 = vadd.f32 %v1748_v9, %v106_v59  ;;  %v110_v17 = vmul.f32 %v1741_v6, %v39_v0  ;;  %v1866_v19 = vadd.f32 %v1748_v9, %v107_v62  ;;  %v1869_v20 = vadd.f32 %v1748_v9, %v108_v63  ;;  %v54_v62 = vld [vmem:[%s2472_s0 + $0x108] sm:$0xff] }
  0x12   :  { %v111_v21 = vmul.f32 %v1741_v6, %v40_v5  ;;  %v292_v22 = vpack.c.bf16 %v230_v60, %v229_v56  ;;  %v1874_v23 = vadd.f32 %v1748_v9, %v109_v4  ;;  %v112_v24 = vmul.f32 %v1741_v6, %v41_v13  ;;  %v56_v4 = vld [vmem:[%s2472_s0 + $0x118] sm:$0xff] }
  0x13   :  { %1590 = vmatpush3.bf16.msra.mxu0 %v1756_v11  ;;  %1673 = vmatpush3.bf16.msra.mxu1 %v1756_v11  ;;  %v237_v11 = vmax.f32 %v173_v53, 0.0  ;;  %v293_v26 = vpack.c.bf16 %v232_v1, %v231_v61  ;;  %v1881_v27 = vpack.c.bf16 %v234_v3, %v233_v2  ;;  %v1883_v28 = vpack.c.bf16 %v236_v10, %v235_v8  ;;  %v53_v53 = vld [vmem:[%s2472_s0 + $0x100] sm:$0xff]  ;;  %v55_v3 = vld [vmem:[%s2472_s0 + $0x110] sm:$0xff] }
  0x14   :  { %1591 = vmatprep.subr.bf16.mxu0 %v1682_v34  ;;  %1666 = vmatprep.subr.bf16.mxu1 %v1682_v34  ;;  %v113_v29 = vmul.f32 %v1741_v6, %v42_v18  ;;  %v1894_v33 = vpack.c.bf16 %v240_v15, %v239_v14  ;;  %v1898_v35 = vadd.f32 %v1748_v9, %v110_v17  ;;  %v242_v39 = vmax.f32 %v1866_v19, 0.0  ;;  %v59_v18 = vld [vmem:[%s2472_s0 + $0x130] sm:$0xff] }
  0x15   :  { %v1892_v32 = vpack.c.bf16 %v238_v12, %v237_v11  ;;  %v243_v40 = vmax.f32 %v1869_v20, 0.0  ;;  %v1912_v41 = vadd.f32 %v1748_v9, %v111_v21  ;;  %v114_v42 = vmul.f32 %v1741_v6, %v43_v25  ;;  %v57_v11 = vld [vmem:[%s2472_s0 + $0x120] sm:$0xff]  ;;  %v58_v12 = vld [vmem:[%s2472_s0 + $0x128] sm:$0xff] }
  0x16   :  { %v244_v44 = vmax.f32 %v1874_v23, 0.0  ;;  %v1921_v45 = vadd.f32 %v1748_v9, %v112_v24  ;;  %v118_v46 = vmul.f32 %v1741_v6, %v47_v30  ;;  %v119_v47 = vmul.f32 %v1741_v6, %v48_v31 }
  0x17   :  { %1592 = vmatpush3.bf16.msra.mxu0 %v1682_v34  ;;  %1674 = vmatpush3.bf16.msra.mxu1 %v1682_v34  ;;  %v241_v34 = vmax.f32 %v1859_v16, 0.0  ;;  %v1929_v49 = vadd.f32 %v1748_v9, %v113_v29  ;;  %v120_v51 = vmul.f32 %v1741_v6, %v49_v37  ;;  %v121_v52 = vmul.f32 %v1741_v6, %v50_v38  ;;  %v61_v37 = vld [vmem:[%s2472_s0 + $0x140] sm:$0xff]  ;;  %v76_v16 = vld [vmem:[%s2472_s0 + $0x1b8] sm:$0xff] }
  0x18   :  { %1593 = vmatprep.subr.bf16.mxu0 %v1829_v50  ;;  %1667 = vmatprep.subr.bf16.mxu1 %v1829_v50  ;;  %v245_v54 = vmax.f32 %v1898_v35, 0.0  ;;  %v189_v55 = vadd.f32 %v1748_v9, %v118_v46  ;;  %v190_v56 = vadd.f32 %v1748_v9, %v119_v47  ;;  %v122_v57 = vmul.f32 %v1741_v6, %v51_v43  ;;  %v45_v47 = vld [vmem:[%s2472_s0 + $0xc0] sm:$0xff]  ;;  %v71_v35 = vld [vmem:[%s2472_s0 + $0x190] sm:$0xff] }
  0x19   :  { %v246_v58 = vmax.f32 %v1912_v41, 0.0  ;;  %v191_v59 = vadd.f32 %v1748_v9, %v120_v51  ;;  %v192_v60 = vadd.f32 %v1748_v9, %v121_v52  ;;  %v123_v61 = vmul.f32 %v1741_v6, %v52_v48 }
  0x1a   :  { %v253_v63 = vmax.f32 %v189_v55, 0.0  ;;  %v254_v0 = vmax.f32 %v190_v56, 0.0  ;;  %v193_v1 = vadd.f32 %v1748_v9, %v122_v57  ;;  %v124_v2 = vmul.f32 %v1741_v6, %v53_v53  ;;  %v62_v55 = vld [vmem:[%s2472_s0 + $0x148] sm:$0xff] }
  0x1b   :  { %1594 = vmatpush3.bf16.msra.mxu0 %v1829_v50  ;;  %1675 = vmatpush3.bf16.msra.mxu1 %v1829_v50  ;;  %v1932_v50 = vmul.f32 %v1741_v6, %v44_v36  ;;  %v1959_v5 = vadd.f32 %v1748_v9, %v114_v42  ;;  %v256_v8 = vmax.f32 %v192_v60, 0.0  ;;  %v194_v10 = vadd.f32 %v1748_v9, %v123_v61  ;;  %v63_v61 = vld [vmem:[%s2472_s0 + $0x150] sm:$0xff] }
  0x1c   :  { %1595 = vmatprep.subr.bf16.mxu0 %v1684_v7  ;;  %1668 = vmatprep.subr.bf16.mxu1 %v1684_v7  ;;  %v1968_v13 = vpack.c.bf16 %v254_v0, %v253_v63  ;;  %v257_v14 = vmax.f32 %v193_v1, 0.0  ;;  %v125_v15 = vmul.f32 %v1741_v6, %v54_v62  ;;  %v195_v17 = vadd.f32 %v1748_v9, %v124_v2  ;;  %v64_v62 = vld [vmem:[%s2472_s0 + $0x158] sm:$0xff]  ;;  %v65_v2 = vld [vmem:[%s2472_s0 + $0x160] sm:$0xff] }
  0x1d   :  { %v126_v24 = vmul.f32 %v1741_v6, %v55_v3  ;;  %v127_v25 = vmul.f32 %v1741_v6, %v56_v4  ;;  %v128_v31 = vmul.f32 %v1741_v6, %v57_v11  ;;  %v129_v36 = vmul.f32 %v1741_v6, %v58_v12  ;;  %v66_v3 = vld [vmem:[%s2472_s0 + $0x168] sm:$0xff] }
  0x1e   :  { %v196_v29 = vadd.f32 %v1748_v9, %v125_v15  ;;  %v259_v30 = vmax.f32 %v195_v17, 0.0  ;;  %v130_v46 = vmul.f32 %v1741_v6, %v59_v18  ;;  %v132_v60 = vmul.f32 %v1741_v6, %v61_v37  ;;  %v68_v17 = vld [vmem:[%s2472_s0 + $0x178] sm:$0xff] }
  0x1f   :  { %1596 = vmatpush3.bf16.msra.mxu0 %v1684_v7  ;;  %1676 = vmatpush3.bf16.msra.mxu1 %v1684_v7  ;;  %v255_v7 = vmax.f32 %v191_v59, 0.0  ;;  %v197_v42 = vadd.f32 %v1748_v9, %v126_v24  ;;  %v198_v43 = vadd.f32 %v1748_v9, %v127_v25  ;;  %v199_v51 = vadd.f32 %v1748_v9, %v128_v31 }
  0x20   :  { %v260_v48 = vmax.f32 %v196_v29, 0.0  ;;  %v200_v52 = vadd.f32 %v1748_v9, %v129_v36  ;;  %v201_v59 = vadd.f32 %v1748_v9, %v130_v46  ;;  %v116_v4 = vmul.f32 %v1741_v6, %v45_v47  ;;  %v46_v29 = vld [vmem:[%s2472_s0 + $0xc8] sm:$0xff] }
  0x21   :  { %v1975_v21 = vpack.c.bf16 %v256_v8, %v255_v7  ;;  %v261_v56 = vmax.f32 %v197_v42, 0.0  ;;  %v262_v57 = vmax.f32 %v198_v43, 0.0  ;;  %v263_v0 = vmax.f32 %v199_v51, 0.0 }
  0x22   :  { %1598 = vmatmul.mubr.bf16.vlgmr.msra.gmra.mxu0 %v292_v22  ;;  %v258_v22 = vmax.f32 %v194_v10, 0.0  ;;  %v307_v63 = vpack.c.bf16 %v260_v48, %v259_v30  ;;  %v264_v1 = vmax.f32 %v200_v52, 0.0  ;;  %v133_v8 = vmul.f32 %v1741_v6, %v62_v55  ;;  %v67_v10 = vld [vmem:[%s2472_s0 + $0x170] sm:$0xff] }
  0x23   :  { %1601 = vmatprep.mubr.bf16.mxu0 %v293_v26  ;;  %v60_v26 = vld [vmem:[%s2472_s0 + $0x138] sm:$0xff]  ;;  %v308_v7 = vpack.c.bf16 %v262_v57, %v261_v56  ;;  %v265_v12 = vmax.f32 %v201_v59, 0.0  ;;  %v135_v15 = vmul.f32 %v1741_v6, %v64_v62  ;;  %v136_v24 = vmul.f32 %v1741_v6, %v65_v2 }
  0x24   :  { %v1988_v38 = vpack.c.bf16 %v258_v22, %v257_v14  ;;  %v131_v53 = vmul.f32 %v1741_v6, %v60_v26  ;;  %1629 = vmatprep.mubr.bf16.mxu1 %v307_v63  ;;  %v309_v11 = vpack.c.bf16 %v264_v1, %v263_v0  ;;  %v134_v14 = vmul.f32 %v1741_v6, %v63_v61  ;;  %v69_v26 = vld [vmem:[%s2472_s0 + $0x180] sm:$0xff] }
  0x25   :  { %1630 = vmatmul.mubr.bf16.vlgmr.msra.gmra.mxu1 %v308_v7  ;;  %v204_v22 = vadd.f32 %v1748_v9, %v133_v8  ;;  %v137_v25 = vmul.f32 %v1741_v6, %v66_v3  ;;  %v206_v36 = vadd.f32 %v1748_v9, %v135_v15  ;;  %v138_v37 = vmul.f32 %v1741_v6, %v67_v10  ;;  %v73_v3 = vld [vmem:[%s2472_s0 + $0x1a0] sm:$0xff]  ;;  %v78_v7 = vld [vmem:[%s2472_s0 + $0x1c8] sm:$0xff]  ;;  %v80_v15 = vld [vmem:[%s2472_s0 + $0x1d8] sm:$0xff] }
  0x26   :  { %1633 = vmatprep.mubr.bf16.mxu1 %v309_v11  ;;  %v205_v31 = vadd.f32 %v1748_v9, %v134_v14  ;;  %v207_v43 = vadd.f32 %v1748_v9, %v136_v24  ;;  %v139_v47 = vmul.f32 %v1741_v6, %v68_v17  ;;  %v247_v48 = vmax.f32 %v1921_v45, 0.0  ;;  %v74_v10 = vld [vmem:[%s2472_s0 + $0x1a8] sm:$0xff]  ;;  %v79_v14 = vld [vmem:[%s2472_s0 + $0x1d0] sm:$0xff] }
  0x27   :  { %v268_v42 = vmax.f32 %v204_v22, 0.0  ;;  %v208_v46 = vadd.f32 %v1748_v9, %v137_v25  ;;  %v248_v51 = vmax.f32 %v1929_v49, 0.0  ;;  %v2049_v52 = vadd.f32 %v1748_v9, %v1932_v50  ;;  %v81_v25 = vld [vmem:[%s2472_s0 + $0x1e0] sm:$0xff] }
  0x28   :  { %v117_v55 = vmul.f32 %v1741_v6, %v46_v29  ;;  %v269_v57 = vmax.f32 %v205_v31, 0.0  ;;  %v270_v59 = vmax.f32 %v206_v36, 0.0  ;;  %v271_v49 = vmax.f32 %v207_v43, 0.0 }
  0x29   :  { %v272_v61 = vmax.f32 %v208_v46, 0.0  ;;  %v2059_v50 = vadd.f32 %v1748_v9, %v138_v37  ;;  %v298_v62 = vpack.c.bf16 %v242_v39, %v241_v34  ;;  %v2076_v63 = vpack.c.bf16 %v246_v58, %v245_v54  ;;  %v77_v39 = vld [vmem:[%s2472_s0 + $0x1c0] sm:$0xff]  ;;  %v72_v54 = vld [vmem:[%s2472_s0 + $0x198] sm:$0xff]  ;;  %v83_v37 = vld [vmem:[%s2472_s0 + $0x1f0] sm:$0xff] }
  0x2a   :  { %1602 = vmatmul.mubr.bf16.gmra.mxu0 %v1881_v27  ;;  %v202_v27 = vadd.f32 %v1748_v9, %v131_v53  ;;  %v140_v53 = vmul.f32 %v1741_v6, %v69_v26  ;;  %v2079_v0 = vadd.f32 %v1748_v9, %v139_v47  ;;  %v249_v19 = vmax.f32 %v1959_v5, 0.0  ;;  %v82_v26 = vld [vmem:[%s2472_s0 + $0x1e8] sm:$0xff] }
  0x2b   :  { %1605 = vmatprep.mubr.bf16.mxu0 %v1883_v28  ;;  %v203_v28 = vadd.f32 %v1748_v9, %v132_v60  ;;  %v70_v60 = vld [vmem:[%s2472_s0 + $0x188] sm:$0xff]  ;;  %v2086_v20 = vadd.f32 %v1748_v9, %v116_v4  ;;  %v250_v41 = vmax.f32 %v2049_v52, 0.0  ;;  %v312_v1 = vpack.c.bf16 %v270_v59, %v269_v57 }
  0x2c   :  { %v266_v18 = vmax.f32 %v202_v27, 0.0  ;;  %v141_v23 = vmul.f32 %v1741_v6, %v70_v60  ;;  %v2090_v34 = vadd.f32 %v1748_v9, %v140_v53  ;;  %v313_v27 = vpack.c.bf16 %v272_v61, %v271_v49 }
  0x2d   :  { %v267_v30 = vmax.f32 %v203_v28, 0.0  ;;  %v273_v2 = vmax.f32 %v2059_v50, 0.0  ;;  %v147_v4 = vmul.f32 %v1741_v6, %v76_v16  ;;  %v274_v8 = vmax.f32 %v2079_v0, 0.0 }
  0x2e   :  { %v310_v56 = vpack.c.bf16 %v266_v18, %v265_v12  ;;  %v142_v28 = vmul.f32 %v1741_v6, %v71_v35  ;;  %v148_v12 = vmul.f32 %v1741_v6, %v77_v39  ;;  %v212_v17 = vadd.f32 %v1748_v9, %v141_v23 }
  0x2f   :  { %v311_v45 = vpack.c.bf16 %v268_v42, %v267_v30  ;;  %v275_v18 = vmax.f32 %v2090_v34, 0.0  ;;  %v143_v22 = vmul.f32 %v1741_v6, %v72_v54  ;;  %v218_v24 = vadd.f32 %v1748_v9, %v147_v4 }
  0x30   :  { %1634 = vmatmul.mubr.bf16.gmra.mxu1 %v310_v56  ;;  %v144_v29 = vmul.f32 %v1741_v6, %v73_v3  ;;  %v149_v31 = vmul.f32 %v1741_v6, %v78_v7  ;;  %v219_v36 = vadd.f32 %v1748_v9, %v148_v12  ;;  %v145_v42 = vmul.f32 %v1741_v6, %v74_v10 }
  0x31   :  { %1637 = vmatprep.mubr.bf16.mxu1 %v311_v45  ;;  %v282_v43 = vmax.f32 %v218_v24, 0.0  ;;  %v150_v46 = vmul.f32 %v1741_v6, %v79_v14  ;;  %v151_v47 = vmul.f32 %v1741_v6, %v80_v15  ;;  %v153_v56 = vmul.f32 %v1741_v6, %v82_v26 }
  0x32   :  { %1606 = vmatmul.mubr.bf16.gmra.mxu0 %v1892_v32  ;;  %v75_v32 = vld [vmem:[%s2472_s0 + $0x1b0] sm:$0xff]  ;;  %v283_v53 = vmax.f32 %v219_v36, 0.0  ;;  %v154_v45 = vmul.f32 %v1741_v6, %v83_v37  ;;  %v251_v54 = vmax.f32 %v2086_v20, 0.0  ;;  %v215_v12 = vadd.f32 %v1748_v9, %v144_v29 }
  0x33   :  { %1609 = vmatprep.mubr.bf16.mxu0 %v1894_v33  ;;  %v299_v33 = vpack.c.bf16 %v244_v44, %v243_v40  ;;  %v2098_v40 = vpack.c.bf16 %v248_v51, %v247_v48  ;;  %v2102_v44 = vadd.f32 %v1748_v9, %v117_v55  ;;  %v146_v58 = vmul.f32 %v1741_v6, %v75_v32  ;;  %v84_v48 = vld [vmem:[%s2472_s0 + $0x1f8] sm:$0xff] }
  0x34   :  { %v220_v51 = vadd.f32 %v1748_v9, %v149_v31  ;;  %v152_v55 = vmul.f32 %v1741_v6, %v81_v25  ;;  %v221_v59 = vadd.f32 %v1748_v9, %v150_v46  ;;  %v222_v60 = vadd.f32 %v1748_v9, %v151_v47 }
  0x35   :  { %v217_v11 = vadd.f32 %v1748_v9, %v146_v58  ;;  %v224_v50 = vadd.f32 %v1748_v9, %v153_v56  ;;  %v155_v32 = vmul.f32 %v1741_v6, %v84_v48  ;;  %v225_v16 = vadd.f32 %v1748_v9, %v154_v45 }
  0x36   :  { %v284_v49 = vmax.f32 %v220_v51, 0.0  ;;  %v223_v61 = vadd.f32 %v1748_v9, %v152_v55  ;;  %v286_v0 = vmax.f32 %v222_v60, 0.0  ;;  %v314_v58 = vpack.c.bf16 %v274_v8, %v273_v2 }
  0x37   :  { %v281_v30 = vmax.f32 %v217_v11, 0.0  ;;  %v288_v35 = vmax.f32 %v224_v50, 0.0  ;;  %v226_v39 = vadd.f32 %v1748_v9, %v155_v32  ;;  %v289_v3 = vmax.f32 %v225_v16, 0.0 }
  0x38   :  { %1638 = vmatmul.mubr.bf16.gmra.mxu1 %v312_v1  ;;  %v319_v23 = vpack.c.bf16 %v284_v49, %v283_v53  ;;  %v287_v34 = vmax.f32 %v223_v61, 0.0  ;;  %v213_v6 = vadd.f32 %v1748_v9, %v142_v28  ;;  %v252_v10 = vmax.f32 %v2102_v44, 0.0 }
  0x39   :  { %v318_v57 = vpack.c.bf16 %v282_v43, %v281_v30  ;;  %1641 = vmatprep.mubr.bf16.mxu1 %v313_v27  ;;  %v214_v27 = vadd.f32 %v1748_v9, %v143_v22  ;;  %v290_v7 = vmax.f32 %v226_v39, 0.0  ;;  %v216_v20 = vadd.f32 %v1748_v9, %v145_v42 }
  0x3a   :  { %1610 = vmatmul.mubr.bf16.gmra.mxu0 %v298_v62  ;;  %v276_v62 = vmax.f32 %v212_v17, 0.0  ;;  %v321_v4 = vpack.c.bf16 %v288_v35, %v287_v34  ;;  %v277_v8 = vmax.f32 %v213_v6, 0.0  ;;  %v303_v14 = vpack.c.bf16 %v252_v10, %v251_v54 }
  0x3b   :  { %1613 = vmatprep.mubr.bf16.mxu0 %v299_v33  ;;  %v285_v33 = vmax.f32 %v221_v59, 0.0  ;;  %v322_v2 = vpack.c.bf16 %v290_v7, %v289_v3  ;;  %v278_v28 = vmax.f32 %v214_v27, 0.0  ;;  %v279_v15 = vmax.f32 %v215_v12, 0.0 }
  0x3c   :  { %v315_v11 = vpack.c.bf16 %v276_v62, %v275_v18 }
  0x3d   :  { %v320_v1 = vpack.c.bf16 %v286_v0, %v285_v33  ;;  %v316_v44 = vpack.c.bf16 %v278_v28, %v277_v8 }
  0x40   :  { %1642 = vmatmul.mubr.bf16.gmra.mxu1 %v314_v58 }
  0x41   :  { %1645 = vmatprep.mubr.bf16.mxu1 %v315_v11 }
  0x42   :  { %1614 = vmatmul.mubr.bf16.gmra.mxu0 %v2076_v63  ;;  %v302_v63 = vpack.c.bf16 %v250_v41, %v249_v19 }
  0x43   :  { %1617 = vmatprep.mubr.bf16.mxu0 %v2098_v40  ;;  %v280_v40 = vmax.f32 %v216_v20, 0.0 }
  0x45   :  { %v317_v17 = vpack.c.bf16 %v280_v40, %v279_v15 }
  0x48   :  { %1646 = vmatmul.mubr.bf16.gmra.mxu1 %v316_v44 }
  0x49   :  { %1649 = vmatprep.mubr.bf16.mxu1 %v317_v17 }
  0x4a   :  { %1618 = vmatmul.mubr.bf16.gmra.mxu0 %v302_v63 }
  0x4b   :  { %1621 = vmatprep.mubr.bf16.mxu0 %v303_v14 }
  0x50   :  { %1650 = vmatmul.mubr.bf16.gmra.mxu1 %v318_v57 }
  0x51   :  { %1653 = vmatprep.mubr.bf16.mxu1 %v319_v23 }
  0x52   :  { %1622 = vmatmul.mubr.bf16.gmra.mxu0 %v1968_v13 }
  0x53   :  { %1625 = vmatprep.mubr.bf16.mxu0 %v1975_v21 }
  0x58   :  { %1654 = vmatmul.mubr.bf16.gmra.mxu1 %v320_v1 }
  0x59   :  { %1657 = vmatprep.mubr.bf16.mxu1 %v321_v4 }
  0x5a   :  { %1626 = vmatmul.mubr.bf16.gmra.mxu0 %v1988_v38 }
  0x60   :  { %1658 = vmatmul.mubr.bf16.gmra.mxu1 %v322_v2 }
  0xe2   :  { %v1599_v9 = vpop.f32.mrf.mxu0 }
  0xe3   :  { %v1068_v25 = vmul.f32 %v1599_v9, %v1599_v9 }
  0xe4   :  { %v421_v5 = vpop.f32.mrf.mxu0 }
  0xe5   :  { %v1066_v18 = vmul.f32 %v421_v5, %v421_v5  ;;  %v2183_v42 = vpop.f32.mrf.mxu1 }
  0xe6   :  { %v1600_v52 = vpop.f32.mrf.mxu0 }
  0xe7   :  { %v1358_v19 = vpack.c.bf16 %v1600_v52, %v1599_v9  ;;  %v1069_v30 = vmul.f32 %v1600_v52, %v1600_v52  ;;  %v2185_v53 = vpop.f32.mrf.mxu1 }
  0xe8   :  { %v424_v41 = vpop.f32.mrf.mxu0 }
  0xe9   :  { %1510 = vst [vmem:[%s2475_s4 + $0x8] sm:$0xff] %v1358_v19   ;;  %v1353_v13 = vpack.c.bf16 %v424_v41, %v421_v5  ;;  %v996_v22 = vadd.f32 %v424_v41, %v421_v5  ;;  %v1067_v21 = vmul.f32 %v424_v41, %v424_v41  ;;  %v2190_v45 = vpop.f32.mrf.mxu1 }
  0xea   :  { %v1603_v24 = vpop.f32.mrf.mxu0  ;;  %v1438_v32 = vpack.c.bf16 %v2190_v45, %v2183_v42 }
  0xeb   :  { %1354 = vst [vmem:[%s2475_s4] sm:$0xff] %v1353_v13   ;;  %v997_v38 = vadd.f32 %v1599_v9, %v996_v22  ;;  %v1130_v26 = vadd.f32 %v1067_v21, %v1066_v18  ;;  %v1072_v49 = vmul.f32 %v1603_v24, %v1603_v24  ;;  %v2197_v33 = vpop.f32.mrf.mxu1 }
  0xec   :  { %v437_v29 = vpop.f32.mrf.mxu0  ;;  %1526 = vst [vmem:[%s2475_s4 + $0x88] sm:$0xff] %v1438_v32   ;;  %v1433_v34 = vpack.c.bf16 %v2197_v33, %v2185_v53 }
  0xed   :  { %v1131_v31 = vadd.f32 %v1130_v26, %v1068_v25  ;;  %v998_v36 = vadd.f32 %v1600_v52, %v997_v38  ;;  %v1070_v46 = vmul.f32 %v437_v29, %v437_v29 }
  0xee   :  { %v1604_v37 = vpop.f32.mrf.mxu0  ;;  %1525 = vst [vmem:[%s2475_s4 + $0x80] sm:$0xff] %v1433_v34  }
  0xef   :  { %v999_v43 = vadd.f32 %v998_v36, %v437_v29  ;;  %v1132_v47 = vadd.f32 %v1131_v31, %v1069_v30  ;;  %v1368_v48 = vpack.c.bf16 %v1604_v37, %v1603_v24  ;;  %v1073_v0 = vmul.f32 %v1604_v37, %v1604_v37 }
  0xf0   :  { %v440_v51 = vpop.f32.mrf.mxu0  ;;  %v2204_v39 = vpop.f32.mrf.mxu1 }
  0xf1   :  { %v1133_v55 = vadd.f32 %v1132_v47, %v1070_v46  ;;  %1512 = vst [vmem:[%s2475_s4 + $0x18] sm:$0xff] %v1368_v48   ;;  %v1363_v56 = vpack.c.bf16 %v440_v51, %v437_v29  ;;  %v1000_v57 = vadd.f32 %v999_v43, %v440_v51  ;;  %v1071_v59 = vmul.f32 %v440_v51, %v440_v51 }
  0xf2   :  { %v1607_v60 = vpop.f32.mrf.mxu0  ;;  %v2209_v27 = vpop.f32.mrf.mxu1 }
  0xf3   :  { %1511 = vst [vmem:[%s2475_s4 + $0x10] sm:$0xff] %v1363_v56   ;;  %v1001_v61 = vadd.f32 %v1603_v24, %v1000_v57  ;;  %v1134_v50 = vadd.f32 %v1133_v55, %v1071_v59  ;;  %v1076_v2 = vmul.f32 %v1607_v60, %v1607_v60 }
  0xf4   :  { %v453_v62 = vpop.f32.mrf.mxu0  ;;  %v2214_v20 = vpop.f32.mrf.mxu1 }
  0xf5   :  { %v1135_v16 = vadd.f32 %v1134_v50, %v1072_v49  ;;  %v1002_v23 = vadd.f32 %v1604_v37, %v1001_v61  ;;  %v1074_v58 = vmul.f32 %v453_v62, %v453_v62  ;;  %v1448_v28 = vpack.c.bf16 %v2214_v20, %v2204_v39 }
  0xf6   :  { %v1608_v35 = vpop.f32.mrf.mxu0  ;;  %v2221_v15 = vpop.f32.mrf.mxu1 }
  0xf7   :  { %v1003_v54 = vadd.f32 %v1002_v23, %v453_v62  ;;  %v1136_v1 = vadd.f32 %v1135_v16, %v1073_v0  ;;  %v1378_v3 = vpack.c.bf16 %v1608_v35, %v1607_v60  ;;  %v1077_v40 = vmul.f32 %v1608_v35, %v1608_v35  ;;  %1528 = vst [vmem:[%s2475_s4 + $0x98] sm:$0xff] %v1448_v28  }
  0xf8   :  { %v456_v6 = vpop.f32.mrf.mxu0  ;;  %v1443_v9 = vpack.c.bf16 %v2221_v15, %v2209_v27  ;;  %v2228_v52 = vpop.f32.mrf.mxu1 }
  0xf9   :  { %v1137_v4 = vadd.f32 %v1136_v1, %v1074_v58  ;;  %1514 = vst [vmem:[%s2475_s4 + $0x28] sm:$0xff] %v1378_v3   ;;  %v1373_v7 = vpack.c.bf16 %v456_v6, %v453_v62  ;;  %v1004_v10 = vadd.f32 %v1003_v54, %v456_v6  ;;  %v1075_v11 = vmul.f32 %v456_v6, %v456_v6 }
  0xfa   :  { %v1611_v12 = vpop.f32.mrf.mxu0  ;;  %1527 = vst [vmem:[%s2475_s4 + $0x90] sm:$0xff] %v1443_v9   ;;  %v2233_v21 = vpop.f32.mrf.mxu1 }
  0xfb   :  { %1513 = vst [vmem:[%s2475_s4 + $0x20] sm:$0xff] %v1373_v7   ;;  %v1005_v63 = vadd.f32 %v1607_v60, %v1004_v10  ;;  %v1138_v8 = vadd.f32 %v1137_v4, %v1075_v11  ;;  %v1080_v31 = vmul.f32 %v1611_v12, %v1611_v12 }
  0xfc   :  { %v469_v14 = vpop.f32.mrf.mxu0  ;;  %v2238_v30 = vpop.f32.mrf.mxu1 }
  0xfd   :  { %v1139_v44 = vadd.f32 %v1138_v8, %v1076_v2  ;;  %v1006_v17 = vadd.f32 %v1608_v35, %v1005_v63  ;;  %v1078_v41 = vmul.f32 %v469_v14, %v469_v14  ;;  %v1458_v43 = vpack.c.bf16 %v2238_v30, %v2228_v52 }
  0xfe   :  { %v1612_v5 = vpop.f32.mrf.mxu0  ;;  %v2245_v47 = vpop.f32.mrf.mxu1 }
  0xff   :  { %v1007_v19 = vadd.f32 %v1006_v17, %v469_v14  ;;  %v1140_v18 = vadd.f32 %v1139_v44, %v1077_v40  ;;  %v1388_v13 = vpack.c.bf16 %v1612_v5, %v1611_v12  ;;  %v1081_v48 = vmul.f32 %v1612_v5, %v1612_v5  ;;  %1530 = vst [vmem:[%s2475_s4 + $0xa8] sm:$0xff] %v1458_v43  }
 0x100   :  { %v472_v22 = vpop.f32.mrf.mxu0  ;;  %v1453_v56 = vpack.c.bf16 %v2245_v47, %v2233_v21  ;;  %v2252_v59 = vpop.f32.mrf.mxu1 }
 0x101   :  { %v1141_v24 = vadd.f32 %v1140_v18, %v1078_v41  ;;  %1516 = vst [vmem:[%s2475_s4 + $0x38] sm:$0xff] %v1388_v13   ;;  %v1383_v25 = vpack.c.bf16 %v472_v22, %v469_v14  ;;  %v1008_v38 = vadd.f32 %v1007_v19, %v472_v22  ;;  %v1079_v26 = vmul.f32 %v472_v22, %v472_v22 }
 0x102   :  { %v1615_v29 = vpop.f32.mrf.mxu0  ;;  %1529 = vst [vmem:[%s2475_s4 + $0xa0] sm:$0xff] %v1453_v56   ;;  %v2257_v62 = vpop.f32.mrf.mxu1 }
 0x103   :  { %1515 = vst [vmem:[%s2475_s4 + $0x30] sm:$0xff] %v1383_v25   ;;  %v1009_v36 = vadd.f32 %v1611_v12, %v1008_v38  ;;  %v1142_v37 = vadd.f32 %v1141_v24, %v1079_v26  ;;  %v1084_v58 = vmul.f32 %v1615_v29, %v1615_v29 }
 0x104   :  { %v485_v46 = vpop.f32.mrf.mxu0  ;;  %v2262_v54 = vpop.f32.mrf.mxu1 }
 0x105   :  { %v1143_v51 = vadd.f32 %v1142_v37, %v1080_v31  ;;  %v1010_v55 = vadd.f32 %v1612_v5, %v1009_v36  ;;  %v1082_v49 = vmul.f32 %v485_v46, %v485_v46  ;;  %v1468_v6 = vpack.c.bf16 %v2262_v54, %v2252_v59 }
 0x106   :  { %v1616_v57 = vpop.f32.mrf.mxu0  ;;  %v2269_v7 = vpop.f32.mrf.mxu1 }
 0x107   :  { %v1011_v60 = vadd.f32 %v1010_v55, %v485_v46  ;;  %v1144_v61 = vadd.f32 %v1143_v51, %v1081_v48  ;;  %v1398_v50 = vpack.c.bf16 %v1616_v57, %v1615_v29  ;;  %v1085_v10 = vmul.f32 %v1616_v57, %v1616_v57  ;;  %1532 = vst [vmem:[%s2475_s4 + $0xb8] sm:$0xff] %v1468_v6  }
 0x108   :  { %v488_v32 = vpop.f32.mrf.mxu0  ;;  %v1463_v2 = vpack.c.bf16 %v2269_v7, %v2257_v62  ;;  %v2276_v8 = vpop.f32.mrf.mxu1 }
 0x109   :  { %v1145_v0 = vadd.f32 %v1144_v61, %v1082_v49  ;;  %1518 = vst [vmem:[%s2475_s4 + $0x48] sm:$0xff] %v1398_v50   ;;  %v1393_v16 = vpack.c.bf16 %v488_v32, %v485_v46  ;;  %v1012_v23 = vadd.f32 %v1011_v60, %v488_v32  ;;  %v1083_v34 = vmul.f32 %v488_v32, %v488_v32 }
 0x10a   :  { %v1619_v35 = vpop.f32.mrf.mxu0  ;;  %1531 = vst [vmem:[%s2475_s4 + $0xb0] sm:$0xff] %v1463_v2   ;;  %v2281_v9 = vpop.f32.mrf.mxu1 }
 0x10b   :  { %1517 = vst [vmem:[%s2475_s4 + $0x40] sm:$0xff] %v1393_v16   ;;  %v1013_v1 = vadd.f32 %v1615_v29, %v1012_v23  ;;  %v1146_v3 = vadd.f32 %v1145_v0, %v1083_v34  ;;  %v1088_v24 = vmul.f32 %v1619_v35, %v1619_v35 }
 0x10c   :  { %v501_v4 = vpop.f32.mrf.mxu0  ;;  %v2286_v22 = vpop.f32.mrf.mxu1 }
 0x10d   :  { %v1147_v11 = vadd.f32 %v1146_v3, %v1084_v58  ;;  %v1014_v12 = vadd.f32 %v1616_v57, %v1013_v1  ;;  %v1086_v14 = vmul.f32 %v501_v4, %v501_v4  ;;  %v1478_v26 = vpack.c.bf16 %v2286_v22, %v2276_v8 }
 0x10e   :  { %v1620_v63 = vpop.f32.mrf.mxu0  ;;  %v2293_v31 = vpop.f32.mrf.mxu1 }
 0x10f   :  { %v1015_v28 = vadd.f32 %v1014_v12, %v501_v4  ;;  %v1148_v40 = vadd.f32 %v1147_v11, %v1085_v10  ;;  %v1408_v44 = vpack.c.bf16 %v1620_v63, %v1619_v35  ;;  %v1089_v36 = vmul.f32 %v1620_v63, %v1620_v63  ;;  %1534 = vst [vmem:[%s2475_s4 + $0xc8] sm:$0xff] %v1478_v26  }
 0x110   :  { %v504_v17 = vpop.f32.mrf.mxu0  ;;  %v1473_v46 = vpack.c.bf16 %v2293_v31, %v2281_v9  ;;  %v2300_v51 = vpop.f32.mrf.mxu1 }
 0x111   :  { %v1149_v5 = vadd.f32 %v1148_v40, %v1086_v14  ;;  %1520 = vst [vmem:[%s2475_s4 + $0x58] sm:$0xff] %v1408_v44   ;;  %v1403_v19 = vpack.c.bf16 %v504_v17, %v501_v4  ;;  %v1016_v41 = vadd.f32 %v1015_v28, %v504_v17  ;;  %v1087_v18 = vmul.f32 %v504_v17, %v504_v17 }
 0x112   :  { %v1623_v13 = vpop.f32.mrf.mxu0  ;;  %1533 = vst [vmem:[%s2475_s4 + $0xc0] sm:$0xff] %v1473_v46   ;;  %v2305_v61 = vpop.f32.mrf.mxu1 }
 0x113   :  { %1519 = vst [vmem:[%s2475_s4 + $0x50] sm:$0xff] %v1403_v19   ;;  %v1017_v25 = vadd.f32 %v1619_v35, %v1016_v41  ;;  %v1150_v38 = vadd.f32 %v1149_v5, %v1087_v18  ;;  %v1092_v35 = vmul.f32 %v1623_v13, %v1623_v13 }
 0x114   :  { %v517_v29 = vpop.f32.mrf.mxu0  ;;  %v2310_v34 = vpop.f32.mrf.mxu1 }
 0x115   :  { %v1151_v37 = vadd.f32 %v1150_v38, %v1088_v24  ;;  %v1018_v43 = vadd.f32 %v1620_v63, %v1017_v25  ;;  %v1090_v56 = vmul.f32 %v517_v29, %v517_v29  ;;  %v1488_v3 = vpack.c.bf16 %v2310_v34, %v2300_v51 }
 0x116   :  { %v1624_v48 = vpop.f32.mrf.mxu0  ;;  %v2317_v4 = vpop.f32.mrf.mxu1 }
 0x117   :  { %v1019_v55 = vadd.f32 %v1018_v43, %v517_v29  ;;  %v1152_v57 = vadd.f32 %v1151_v37, %v1089_v36  ;;  %v1418_v60 = vpack.c.bf16 %v1624_v48, %v1623_v13  ;;  %v1093_v10 = vmul.f32 %v1624_v48, %v1624_v48  ;;  %1536 = vst [vmem:[%s2475_s4 + $0xd8] sm:$0xff] %v1488_v3  }
 0x118   :  { %v520_v49 = vpop.f32.mrf.mxu0  ;;  %v1483_v2 = vpack.c.bf16 %v2317_v4, %v2305_v61  ;;  %v2324_v28 = vpop.f32.mrf.mxu1 }
 0x119   :  { %v1153_v50 = vadd.f32 %v1152_v57, %v1090_v56  ;;  %1522 = vst [vmem:[%s2475_s4 + $0x68] sm:$0xff] %v1418_v60   ;;  %v1413_v32 = vpack.c.bf16 %v520_v49, %v517_v29  ;;  %v1020_v0 = vadd.f32 %v1019_v55, %v520_v49  ;;  %v1091_v16 = vmul.f32 %v520_v49, %v520_v49 }
 0x11a   :  { %v1627_v23 = vpop.f32.mrf.mxu0  ;;  %1535 = vst [vmem:[%s2475_s4 + $0xd0] sm:$0xff] %v1483_v2   ;;  %v2329_v19 = vpop.f32.mrf.mxu1  ;;  %v1098_v57 = vmul.f32 %v2185_v53, %v2185_v53 }
 0x11b   :  { %1521 = vst [vmem:[%s2475_s4 + $0x60] sm:$0xff] %v1413_v32   ;;  %v1021_v58 = vadd.f32 %v1623_v13, %v1020_v0  ;;  %v1154_v1 = vadd.f32 %v1153_v50, %v1091_v16  ;;  %v1096_v38 = vmul.f32 %v1627_v23, %v1627_v23  ;;  %v1099_v0 = vmul.f32 %v2197_v33, %v2197_v33 }
 0x11c   :  { %v533_v6 = vpop.f32.mrf.mxu0  ;;  %v2334_v25 = vpop.f32.mrf.mxu1 }
 0x11d   :  { %v1155_v11 = vadd.f32 %v1154_v1, %v1092_v35  ;;  %v1022_v12 = vadd.f32 %v1624_v48, %v1021_v58  ;;  %v1094_v40 = vmul.f32 %v533_v6, %v533_v6  ;;  %v1498_v36 = vpack.c.bf16 %v2334_v25, %v2324_v28 }
 0x11e   :  { %v1628_v63 = vpop.f32.mrf.mxu0  ;;  %v2341_v37 = vpop.f32.mrf.mxu1  ;;  %v1100_v35 = vmul.f32 %v2183_v42, %v2183_v42 }
 0x11f   :  { %v1023_v14 = vadd.f32 %v1022_v12, %v533_v6  ;;  %v1156_v44 = vadd.f32 %v1155_v11, %v1093_v10  ;;  %v1428_v17 = vpack.c.bf16 %v1628_v63, %v1627_v23  ;;  %v1097_v43 = vmul.f32 %v1628_v63, %v1628_v63  ;;  %1538 = vst [vmem:[%s2475_s4 + $0xe8] sm:$0xff] %v1498_v36  }
 0x120   :  { %v536_v5 = vpop.f32.mrf.mxu0  ;;  %v1493_v55 = vpack.c.bf16 %v2341_v37, %v2329_v19  ;;  %v2348_v56 = vpop.f32.mrf.mxu1  ;;  %v1102_v12 = vmul.f32 %v2209_v27, %v2209_v27 }
 0x121   :  { %v1157_v41 = vadd.f32 %v1156_v44, %v1094_v40  ;;  %1524 = vst [vmem:[%s2475_s4 + $0x78] sm:$0xff] %v1428_v17   ;;  %v1423_v18 = vpack.c.bf16 %v536_v5, %v533_v6  ;;  %v1024_v13 = vadd.f32 %v1023_v14, %v536_v5  ;;  %v1095_v24 = vmul.f32 %v536_v5, %v536_v5 }
 0x122   :  { %1537 = vst [vmem:[%s2475_s4 + $0xe0] sm:$0xff] %v1493_v55   ;;  %v2356_v50 = vpop.f32.mrf.mxu1  ;;  %v1101_v6 = vmul.f32 %v2190_v45, %v2190_v45  ;;  %v1103_v14 = vmul.f32 %v2221_v15, %v2221_v15  ;;  %v1104_v40 = vmul.f32 %v2204_v39, %v2204_v39 }
 0x123   :  { %1523 = vst [vmem:[%s2475_s4 + $0x70] sm:$0xff] %v1423_v18   ;;  %v1025_v26 = vadd.f32 %v1627_v23, %v1024_v13  ;;  %v1158_v29 = vadd.f32 %v1157_v41, %v1095_v24  ;;  %v1106_v13 = vmul.f32 %v2233_v21, %v2233_v21 }
 0x124   :  { %v2361_v23 = vpop.f32.mrf.mxu1 }
 0x125   :  { %v1026_v46 = vadd.f32 %v1628_v63, %v1025_v26  ;;  %v1159_v48 = vadd.f32 %v1158_v29, %v1096_v38  ;;  %v1508_v1 = vpack.c.bf16 %v2361_v23, %v2348_v56  ;;  %v1107_v26 = vmul.f32 %v2245_v47, %v2245_v47 }
 0x126   :  { %v2368_v3 = vpop.f32.mrf.mxu1 }
 0x127   :  { %v1160_v60 = vadd.f32 %v1159_v48, %v1097_v43  ;;  %v1027_v49 = vadd.f32 %v1026_v46, %v2185_v53  ;;  %1540 = vst [vmem:[%s2475_s4 + $0xf8] sm:$0xff] %v1508_v1   ;;  %v1503_v11 = vpack.c.bf16 %v2368_v3, %v2356_v50  ;;  %v1110_v48 = vmul.f32 %v2257_v62, %v2257_v62 }
 0x128   :  { %v1115_v1 = vmul.f32 %v2293_v31, %v2293_v31 }
 0x129   :  { %v1028_v32 = vadd.f32 %v1027_v49, %v2197_v33  ;;  %v1161_v16 = vadd.f32 %v1160_v60, %v1098_v57  ;;  %1539 = vst [vmem:[%s2475_s4 + $0xf0] sm:$0xff] %v1503_v11   ;;  %v1111_v60 = vmul.f32 %v2269_v7, %v2269_v7 }
 0x12b   :  { %v1029_v58 = vadd.f32 %v2183_v42, %v1028_v32  ;;  %v1162_v53 = vadd.f32 %v1161_v16, %v1099_v0 }
 0x12d   :  { %v1163_v10 = vadd.f32 %v1162_v53, %v1100_v35  ;;  %v1030_v33 = vadd.f32 %v2190_v45, %v1029_v58  ;;  %v1114_v35 = vmul.f32 %v2281_v9, %v2281_v9 }
 0x12f   :  { %v1031_v42 = vadd.f32 %v1030_v33, %v2209_v27  ;;  %v1164_v2 = vadd.f32 %v1163_v10, %v1101_v6  ;;  %v1105_v27 = vmul.f32 %v2214_v20, %v2214_v20 }
 0x131   :  { %v1165_v63 = vadd.f32 %v1164_v2, %v1102_v12  ;;  %v1032_v45 = vadd.f32 %v1031_v42, %v2221_v15  ;;  %v1118_v42 = vmul.f32 %v2305_v61, %v2305_v61 }
 0x133   :  { %v1033_v44 = vadd.f32 %v2204_v39, %v1032_v45  ;;  %v1166_v17 = vadd.f32 %v1165_v63, %v1103_v14  ;;  %v1108_v39 = vmul.f32 %v2228_v52, %v2228_v52  ;;  %v1119_v63 = vmul.f32 %v2317_v4, %v2317_v4 }
 0x135   :  { %v1167_v5 = vadd.f32 %v1166_v17, %v1104_v40  ;;  %v1034_v41 = vadd.f32 %v2214_v20, %v1033_v44  ;;  %v1109_v20 = vmul.f32 %v2238_v30, %v2238_v30  ;;  %v1122_v17 = vmul.f32 %v2329_v19, %v2329_v19 }
 0x137   :  { %v1035_v18 = vadd.f32 %v1034_v41, %v2233_v21  ;;  %v1168_v24 = vadd.f32 %v1167_v5, %v1105_v27  ;;  %v1123_v41 = vmul.f32 %v2341_v37, %v2341_v37 }
 0x139   :  { %v1169_v38 = vadd.f32 %v1168_v24, %v1106_v13  ;;  %v1036_v15 = vadd.f32 %v1035_v18, %v2245_v47 }
 0x13b   :  { %v1037_v29 = vadd.f32 %v2228_v52, %v1036_v15  ;;  %v1170_v36 = vadd.f32 %v1169_v38, %v1107_v26  ;;  %v1112_v52 = vmul.f32 %v2252_v59, %v2252_v59  ;;  %v1126_v15 = vmul.f32 %v2356_v50, %v2356_v50 }
 0x13d   :  { %v1171_v43 = vadd.f32 %v1170_v36, %v1108_v39  ;;  %v1038_v46 = vadd.f32 %v2238_v30, %v1037_v29  ;;  %v1113_v30 = vmul.f32 %v2262_v54, %v2262_v54  ;;  %v1127_v29 = vmul.f32 %v2368_v3, %v2368_v3 }
 0x13f   :  { %v1039_v21 = vadd.f32 %v1038_v46, %v2257_v62  ;;  %v1172_v55 = vadd.f32 %v1171_v43, %v1109_v20 }
 0x141   :  { %v1173_v57 = vadd.f32 %v1172_v55, %v1110_v48  ;;  %v1040_v47 = vadd.f32 %v1039_v21, %v2269_v7 }
 0x143   :  { %v1041_v49 = vadd.f32 %v2252_v59, %v1040_v47  ;;  %v1174_v32 = vadd.f32 %v1173_v57, %v1111_v60  ;;  %v1116_v59 = vmul.f32 %v2276_v8, %v2276_v8 }
 0x145   :  { %v1175_v0 = vadd.f32 %v1174_v32, %v1112_v52  ;;  %v1042_v16 = vadd.f32 %v2262_v54, %v1041_v49  ;;  %v1117_v54 = vmul.f32 %v2286_v22, %v2286_v22 }
 0x147   :  { %v1043_v62 = vadd.f32 %v1042_v16, %v2281_v9  ;;  %v1176_v58 = vadd.f32 %v1175_v0, %v1113_v30 }
 0x149   :  { %v1177_v53 = vadd.f32 %v1176_v58, %v1114_v35  ;;  %v1044_v7 = vadd.f32 %v1043_v62, %v2293_v31 }
 0x14b   :  { %v1045_v6 = vadd.f32 %v2276_v8, %v1044_v7  ;;  %v1178_v10 = vadd.f32 %v1177_v53, %v1115_v1  ;;  %v1120_v8 = vmul.f32 %v2300_v51, %v2300_v51 }
 0x14d   :  { %v1179_v33 = vadd.f32 %v1178_v10, %v1116_v59  ;;  %v1046_v11 = vadd.f32 %v2286_v22, %v1045_v6  ;;  %v1121_v22 = vmul.f32 %v2310_v34, %v2310_v34 }
 0x14f   :  { %v1047_v9 = vadd.f32 %v1046_v11, %v2305_v61  ;;  %v1180_v12 = vadd.f32 %v1179_v33, %v1117_v54 }
 0x151   :  { %v1181_v2 = vadd.f32 %v1180_v12, %v1118_v42  ;;  %v1048_v31 = vadd.f32 %v1047_v9, %v2317_v4 }
 0x153   :  { %v1049_v45 = vadd.f32 %v2300_v51, %v1048_v31  ;;  %v1182_v14 = vadd.f32 %v1181_v2, %v1119_v63  ;;  %v1124_v51 = vmul.f32 %v2324_v28, %v2324_v28 }
 0x155   :  { %v1183_v40 = vadd.f32 %v1182_v14, %v1120_v8  ;;  %v1050_v44 = vadd.f32 %v2310_v34, %v1049_v45  ;;  %v1125_v34 = vmul.f32 %v2334_v25, %v2334_v25 }
 0x157   :  { %v1051_v61 = vadd.f32 %v1050_v44, %v2329_v19  ;;  %v1184_v27 = vadd.f32 %v1183_v40, %v1121_v22 }
 0x159   :  { %v1185_v5 = vadd.f32 %v1184_v27, %v1122_v17  ;;  %v1052_v4 = vadd.f32 %v1051_v61, %v2341_v37 }
 0x15b   :  { %v1053_v18 = vadd.f32 %v2324_v28, %v1052_v4  ;;  %v1186_v13 = vadd.f32 %v1185_v5, %v1123_v41  ;;  %v1128_v28 = vmul.f32 %v2348_v56, %v2348_v56 }
 0x15d   :  { %v1187_v24 = vadd.f32 %v1186_v13, %v1124_v51  ;;  %v1054_v38 = vadd.f32 %v2334_v25, %v1053_v18  ;;  %v1129_v25 = vmul.f32 %v2361_v23, %v2361_v23 }
 0x15f   :  { %v1055_v19 = vadd.f32 %v1054_v38, %v2356_v50  ;;  %v1188_v26 = vadd.f32 %v1187_v24, %v1125_v34 }
 0x161   :  { %v1189_v39 = vadd.f32 %v1188_v26, %v1126_v15  ;;  %v1056_v37 = vadd.f32 %v1055_v19, %v2368_v3 }
 0x163   :  { %v1057_v36 = vadd.f32 %v2348_v56, %v1056_v37  ;;  %v1190_v20 = vadd.f32 %v1189_v39, %v1127_v29 }
 0x165   :  { %v1058_v43 = vadd.f32 %v2361_v23, %v1057_v36  ;;  %v1191_v46 = vadd.f32 %v1190_v20, %v1128_v28 }
 0x167   :  { %v1059_v50 = vrot.slane %v1058_v43, 4  ;;  %v1192_v21 = vadd.f32 %v1191_v46, %v1129_v25 }
 0x169   :  { %v1060_v48 = vadd.f32 %v1059_v50, %v1058_v43  ;;  %v1193_v55 = vrot.slane %v1192_v21, 4 }
 0x16b   :  { %v1061_v57 = vrot.slane %v1060_v48, 2  ;;  %v1194_v47 = vadd.f32 %v1193_v55, %v1192_v21 }
 0x16d   :  { %v1062_v60 = vadd.f32 %v1061_v57, %v1060_v48  ;;  %v1195_v3 = vrot.slane %v1194_v47, 2 }
 0x16f   :  { %v1063_v52 = vrot.slane %v1062_v60, 1  ;;  %v1196_v49 = vadd.f32 %v1195_v3, %v1194_v47 }
 0x171   :  { %v1064_v32 = vadd.f32 %v1063_v52, %v1062_v60  ;;  %v1197_v30 = vrot.slane %v1196_v49, 1 }
 0x173   :  { %1065 = vst [vmem:[%s2476_s5] sm:$0x1] %v1064_v32  ;;  %v1198_v56 = vadd.f32 %v1197_v30, %v1196_v49 }
 0x175   :  { %1199 = vst [vmem:[%s2477_s6] sm:$0x1] %v1198_v56 }

// kernel: bottleneck_forward.5
= control target key start
LH: loop header
LB: loop body
LE: loop exit
PB: predicated region body
PF: predicated region fallthrough
CT: control target
= control target key end

     0   :  { %s2522_s5 = inlined_call_operand.vmem [shape: bf16[128,128], index: 5, kind: input, shape index: {}]   ;;  %s2523_s3 = inlined_call_operand.vmem [shape: bf16[128,128], index: 3, kind: input, shape index: {}]   ;;  %s2524_s4 = inlined_call_operand.vmem [shape: bf16[512,128], index: 4, kind: input, shape index: {}]   ;;  %s2525_s0 = inlined_call_operand.vmem [shape: bf16[512,128], index: 0, kind: input, shape index: {}]   ;;  %s2526_s1 = inlined_call_operand.vmem [shape: f32[1,128], index: 1, kind: input, shape index: {}]   ;;  %s2527_s2 = inlined_call_operand.vmem [shape: f32[1,128], index: 2, kind: input, shape index: {}]   ;;  %s2528_s6 = inlined_call_operand.vmem [shape: f32[512,128], index: 6, kind: output, shape index: {}]  }
   0x1   :  { %v1869_v0 = vld [vmem:[%s2522_s5 + $0x38] sm:$0xff]   ;;  %v1871_v2 = vld [vmem:[%s2522_s5 + $0x30] sm:$0xff]   ;;  %v1873_v4 = vld [vmem:[%s2522_s5 + $0x28] sm:$0xff]  }
   0x2   :  { %v1870_v1 = vld [vmem:[%s2523_s3 + $0x38] sm:$0xff]   ;;  %1709 = vmatprep.subr.bf16.mxu0 %v1869_v0  ;;  %v1872_v3 = vld [vmem:[%s2523_s3 + $0x30] sm:$0xff]   ;;  %v1874_v5 = vld [vmem:[%s2523_s3 + $0x28] sm:$0xff]  }
   0x3   :  { %1789 = vmatprep.subr.bf16.mxu1 %v1870_v1  ;;  %1710 = vmatpush3.bf16.msra.mxu0 %v1869_v0  ;;  %v1875_v6 = vld [vmem:[%s2522_s5 + $0x20] sm:$0xff]   ;;  %v1877_v8 = vld [vmem:[%s2522_s5 + $0x18] sm:$0xff]   ;;  %v1879_v10 = vld [vmem:[%s2522_s5 + $0x10] sm:$0xff]  }
   0x4   :  { %1790 = vmatpush3.bf16.msra.mxu1 %v1870_v1  ;;  %1711 = vmatprep.subr.bf16.mxu0 %v1871_v2  ;;  %v1876_v7 = vld [vmem:[%s2523_s3 + $0x20] sm:$0xff]   ;;  %v1878_v9 = vld [vmem:[%s2523_s3 + $0x18] sm:$0xff]   ;;  %v1880_v12 = vld [vmem:[%s2523_s3 + $0x10] sm:$0xff]  }
   0x5   :  { %1791 = vmatprep.subr.bf16.mxu1 %v1872_v3  ;;  %v1885_v11 = vld [vmem:[%s2524_s4] sm:$0xff]   ;;  %v1598_v18 = vld [vmem:[%s2525_s0 + $0x8] sm:$0xff]   ;;  %v1599_v24 = vld [vmem:[%s2525_s0 + $0x10] sm:$0xff]  }
   0x6   :  { %v1471_v13 = vld [vmem:[%s2525_s0] sm:$0xff]   ;;  %1725 = vmatprep.mubr.bf16.mxu0 %v1885_v11  ;;  %v1881_v19 = vld [vmem:[%s2522_s5 + $0x8] sm:$0xff]   ;;  %v1476_v22 = vunpack.c.l.bf16 %v1598_v18  ;;  %v1477_v23 = vunpack.c.h.bf16 %v1598_v18  ;;  %v1480_v26 = vunpack.c.l.bf16 %v1599_v24  ;;  %v1481_v27 = vunpack.c.h.bf16 %v1599_v24  ;;  %v1600_v28 = vld [vmem:[%s2525_s0 + $0x18] sm:$0xff]  }
   0x7   :  { %1712 = vmatpush3.bf16.msra.mxu0 %v1871_v2  ;;  %v1997_v14 = vld [vmem:[%s2526_s1] ss:$0 sm:$0xff]  ;;  %v1472_v15 = vunpack.c.l.bf16 %v1471_v13  ;;  %v1473_v16 = vunpack.c.h.bf16 %v1471_v13  ;;  %v1882_v25 = vld [vmem:[%s2523_s3 + $0x8] sm:$0xff]   ;;  %v1484_v35 = vunpack.c.l.bf16 %v1600_v28  ;;  %v1485_v36 = vunpack.c.h.bf16 %v1600_v28  ;;  %v1603_v57 = vld [vmem:[%s2525_s0 + $0x30] sm:$0xff]  }
   0x8   :  { %1792 = vmatpush3.bf16.msra.mxu1 %v1872_v3  ;;  %1713 = vmatprep.subr.bf16.mxu0 %v1873_v4  ;;  %v2002_v17 = vld [vmem:[%s2527_s2] ss:$0 sm:$0xff]  ;;  %v161_v31 = vmul.f32 %v1476_v22, %v1997_v14  ;;  %v162_v32 = vmul.f32 %v1477_v23, %v1997_v14  ;;  %v163_v33 = vmul.f32 %v1480_v26, %v1997_v14  ;;  %v1602_v56 = vld [vmem:[%s2525_s0 + $0x28] sm:$0xff]   ;;  %v1887_v63 = vld [vmem:[%s2524_s4 + $0x10] sm:$0xff]   ;;  %v1496_v2 = vunpack.c.l.bf16 %v1603_v57 }
   0x9   :  { %1793 = vmatprep.subr.bf16.mxu1 %v1874_v5  ;;  %v159_v20 = vmul.f32 %v1472_v15, %v1997_v14  ;;  %v160_v21 = vmul.f32 %v1473_v16, %v1997_v14  ;;  %v164_v34 = vmul.f32 %v1481_v27, %v1997_v14  ;;  %v1601_v37 = vld [vmem:[%s2525_s0 + $0x20] sm:$0xff]   ;;  %v165_v47 = vmul.f32 %v1484_v35, %v1997_v14  ;;  %v1886_v58 = vld [vmem:[%s2524_s4 + $0x8] sm:$0xff]  }
   0xa   :  { %v1883_v38 = vld [vmem:[%s2522_s5] sm:$0xff]   ;;  %v232_v41 = vadd.f32 %v2002_v17, %v161_v31  ;;  %v233_v42 = vadd.f32 %v2002_v17, %v162_v32  ;;  %v234_v44 = vadd.f32 %v2002_v17, %v163_v33  ;;  %v166_v48 = vmul.f32 %v1485_v36, %v1997_v14  ;;  %v1606_v35 = vld [vmem:[%s2525_s0 + $0x48] sm:$0xff]   ;;  %v1607_v36 = vld [vmem:[%s2525_s0 + $0x50] sm:$0xff]  }
   0xb   :  { %1714 = vmatpush3.bf16.msra.mxu0 %v1873_v4  ;;  %v230_v29 = vadd.f32 %v2002_v17, %v159_v20  ;;  %v231_v30 = vadd.f32 %v2002_v17, %v160_v21  ;;  %v1884_v43 = vld [vmem:[%s2523_s3] sm:$0xff]   ;;  %v235_v45 = vadd.f32 %v2002_v17, %v164_v34  ;;  %v1488_v49 = vunpack.c.l.bf16 %v1601_v37 }
   0xc   :  { %1794 = vmatpush3.bf16.msra.mxu1 %v1874_v5  ;;  %1715 = vmatprep.subr.bf16.mxu0 %v1875_v6  ;;  %v296_v50 = vmax.f32 %v232_v41, 0.0  ;;  %v297_v51 = vmax.f32 %v233_v42, 0.0  ;;  %v298_v52 = vmax.f32 %v234_v44, 0.0  ;;  %v1489_v54 = vunpack.c.h.bf16 %v1601_v37  ;;  %v1605_v18 = vld [vmem:[%s2525_s0 + $0x40] sm:$0xff]   ;;  %v1890_v41 = vld [vmem:[%s2524_s4 + $0x28] sm:$0xff]  }
   0xd   :  { %1795 = vmatprep.subr.bf16.mxu1 %v1876_v7  ;;  %v294_v39 = vmax.f32 %v230_v29, 0.0  ;;  %v295_v40 = vmax.f32 %v231_v30, 0.0  ;;  %v299_v53 = vmax.f32 %v235_v45, 0.0  ;;  %v167_v55 = vmul.f32 %v1488_v49, %v1997_v14  ;;  %v1889_v22 = vld [vmem:[%s2524_s4 + $0x20] sm:$0xff]  }
   0xe   :  { %v236_v59 = vadd.f32 %v2002_v17, %v165_v47  ;;  %v237_v60 = vadd.f32 %v2002_v17, %v166_v48  ;;  %v168_v61 = vmul.f32 %v1489_v54, %v1997_v14  ;;  %v359_v62 = vpack.c.bf16 %v297_v51, %v296_v50 }
   0xf   :  { %1716 = vmatpush3.bf16.msra.mxu0 %v1875_v6  ;;  %v358_v46 = vpack.c.bf16 %v295_v40, %v294_v39  ;;  %v1492_v0 = vunpack.c.l.bf16 %v1602_v56  ;;  %v1493_v1 = vunpack.c.h.bf16 %v1602_v56  ;;  %v360_v3 = vpack.c.bf16 %v299_v53, %v298_v52 }
  0x10   :  { %1796 = vmatpush3.bf16.msra.mxu1 %v1876_v7  ;;  %1717 = vmatprep.subr.bf16.mxu0 %v1877_v8  ;;  %v238_v4 = vadd.f32 %v2002_v17, %v167_v55  ;;  %v239_v5 = vadd.f32 %v2002_v17, %v168_v61  ;;  %v1497_v6 = vunpack.c.h.bf16 %v1603_v57  ;;  %v300_v7 = vmax.f32 %v236_v59, 0.0  ;;  %v1608_v55 = vld [vmem:[%s2525_s0 + $0x58] sm:$0xff]  }
  0x11   :  { %1797 = vmatprep.subr.bf16.mxu1 %v1878_v9  ;;  %1805 = vmatprep.mubr.bf16.mxu1 %v358_v46  ;;  %v171_v11 = vmul.f32 %v1496_v2, %v1997_v14  ;;  %v1504_v29 = vunpack.c.l.bf16 %v1605_v18  ;;  %v1505_v30 = vunpack.c.h.bf16 %v1605_v18  ;;  %v1509_v44 = vunpack.c.h.bf16 %v1606_v35  ;;  %v1891_v46 = vld [vmem:[%s2524_s4 + $0x30] sm:$0xff]  }
  0x12   :  { %v302_v13 = vmax.f32 %v238_v4, 0.0  ;;  %v303_v15 = vmax.f32 %v239_v5, 0.0  ;;  %v172_v16 = vmul.f32 %v1497_v6, %v1997_v14  ;;  %v1512_v48 = vunpack.c.l.bf16 %v1607_v36  ;;  %v1893_v4 = vld [vmem:[%s2524_s4 + $0x40] sm:$0xff]  }
  0x13   :  { %1718 = vmatpush3.bf16.msra.mxu0 %v1877_v8  ;;  %v301_v8 = vmax.f32 %v237_v60, 0.0  ;;  %v175_v39 = vmul.f32 %v1504_v29, %v1997_v14  ;;  %v176_v40 = vmul.f32 %v1505_v30, %v1997_v14  ;;  %v1513_v49 = vunpack.c.h.bf16 %v1607_v36 }
  0x14   :  { %1798 = vmatpush3.bf16.msra.mxu1 %v1878_v9  ;;  %1719 = vmatprep.subr.bf16.mxu0 %v1879_v10  ;;  %v169_v9 = vmul.f32 %v1492_v0, %v1997_v14  ;;  %v362_v27 = vpack.c.bf16 %v303_v15, %v302_v13  ;;  %v243_v28 = vadd.f32 %v2002_v17, %v172_v16  ;;  %v1516_v2 = vunpack.c.l.bf16 %v1608_v55 }
  0x15   :  { %1799 = vmatprep.subr.bf16.mxu1 %v1880_v12  ;;  %v361_v20 = vpack.c.bf16 %v301_v8, %v300_v7  ;;  %v246_v51 = vadd.f32 %v2002_v17, %v175_v39  ;;  %v247_v52 = vadd.f32 %v2002_v17, %v176_v40  ;;  %v178_v54 = vmul.f32 %v1509_v44, %v1997_v14  ;;  %v1612_v39 = vld [vmem:[%s2525_s0 + $0x78] sm:$0xff]   ;;  %v1613_v44 = vld [vmem:[%s2525_s0 + $0x80] sm:$0xff]  }
  0x16   :  { %v240_v23 = vadd.f32 %v2002_v17, %v169_v9  ;;  %v180_v59 = vmul.f32 %v1513_v49, %v1997_v14  ;;  %v1517_v7 = vunpack.c.h.bf16 %v1608_v55  ;;  %v181_v13 = vmul.f32 %v1516_v2, %v1997_v14  ;;  %v1897_v49 = vld [vmem:[%s2524_s4 + $0x60] sm:$0xff]   ;;  %v1615_v2 = vld [vmem:[%s2525_s0 + $0x90] sm:$0xff]  }
  0x17   :  { %1720 = vmatpush3.bf16.msra.mxu0 %v1879_v10  ;;  %v170_v10 = vmul.f32 %v1493_v1, %v1997_v14  ;;  %v310_v60 = vmax.f32 %v246_v51, 0.0  ;;  %v311_v61 = vmax.f32 %v247_v52, 0.0  ;;  %v249_v1 = vadd.f32 %v2002_v17, %v178_v54 }
  0x18   :  { %1800 = vmatpush3.bf16.msra.mxu1 %v1880_v12  ;;  %1721 = vmatprep.subr.bf16.mxu0 %v1881_v19  ;;  %v1604_v12 = vld [vmem:[%s2525_s0 + $0x38] sm:$0xff]   ;;  %v304_v32 = vmax.f32 %v240_v23, 0.0  ;;  %v251_v6 = vadd.f32 %v2002_v17, %v180_v59  ;;  %v182_v18 = vmul.f32 %v1517_v7, %v1997_v14  ;;  %v1894_v23 = vld [vmem:[%s2524_s4 + $0x48] sm:$0xff]   ;;  %v1536_v52 = vunpack.c.l.bf16 %v1613_v44 }
  0x19   :  { %1801 = vmatprep.subr.bf16.mxu1 %v1882_v25  ;;  %v1500_v21 = vunpack.c.l.bf16 %v1604_v12  ;;  %v241_v24 = vadd.f32 %v2002_v17, %v170_v10  ;;  %v1501_v26 = vunpack.c.h.bf16 %v1604_v12  ;;  %v366_v8 = vpack.c.bf16 %v311_v61, %v310_v60 }
  0x1a   :  { %v313_v12 = vmax.f32 %v249_v1, 0.0  ;;  %v315_v16 = vmax.f32 %v251_v6, 0.0  ;;  %v191_v61 = vmul.f32 %v1536_v52, %v1997_v14 }
  0x1b   :  { %1722 = vmatpush3.bf16.msra.mxu0 %v1881_v19  ;;  %v1888_v19 = vld [vmem:[%s2524_s4 + $0x18] sm:$0xff]   ;;  %v173_v31 = vmul.f32 %v1500_v21, %v1997_v14  ;;  %v305_v33 = vmax.f32 %v241_v24, 0.0  ;;  %v174_v34 = vmul.f32 %v1501_v26, %v1997_v14  ;;  %v1610_v21 = vld [vmem:[%s2525_s0 + $0x68] sm:$0xff]   ;;  %v1895_v26 = vld [vmem:[%s2524_s4 + $0x50] sm:$0xff]  }
  0x1c   :  { %1802 = vmatpush3.bf16.msra.mxu1 %v1882_v25  ;;  %1723 = vmatprep.subr.bf16.mxu0 %v1883_v38  ;;  %v242_v25 = vadd.f32 %v2002_v17, %v171_v11  ;;  %v1524_v29 = vunpack.c.l.bf16 %v1610_v21  ;;  %v1525_v30 = vunpack.c.h.bf16 %v1610_v21 }
  0x1d   :  { %1803 = vmatprep.subr.bf16.mxu1 %v1884_v43  ;;  %v244_v42 = vadd.f32 %v2002_v17, %v173_v31  ;;  %v363_v45 = vpack.c.bf16 %v305_v33, %v304_v32  ;;  %v245_v47 = vadd.f32 %v2002_v17, %v174_v34 }
  0x1e   :  { %v306_v37 = vmax.f32 %v242_v25, 0.0  ;;  %v252_v25 = vadd.f32 %v2002_v17, %v181_v13  ;;  %v1544_v13 = vunpack.c.l.bf16 %v1615_v2 }
  0x1f   :  { %1724 = vmatpush3.bf16.msra.mxu0 %v1883_v38  ;;  %v307_v38 = vmax.f32 %v243_v28, 0.0  ;;  %v308_v56 = vmax.f32 %v244_v42, 0.0  ;;  %v309_v57 = vmax.f32 %v245_v47, 0.0  ;;  %v253_v28 = vadd.f32 %v2002_v17, %v182_v18 }
  0x20   :  { %1804 = vmatpush3.bf16.msra.mxu1 %v1884_v43  ;;  %v1508_v43 = vunpack.c.l.bf16 %v1606_v35  ;;  %v316_v35 = vmax.f32 %v252_v25, 0.0  ;;  %v1533_v47 = vunpack.c.h.bf16 %v1612_v39  ;;  %v1616_v25 = vld [vmem:[%s2525_s0 + $0x98] sm:$0xff]  }
  0x21   :  { %v364_v50 = vpack.c.bf16 %v307_v38, %v306_v37  ;;  %v317_v36 = vmax.f32 %v253_v28, 0.0  ;;  %v185_v37 = vmul.f32 %v1524_v29, %v1997_v14  ;;  %v186_v38 = vmul.f32 %v1525_v30, %v1997_v14  ;;  %v1901_v30 = vld [vmem:[%s2524_s4 + $0x80] sm:$0xff]  }
  0x22   :  { %1726 = vmatmul.mubr.bf16.vlgmr.msra.gmra.mxu0 %v1886_v58  ;;  %v177_v53 = vmul.f32 %v1508_v43, %v1997_v14  ;;  %v179_v58 = vmul.f32 %v1512_v48, %v1997_v14 }
  0x23   :  { %1806 = vmatmul.mubr.bf16.vlgmr.msra.gmra.mxu1 %v359_v62  ;;  %1729 = vmatprep.mubr.bf16.mxu0 %v1887_v63  ;;  %v1609_v62 = vld [vmem:[%s2525_s0 + $0x60] sm:$0xff]   ;;  %v1892_v63 = vld [vmem:[%s2524_s4 + $0x38] sm:$0xff]   ;;  %v369_v48 = vpack.c.bf16 %v317_v36, %v316_v35  ;;  %v257_v51 = vadd.f32 %v2002_v17, %v186_v38 }
  0x24   :  { %1809 = vmatprep.mubr.bf16.mxu1 %v360_v3  ;;  %v248_v0 = vadd.f32 %v2002_v17, %v177_v53  ;;  %v365_v3 = vpack.c.bf16 %v309_v57, %v308_v56  ;;  %v250_v5 = vadd.f32 %v2002_v17, %v179_v58  ;;  %v1520_v9 = vunpack.c.l.bf16 %v1609_v62 }
  0x25   :  { %v1521_v10 = vunpack.c.h.bf16 %v1609_v62  ;;  %v1537_v56 = vunpack.c.h.bf16 %v1613_v44  ;;  %v190_v58 = vmul.f32 %v1533_v47, %v1997_v14  ;;  %v321_v60 = vmax.f32 %v257_v51, 0.0  ;;  %v1614_v62 = vld [vmem:[%s2525_s0 + $0x88] sm:$0xff]  }
  0x26   :  { %v312_v11 = vmax.f32 %v248_v0, 0.0  ;;  %v314_v15 = vmax.f32 %v250_v5, 0.0  ;;  %v1540_v6 = vunpack.c.l.bf16 %v1614_v62  ;;  %v1618_v44 = vld [vmem:[%s2525_s0 + $0xa8] sm:$0xff]  }
  0x27   :  { %v192_v1 = vmul.f32 %v1537_v56, %v1997_v14  ;;  %v261_v5 = vadd.f32 %v2002_v17, %v190_v58  ;;  %v1557_v51 = vunpack.c.h.bf16 %v1618_v44 }
  0x28   :  { %v367_v24 = vpack.c.bf16 %v313_v12, %v312_v11 }
  0x29   :  { %v263_v12 = vadd.f32 %v2002_v17, %v192_v1  ;;  %v325_v18 = vmax.f32 %v261_v5, 0.0  ;;  %v1620_v1 = vld [vmem:[%s2525_s0 + $0xb8] sm:$0xff]  }
  0x2a   :  { %1730 = vmatmul.mubr.bf16.gmra.mxu0 %v1888_v19  ;;  %v183_v19 = vmul.f32 %v1520_v9, %v1997_v14  ;;  %v262_v9 = vadd.f32 %v2002_v17, %v191_v61 }
  0x2b   :  { %1810 = vmatmul.mubr.bf16.gmra.mxu1 %v361_v20  ;;  %1733 = vmatprep.mubr.bf16.mxu0 %v1889_v22  ;;  %v184_v20 = vmul.f32 %v1521_v10, %v1997_v14  ;;  %v1611_v22 = vld [vmem:[%s2525_s0 + $0x70] sm:$0xff]   ;;  %v1541_v10 = vunpack.c.h.bf16 %v1614_v62  ;;  %v202_v62 = vmul.f32 %v1557_v51, %v1997_v14 }
  0x2c   :  { %1813 = vmatprep.mubr.bf16.mxu1 %v362_v27  ;;  %v368_v27 = vpack.c.bf16 %v315_v16, %v314_v15  ;;  %v254_v31 = vadd.f32 %v2002_v17, %v183_v19  ;;  %v1528_v33 = vunpack.c.l.bf16 %v1611_v22  ;;  %v1529_v34 = vunpack.c.h.bf16 %v1611_v22 }
  0x2d   :  { %v255_v32 = vadd.f32 %v2002_v17, %v184_v20  ;;  %v1545_v15 = vunpack.c.h.bf16 %v1615_v2  ;;  %v193_v19 = vmul.f32 %v1540_v6, %v1997_v14  ;;  %v194_v20 = vmul.f32 %v1541_v10, %v1997_v14  ;;  %v1621_v6 = vld [vmem:[%s2525_s0 + $0xc0] sm:$0xff]  }
  0x2e   :  { %v318_v40 = vmax.f32 %v254_v31, 0.0  ;;  %v187_v42 = vmul.f32 %v1528_v33, %v1997_v14  ;;  %v188_v43 = vmul.f32 %v1529_v34, %v1997_v14  ;;  %v326_v21 = vmax.f32 %v262_v9, 0.0 }
  0x2f   :  { %v327_v22 = vmax.f32 %v263_v12, 0.0  ;;  %v264_v29 = vadd.f32 %v2002_v17, %v193_v19  ;;  %v265_v31 = vadd.f32 %v2002_v17, %v194_v20  ;;  %v1549_v33 = vunpack.c.h.bf16 %v1616_v25  ;;  %v1905_v12 = vld [vmem:[%s2524_s4 + $0xa0] sm:$0xff]  }
  0x30   :  { %v258_v54 = vadd.f32 %v2002_v17, %v187_v42  ;;  %v259_v55 = vadd.f32 %v2002_v17, %v188_v43  ;;  %v273_v9 = vadd.f32 %v2002_v17, %v202_v62  ;;  %v1564_v10 = vunpack.c.l.bf16 %v1620_v1 }
  0x31   :  { %v374_v35 = vpack.c.bf16 %v327_v22, %v326_v21  ;;  %v198_v42 = vmul.f32 %v1549_v33, %v1997_v14  ;;  %v1569_v20 = vunpack.c.h.bf16 %v1621_v6 }
  0x32   :  { %1734 = vmatmul.mubr.bf16.gmra.mxu0 %v1890_v41  ;;  %v319_v41 = vmax.f32 %v255_v32, 0.0  ;;  %v323_v0 = vmax.f32 %v259_v55, 0.0  ;;  %v1548_v32 = vunpack.c.l.bf16 %v1616_v25  ;;  %v337_v22 = vmax.f32 %v273_v9, 0.0  ;;  %v1626_v9 = vld [vmem:[%s2525_s0 + $0xe8] sm:$0xff]  }
  0x33   :  { %1814 = vmatmul.mubr.bf16.gmra.mxu1 %v363_v45  ;;  %1737 = vmatprep.mubr.bf16.mxu0 %v1891_v46  ;;  %v1896_v45 = vld [vmem:[%s2524_s4 + $0x58] sm:$0xff]   ;;  %v1532_v46 = vunpack.c.l.bf16 %v1612_v39  ;;  %v328_v39 = vmax.f32 %v264_v29, 0.0  ;;  %v269_v55 = vadd.f32 %v2002_v17, %v198_v42  ;;  %v1622_v29 = vld [vmem:[%s2525_s0 + $0xc8] sm:$0xff]  }
  0x34   :  { %1817 = vmatprep.mubr.bf16.mxu1 %v364_v50  ;;  %v256_v50 = vadd.f32 %v2002_v17, %v185_v37  ;;  %v370_v53 = vpack.c.bf16 %v319_v41, %v318_v40  ;;  %v329_v40 = vmax.f32 %v265_v31, 0.0  ;;  %v197_v41 = vmul.f32 %v1548_v32, %v1997_v14  ;;  %v1906_v31 = vld [vmem:[%s2524_s4 + $0xa8] sm:$0xff]  }
  0x35   :  { %v189_v57 = vmul.f32 %v1532_v46, %v1997_v14 }
  0x36   :  { %v320_v59 = vmax.f32 %v256_v50, 0.0  ;;  %v1556_v50 = vunpack.c.l.bf16 %v1618_v44  ;;  %v375_v52 = vpack.c.bf16 %v329_v40, %v328_v39 }
  0x38   :  { %v371_v7 = vpack.c.bf16 %v321_v60, %v320_v59  ;;  %v201_v61 = vmul.f32 %v1556_v50, %v1997_v14 }
  0x3a   :  { %1738 = vmatmul.mubr.bf16.gmra.mxu0 %v1892_v63  ;;  %v322_v63 = vmax.f32 %v258_v54, 0.0  ;;  %v268_v54 = vadd.f32 %v2002_v17, %v197_v41 }
  0x3b   :  { %1818 = vmatmul.mubr.bf16.gmra.mxu1 %v365_v3  ;;  %1741 = vmatprep.mubr.bf16.mxu0 %v1893_v4  ;;  %v1898_v3 = vld [vmem:[%s2524_s4 + $0x68] sm:$0xff]   ;;  %v260_v4 = vadd.f32 %v2002_v17, %v189_v57 }
  0x3c   :  { %1821 = vmatprep.mubr.bf16.mxu1 %v366_v8  ;;  %v1899_v8 = vld [vmem:[%s2524_s4 + $0x70] sm:$0xff]   ;;  %v372_v11 = vpack.c.bf16 %v323_v0, %v322_v63  ;;  %v332_v63 = vmax.f32 %v268_v54, 0.0  ;;  %v333_v0 = vmax.f32 %v269_v55, 0.0 }
  0x3d   :  { %v324_v16 = vmax.f32 %v260_v4, 0.0 }
  0x3f   :  { %v373_v28 = vpack.c.bf16 %v325_v18, %v324_v16 }
  0x42   :  { %1742 = vmatmul.mubr.bf16.gmra.mxu0 %v1894_v23  ;;  %v195_v23 = vmul.f32 %v1544_v13, %v1997_v14  ;;  %v1565_v13 = vunpack.c.h.bf16 %v1620_v1 }
  0x43   :  { %1822 = vmatmul.mubr.bf16.gmra.mxu1 %v367_v24  ;;  %1745 = vmatprep.mubr.bf16.mxu0 %v1895_v26  ;;  %v196_v24 = vmul.f32 %v1545_v15, %v1997_v14  ;;  %v1617_v26 = vld [vmem:[%s2525_s0 + $0xa0] sm:$0xff]   ;;  %v1568_v15 = vunpack.c.l.bf16 %v1621_v6 }
  0x44   :  { %1825 = vmatprep.mubr.bf16.mxu1 %v368_v27  ;;  %v1900_v27 = vld [vmem:[%s2524_s4 + $0x78] sm:$0xff]   ;;  %v1552_v34 = vunpack.c.l.bf16 %v1617_v26  ;;  %v266_v36 = vadd.f32 %v2002_v17, %v195_v23  ;;  %v1553_v38 = vunpack.c.h.bf16 %v1617_v26  ;;  %v205_v23 = vmul.f32 %v1564_v10, %v1997_v14  ;;  %v1627_v10 = vld [vmem:[%s2525_s0 + $0xf0] sm:$0xff]  }
  0x45   :  { %v267_v37 = vadd.f32 %v2002_v17, %v196_v24  ;;  %v206_v24 = vmul.f32 %v1565_v13, %v1997_v14  ;;  %v207_v25 = vmul.f32 %v1568_v15, %v1997_v14 }
  0x46   :  { %v199_v43 = vmul.f32 %v1552_v34, %v1997_v14  ;;  %v200_v47 = vmul.f32 %v1553_v38, %v1997_v14  ;;  %v276_v33 = vadd.f32 %v2002_v17, %v205_v23  ;;  %v1907_v34 = vld [vmem:[%s2524_s4 + $0xb0] sm:$0xff]   ;;  %v1573_v38 = vunpack.c.h.bf16 %v1622_v29 }
  0x47   :  { %v331_v46 = vmax.f32 %v267_v37, 0.0  ;;  %v1572_v37 = vunpack.c.l.bf16 %v1622_v29  ;;  %v1592_v23 = vunpack.c.l.bf16 %v1627_v10 }
  0x48   :  { %v270_v56 = vadd.f32 %v2002_v17, %v199_v43  ;;  %v271_v58 = vadd.f32 %v2002_v17, %v200_v47  ;;  %v340_v43 = vmax.f32 %v276_v33, 0.0  ;;  %v1624_v47 = vld [vmem:[%s2525_s0 + $0xd8] sm:$0xff]  }
  0x49   :  { %v1580_v54 = vunpack.c.l.bf16 %v1624_v47  ;;  %v1581_v55 = vunpack.c.h.bf16 %v1624_v47  ;;  %v1628_v33 = vld [vmem:[%s2525_s0 + $0xf8] sm:$0xff]  }
  0x4a   :  { %1746 = vmatmul.mubr.bf16.gmra.mxu0 %v1896_v45  ;;  %v330_v45 = vmax.f32 %v266_v36, 0.0  ;;  %v334_v2 = vmax.f32 %v270_v56, 0.0  ;;  %v278_v36 = vadd.f32 %v2002_v17, %v207_v25 }
  0x4b   :  { %1826 = vmatmul.mubr.bf16.gmra.mxu1 %v369_v48  ;;  %1749 = vmatprep.mubr.bf16.mxu0 %v1897_v49  ;;  %v1619_v48 = vld [vmem:[%s2525_s0 + $0xb0] sm:$0xff]   ;;  %v1902_v49 = vld [vmem:[%s2524_s4 + $0x88] sm:$0xff]   ;;  %v213_v1 = vmul.f32 %v1580_v54, %v1997_v14 }
  0x4c   :  { %1829 = vmatprep.mubr.bf16.mxu1 %v370_v53  ;;  %v1903_v53 = vld [vmem:[%s2524_s4 + $0x90] sm:$0xff]   ;;  %v376_v57 = vpack.c.bf16 %v331_v46, %v330_v45  ;;  %v1560_v59 = vunpack.c.l.bf16 %v1619_v48  ;;  %v1561_v60 = vunpack.c.h.bf16 %v1619_v48  ;;  %v209_v45 = vmul.f32 %v1572_v37, %v1997_v14 }
  0x4d   :  { %v210_v46 = vmul.f32 %v1573_v38, %v1997_v14  ;;  %v342_v48 = vmax.f32 %v278_v36, 0.0  ;;  %v1913_v36 = vld [vmem:[%s2524_s4 + $0xe0] sm:$0xff]  }
  0x4e   :  { %v203_v4 = vmul.f32 %v1560_v59, %v1997_v14  ;;  %v204_v5 = vmul.f32 %v1561_v60, %v1997_v14 }
  0x4f   :  { %v281_v59 = vadd.f32 %v2002_v17, %v210_v46 }
  0x50   :  { %v274_v18 = vadd.f32 %v2002_v17, %v203_v4  ;;  %v275_v19 = vadd.f32 %v2002_v17, %v204_v5 }
  0x51   :  { %v345_v4 = vmax.f32 %v281_v59, 0.0 }
  0x52   :  { %1750 = vmatmul.mubr.bf16.gmra.mxu0 %v1898_v3  ;;  %v335_v3 = vmax.f32 %v271_v58, 0.0  ;;  %v338_v26 = vmax.f32 %v274_v18, 0.0  ;;  %v280_v58 = vadd.f32 %v2002_v17, %v209_v45 }
  0x53   :  { %1830 = vmatmul.mubr.bf16.gmra.mxu1 %v371_v7  ;;  %1753 = vmatprep.mubr.bf16.mxu0 %v1899_v8  ;;  %v1904_v7 = vld [vmem:[%s2524_s4 + $0x98] sm:$0xff]   ;;  %v272_v8 = vadd.f32 %v2002_v17, %v201_v61 }
  0x54   :  { %1833 = vmatprep.mubr.bf16.mxu1 %v372_v11  ;;  %v377_v11 = vpack.c.bf16 %v333_v0, %v332_v63  ;;  %v378_v16 = vpack.c.bf16 %v335_v3, %v334_v2  ;;  %v214_v2 = vmul.f32 %v1581_v55, %v1997_v14  ;;  %v344_v3 = vmax.f32 %v280_v58, 0.0 }
  0x55   :  { %v336_v21 = vmax.f32 %v272_v8, 0.0 }
  0x56   :  { %v285_v13 = vadd.f32 %v2002_v17, %v214_v2  ;;  %v383_v15 = vpack.c.bf16 %v345_v4, %v344_v3 }
  0x57   :  { %v379_v32 = vpack.c.bf16 %v337_v22, %v336_v21 }
  0x5a   :  { %1754 = vmatmul.mubr.bf16.gmra.mxu0 %v1900_v27  ;;  %v339_v27 = vmax.f32 %v275_v19, 0.0  ;;  %v1588_v19 = vunpack.c.l.bf16 %v1626_v9 }
  0x5b   :  { %1834 = vmatmul.mubr.bf16.gmra.mxu1 %v373_v28  ;;  %1757 = vmatprep.mubr.bf16.mxu0 %v1901_v30  ;;  %v208_v28 = vmul.f32 %v1569_v20, %v1997_v14  ;;  %v1623_v30 = vld [vmem:[%s2525_s0 + $0xd0] sm:$0xff]   ;;  %v1589_v20 = vunpack.c.h.bf16 %v1626_v9 }
  0x5c   :  { %1837 = vmatprep.mubr.bf16.mxu1 %v374_v35  ;;  %v277_v35 = vadd.f32 %v2002_v17, %v206_v24  ;;  %v380_v39 = vpack.c.bf16 %v339_v27, %v338_v26  ;;  %v1576_v41 = vunpack.c.l.bf16 %v1623_v30  ;;  %v1577_v42 = vunpack.c.h.bf16 %v1623_v30 }
  0x5d   :  { %v279_v40 = vadd.f32 %v2002_v17, %v208_v28  ;;  %v1593_v24 = vunpack.c.h.bf16 %v1627_v10  ;;  %v349_v26 = vmax.f32 %v285_v13, 0.0  ;;  %v217_v27 = vmul.f32 %v1588_v19, %v1997_v14 }
  0x5e   :  { %v341_v44 = vmax.f32 %v277_v35, 0.0  ;;  %v211_v50 = vmul.f32 %v1576_v41, %v1997_v14  ;;  %v212_v51 = vmul.f32 %v1577_v42, %v1997_v14  ;;  %v218_v28 = vmul.f32 %v1589_v20, %v1997_v14 }
  0x5f   :  { %v288_v37 = vadd.f32 %v2002_v17, %v217_v27 }
  0x60   :  { %v381_v56 = vpack.c.bf16 %v341_v44, %v340_v43  ;;  %v282_v62 = vadd.f32 %v2002_v17, %v211_v50  ;;  %v283_v63 = vadd.f32 %v2002_v17, %v212_v51  ;;  %v289_v38 = vadd.f32 %v2002_v17, %v218_v28  ;;  %v1914_v50 = vld [vmem:[%s2524_s4 + $0xe8] sm:$0xff]  }
  0x61   :  { %v352_v44 = vmax.f32 %v288_v37, 0.0 }
  0x62   :  { %1758 = vmatmul.mubr.bf16.gmra.mxu0 %v1902_v49  ;;  %v343_v49 = vmax.f32 %v279_v40, 0.0  ;;  %v346_v6 = vmax.f32 %v282_v62, 0.0  ;;  %v1597_v40 = vunpack.c.h.bf16 %v1628_v33  ;;  %v353_v45 = vmax.f32 %v289_v38, 0.0 }
  0x63   :  { %1838 = vmatmul.mubr.bf16.gmra.mxu1 %v375_v52  ;;  %1761 = vmatprep.mubr.bf16.mxu0 %v1903_v53  ;;  %v1625_v52 = vld [vmem:[%s2525_s0 + $0xe0] sm:$0xff]   ;;  %v1908_v53 = vld [vmem:[%s2524_s4 + $0xb8] sm:$0xff]  }
  0x64   :  { %1841 = vmatprep.mubr.bf16.mxu1 %v376_v57  ;;  %v1909_v57 = vld [vmem:[%s2524_s4 + $0xc0] sm:$0xff]   ;;  %v1584_v60 = vunpack.c.l.bf16 %v1625_v52  ;;  %v382_v61 = vpack.c.bf16 %v343_v49, %v342_v48  ;;  %v1585_v0 = vunpack.c.h.bf16 %v1625_v52  ;;  %v222_v47 = vmul.f32 %v1597_v40, %v1997_v14  ;;  %v1915_v52 = vld [vmem:[%s2524_s4 + $0xf0] sm:$0xff]  }
  0x65   :  { %v387_v51 = vpack.c.bf16 %v353_v45, %v352_v44 }
  0x66   :  { %v215_v5 = vmul.f32 %v1584_v60, %v1997_v14  ;;  %v216_v8 = vmul.f32 %v1585_v0, %v1997_v14  ;;  %v293_v54 = vadd.f32 %v2002_v17, %v222_v47 }
  0x68   :  { %v286_v18 = vadd.f32 %v2002_v17, %v215_v5  ;;  %v287_v22 = vadd.f32 %v2002_v17, %v216_v8 }
  0x6a   :  { %1762 = vmatmul.mubr.bf16.gmra.mxu0 %v1904_v7  ;;  %v347_v7 = vmax.f32 %v283_v63, 0.0  ;;  %v350_v29 = vmax.f32 %v286_v18, 0.0  ;;  %v351_v30 = vmax.f32 %v287_v22, 0.0 }
  0x6b   :  { %1842 = vmatmul.mubr.bf16.gmra.mxu1 %v377_v11  ;;  %1765 = vmatprep.mubr.bf16.mxu0 %v1905_v12  ;;  %v1910_v11 = vld [vmem:[%s2524_s4 + $0xc8] sm:$0xff]   ;;  %v284_v12 = vadd.f32 %v2002_v17, %v213_v1 }
  0x6c   :  { %1845 = vmatprep.mubr.bf16.mxu1 %v378_v16  ;;  %v1911_v16 = vld [vmem:[%s2524_s4 + $0xd0] sm:$0xff]   ;;  %v384_v21 = vpack.c.bf16 %v347_v7, %v346_v6  ;;  %v386_v41 = vpack.c.bf16 %v351_v30, %v350_v29 }
  0x6d   :  { %v348_v25 = vmax.f32 %v284_v12, 0.0 }
  0x6f   :  { %v385_v35 = vpack.c.bf16 %v349_v26, %v348_v25 }
  0x72   :  { %1766 = vmatmul.mubr.bf16.gmra.mxu0 %v1906_v31  ;;  %v219_v31 = vmul.f32 %v1592_v23, %v1997_v14 }
  0x73   :  { %1846 = vmatmul.mubr.bf16.gmra.mxu1 %v379_v32  ;;  %1769 = vmatprep.mubr.bf16.mxu0 %v1907_v34  ;;  %v220_v32 = vmul.f32 %v1593_v24, %v1997_v14  ;;  %v1912_v34 = vld [vmem:[%s2524_s4 + $0xd8] sm:$0xff]  }
  0x74   :  { %1849 = vmatprep.mubr.bf16.mxu1 %v380_v39  ;;  %v1596_v39 = vunpack.c.l.bf16 %v1628_v33  ;;  %v290_v42 = vadd.f32 %v2002_v17, %v219_v31 }
  0x75   :  { %v291_v43 = vadd.f32 %v2002_v17, %v220_v32 }
  0x76   :  { %v221_v46 = vmul.f32 %v1596_v39, %v1997_v14  ;;  %v354_v48 = vmax.f32 %v290_v42, 0.0 }
  0x77   :  { %v355_v49 = vmax.f32 %v291_v43, 0.0 }
  0x79   :  { %v388_v55 = vpack.c.bf16 %v355_v49, %v354_v48 }
  0x7a   :  { %1770 = vmatmul.mubr.bf16.gmra.mxu0 %v1908_v53  ;;  %v292_v53 = vadd.f32 %v2002_v17, %v221_v46 }
  0x7b   :  { %1850 = vmatmul.mubr.bf16.gmra.mxu1 %v381_v56  ;;  %1773 = vmatprep.mubr.bf16.mxu0 %v1909_v57  ;;  %v357_v56 = vmax.f32 %v293_v54, 0.0  ;;  %v1916_v57 = vld [vmem:[%s2524_s4 + $0xf8] sm:$0xff]  }
  0x7c   :  { %1853 = vmatprep.mubr.bf16.mxu1 %v382_v61  ;;  %v356_v14 = vmax.f32 %v292_v53, 0.0 }
  0x7e   :  { %v389_v58 = vpack.c.bf16 %v357_v56, %v356_v14 }
  0x82   :  { %1774 = vmatmul.mubr.bf16.gmra.mxu0 %v1910_v11 }
  0x83   :  { %1854 = vmatmul.mubr.bf16.gmra.mxu1 %v383_v15  ;;  %1777 = vmatprep.mubr.bf16.mxu0 %v1911_v16 }
  0x84   :  { %1857 = vmatprep.mubr.bf16.mxu1 %v384_v21 }
  0x8a   :  { %1778 = vmatmul.mubr.bf16.gmra.mxu0 %v1912_v34 }
  0x8b   :  { %1858 = vmatmul.mubr.bf16.gmra.mxu1 %v385_v35  ;;  %1781 = vmatprep.mubr.bf16.mxu0 %v1913_v36 }
  0x8c   :  { %1861 = vmatprep.mubr.bf16.mxu1 %v386_v41 }
  0x92   :  { %1782 = vmatmul.mubr.bf16.gmra.mxu0 %v1914_v50 }
  0x93   :  { %1862 = vmatmul.mubr.bf16.gmra.mxu1 %v387_v51  ;;  %1785 = vmatprep.mubr.bf16.mxu0 %v1915_v52 }
  0x94   :  { %1865 = vmatprep.mubr.bf16.mxu1 %v388_v55 }
  0x9a   :  { %1786 = vmatmul.mubr.bf16.gmra.mxu0 %v1916_v57 }
  0x9b   :  { %1866 = vmatmul.mubr.bf16.gmra.mxu1 %v389_v58 }
  0xe2   :  { %v1727_v59 = vpop.f32.mrf.mxu0 }
  0xe3   :  { %v1807_v60 = vpop.f32.mrf.mxu1 }
  0xe4   :  { %v1106_v61 = vadd.f32 %v1807_v60, %v1727_v59  ;;  %v760_v62 = vpop.f32.mrf.mxu0 }
  0xe5   :  { %v1097_v63 = vpop.f32.mrf.mxu1 }
  0xe6   :  { %1354 = vst [vmem:[%s2528_s6 + $0x10] sm:$0xff] %v1106_v61  ;;  %v1098_v17 = vadd.f32 %v1097_v63, %v760_v62  ;;  %v1728_v0 = vpop.f32.mrf.mxu0 }
  0xe7   :  { %v1808_v1 = vpop.f32.mrf.mxu1 }
  0xe8   :  { %1352 = vst [vmem:[%s2528_s6] sm:$0xff] %v1098_v17  ;;  %v1109_v2 = vadd.f32 %v1808_v1, %v1728_v0  ;;  %v763_v3 = vpop.f32.mrf.mxu0 }
  0xe9   :  { %v1100_v4 = vpop.f32.mrf.mxu1 }
  0xea   :  { %1355 = vst [vmem:[%s2528_s6 + $0x18] sm:$0xff] %v1109_v2  ;;  %v1101_v5 = vadd.f32 %v1100_v4, %v763_v3  ;;  %v1731_v6 = vpop.f32.mrf.mxu0 }
  0xeb   :  { %v1811_v7 = vpop.f32.mrf.mxu1 }
  0xec   :  { %1353 = vst [vmem:[%s2528_s6 + $0x8] sm:$0xff] %v1101_v5  ;;  %v1122_v8 = vadd.f32 %v1811_v7, %v1731_v6  ;;  %v776_v9 = vpop.f32.mrf.mxu0 }
  0xed   :  { %v1113_v10 = vpop.f32.mrf.mxu1 }
  0xee   :  { %1358 = vst [vmem:[%s2528_s6 + $0x30] sm:$0xff] %v1122_v8  ;;  %v1114_v11 = vadd.f32 %v1113_v10, %v776_v9  ;;  %v1732_v12 = vpop.f32.mrf.mxu0 }
  0xef   :  { %v1812_v13 = vpop.f32.mrf.mxu1 }
  0xf0   :  { %1356 = vst [vmem:[%s2528_s6 + $0x20] sm:$0xff] %v1114_v11  ;;  %v1125_v15 = vadd.f32 %v1812_v13, %v1732_v12  ;;  %v779_v16 = vpop.f32.mrf.mxu0 }
  0xf1   :  { %v1116_v18 = vpop.f32.mrf.mxu1 }
  0xf2   :  { %1359 = vst [vmem:[%s2528_s6 + $0x38] sm:$0xff] %v1125_v15  ;;  %v1117_v19 = vadd.f32 %v1116_v18, %v779_v16  ;;  %v1735_v20 = vpop.f32.mrf.mxu0 }
  0xf3   :  { %v1815_v21 = vpop.f32.mrf.mxu1 }
  0xf4   :  { %1357 = vst [vmem:[%s2528_s6 + $0x28] sm:$0xff] %v1117_v19  ;;  %v1138_v22 = vadd.f32 %v1815_v21, %v1735_v20  ;;  %v792_v23 = vpop.f32.mrf.mxu0 }
  0xf5   :  { %v1129_v24 = vpop.f32.mrf.mxu1 }
  0xf6   :  { %1362 = vst [vmem:[%s2528_s6 + $0x50] sm:$0xff] %v1138_v22  ;;  %v1130_v25 = vadd.f32 %v1129_v24, %v792_v23  ;;  %v1736_v26 = vpop.f32.mrf.mxu0 }
  0xf7   :  { %v1816_v27 = vpop.f32.mrf.mxu1 }
  0xf8   :  { %1360 = vst [vmem:[%s2528_s6 + $0x40] sm:$0xff] %v1130_v25  ;;  %v1141_v28 = vadd.f32 %v1816_v27, %v1736_v26  ;;  %v795_v29 = vpop.f32.mrf.mxu0 }
  0xf9   :  { %v1132_v30 = vpop.f32.mrf.mxu1 }
  0xfa   :  { %1363 = vst [vmem:[%s2528_s6 + $0x58] sm:$0xff] %v1141_v28  ;;  %v1133_v31 = vadd.f32 %v1132_v30, %v795_v29  ;;  %v1739_v32 = vpop.f32.mrf.mxu0 }
  0xfb   :  { %v1819_v33 = vpop.f32.mrf.mxu1 }
  0xfc   :  { %1361 = vst [vmem:[%s2528_s6 + $0x48] sm:$0xff] %v1133_v31  ;;  %v1154_v34 = vadd.f32 %v1819_v33, %v1739_v32  ;;  %v808_v35 = vpop.f32.mrf.mxu0 }
  0xfd   :  { %v1145_v36 = vpop.f32.mrf.mxu1 }
  0xfe   :  { %1366 = vst [vmem:[%s2528_s6 + $0x70] sm:$0xff] %v1154_v34  ;;  %v1146_v37 = vadd.f32 %v1145_v36, %v808_v35  ;;  %v1740_v38 = vpop.f32.mrf.mxu0 }
  0xff   :  { %v1820_v39 = vpop.f32.mrf.mxu1 }
 0x100   :  { %1364 = vst [vmem:[%s2528_s6 + $0x60] sm:$0xff] %v1146_v37  ;;  %v1157_v40 = vadd.f32 %v1820_v39, %v1740_v38  ;;  %v811_v41 = vpop.f32.mrf.mxu0 }
 0x101   :  { %v1148_v42 = vpop.f32.mrf.mxu1 }
 0x102   :  { %1367 = vst [vmem:[%s2528_s6 + $0x78] sm:$0xff] %v1157_v40  ;;  %v1149_v43 = vadd.f32 %v1148_v42, %v811_v41  ;;  %v1743_v44 = vpop.f32.mrf.mxu0 }
 0x103   :  { %v1823_v45 = vpop.f32.mrf.mxu1 }
 0x104   :  { %1365 = vst [vmem:[%s2528_s6 + $0x68] sm:$0xff] %v1149_v43  ;;  %v1170_v46 = vadd.f32 %v1823_v45, %v1743_v44  ;;  %v824_v47 = vpop.f32.mrf.mxu0 }
 0x105   :  { %v1161_v48 = vpop.f32.mrf.mxu1 }
 0x106   :  { %1370 = vst [vmem:[%s2528_s6 + $0x90] sm:$0xff] %v1170_v46  ;;  %v1162_v49 = vadd.f32 %v1161_v48, %v824_v47  ;;  %v1744_v50 = vpop.f32.mrf.mxu0 }
 0x107   :  { %v1824_v51 = vpop.f32.mrf.mxu1 }
 0x108   :  { %1368 = vst [vmem:[%s2528_s6 + $0x80] sm:$0xff] %v1162_v49  ;;  %v1173_v52 = vadd.f32 %v1824_v51, %v1744_v50  ;;  %v827_v53 = vpop.f32.mrf.mxu0 }
 0x109   :  { %v1164_v54 = vpop.f32.mrf.mxu1 }
 0x10a   :  { %1371 = vst [vmem:[%s2528_s6 + $0x98] sm:$0xff] %v1173_v52  ;;  %v1165_v55 = vadd.f32 %v1164_v54, %v827_v53  ;;  %v1747_v14 = vpop.f32.mrf.mxu0 }
 0x10b   :  { %v1827_v56 = vpop.f32.mrf.mxu1 }
 0x10c   :  { %1369 = vst [vmem:[%s2528_s6 + $0x88] sm:$0xff] %v1165_v55  ;;  %v1186_v57 = vadd.f32 %v1827_v56, %v1747_v14  ;;  %v840_v58 = vpop.f32.mrf.mxu0 }
 0x10d   :  { %v1177_v59 = vpop.f32.mrf.mxu1 }
 0x10e   :  { %1374 = vst [vmem:[%s2528_s6 + $0xb0] sm:$0xff] %v1186_v57  ;;  %v1178_v60 = vadd.f32 %v1177_v59, %v840_v58  ;;  %v1748_v61 = vpop.f32.mrf.mxu0 }
 0x10f   :  { %v1828_v62 = vpop.f32.mrf.mxu1 }
 0x110   :  { %1372 = vst [vmem:[%s2528_s6 + $0xa0] sm:$0xff] %v1178_v60  ;;  %v1189_v63 = vadd.f32 %v1828_v62, %v1748_v61  ;;  %v843_v17 = vpop.f32.mrf.mxu0 }
 0x111   :  { %v1180_v0 = vpop.f32.mrf.mxu1 }
 0x112   :  { %1375 = vst [vmem:[%s2528_s6 + $0xb8] sm:$0xff] %v1189_v63  ;;  %v1181_v1 = vadd.f32 %v1180_v0, %v843_v17  ;;  %v1751_v2 = vpop.f32.mrf.mxu0 }
 0x113   :  { %v1831_v3 = vpop.f32.mrf.mxu1 }
 0x114   :  { %1373 = vst [vmem:[%s2528_s6 + $0xa8] sm:$0xff] %v1181_v1  ;;  %v1202_v4 = vadd.f32 %v1831_v3, %v1751_v2  ;;  %v856_v5 = vpop.f32.mrf.mxu0 }
 0x115   :  { %v1193_v6 = vpop.f32.mrf.mxu1 }
 0x116   :  { %1378 = vst [vmem:[%s2528_s6 + $0xd0] sm:$0xff] %v1202_v4  ;;  %v1194_v7 = vadd.f32 %v1193_v6, %v856_v5  ;;  %v1752_v8 = vpop.f32.mrf.mxu0 }
 0x117   :  { %v1832_v9 = vpop.f32.mrf.mxu1 }
 0x118   :  { %1376 = vst [vmem:[%s2528_s6 + $0xc0] sm:$0xff] %v1194_v7  ;;  %v1205_v10 = vadd.f32 %v1832_v9, %v1752_v8  ;;  %v859_v11 = vpop.f32.mrf.mxu0 }
 0x119   :  { %v1196_v12 = vpop.f32.mrf.mxu1 }
 0x11a   :  { %1379 = vst [vmem:[%s2528_s6 + $0xd8] sm:$0xff] %v1205_v10  ;;  %v1197_v13 = vadd.f32 %v1196_v12, %v859_v11  ;;  %v1755_v15 = vpop.f32.mrf.mxu0 }
 0x11b   :  { %v1835_v16 = vpop.f32.mrf.mxu1 }
 0x11c   :  { %1377 = vst [vmem:[%s2528_s6 + $0xc8] sm:$0xff] %v1197_v13  ;;  %v1218_v18 = vadd.f32 %v1835_v16, %v1755_v15  ;;  %v872_v19 = vpop.f32.mrf.mxu0 }
 0x11d   :  { %v1209_v20 = vpop.f32.mrf.mxu1 }
 0x11e   :  { %1382 = vst [vmem:[%s2528_s6 + $0xf0] sm:$0xff] %v1218_v18  ;;  %v1210_v21 = vadd.f32 %v1209_v20, %v872_v19  ;;  %v1756_v22 = vpop.f32.mrf.mxu0 }
 0x11f   :  { %v1836_v23 = vpop.f32.mrf.mxu1 }
 0x120   :  { %1380 = vst [vmem:[%s2528_s6 + $0xe0] sm:$0xff] %v1210_v21  ;;  %v1221_v24 = vadd.f32 %v1836_v23, %v1756_v22  ;;  %v875_v25 = vpop.f32.mrf.mxu0 }
 0x121   :  { %v1212_v26 = vpop.f32.mrf.mxu1 }
 0x122   :  { %1383 = vst [vmem:[%s2528_s6 + $0xf8] sm:$0xff] %v1221_v24  ;;  %v1213_v27 = vadd.f32 %v1212_v26, %v875_v25  ;;  %v1759_v28 = vpop.f32.mrf.mxu0 }
 0x123   :  { %v1839_v29 = vpop.f32.mrf.mxu1 }
 0x124   :  { %1381 = vst [vmem:[%s2528_s6 + $0xe8] sm:$0xff] %v1213_v27  ;;  %v1234_v30 = vadd.f32 %v1839_v29, %v1759_v28  ;;  %v888_v31 = vpop.f32.mrf.mxu0 }
 0x125   :  { %v1225_v32 = vpop.f32.mrf.mxu1 }
 0x126   :  { %1386 = vst [vmem:[%s2528_s6 + $0x110] sm:$0xff] %v1234_v30  ;;  %v1226_v33 = vadd.f32 %v1225_v32, %v888_v31  ;;  %v1760_v34 = vpop.f32.mrf.mxu0 }
 0x127   :  { %v1840_v35 = vpop.f32.mrf.mxu1 }
 0x128   :  { %1384 = vst [vmem:[%s2528_s6 + $0x100] sm:$0xff] %v1226_v33  ;;  %v1237_v36 = vadd.f32 %v1840_v35, %v1760_v34  ;;  %v891_v37 = vpop.f32.mrf.mxu0 }
 0x129   :  { %v1228_v38 = vpop.f32.mrf.mxu1 }
 0x12a   :  { %1387 = vst [vmem:[%s2528_s6 + $0x118] sm:$0xff] %v1237_v36  ;;  %v1229_v39 = vadd.f32 %v1228_v38, %v891_v37  ;;  %v1763_v40 = vpop.f32.mrf.mxu0 }
 0x12b   :  { %v1843_v41 = vpop.f32.mrf.mxu1 }
 0x12c   :  { %1385 = vst [vmem:[%s2528_s6 + $0x108] sm:$0xff] %v1229_v39  ;;  %v1250_v42 = vadd.f32 %v1843_v41, %v1763_v40  ;;  %v904_v43 = vpop.f32.mrf.mxu0 }
 0x12d   :  { %v1241_v44 = vpop.f32.mrf.mxu1 }
 0x12e   :  { %1390 = vst [vmem:[%s2528_s6 + $0x130] sm:$0xff] %v1250_v42  ;;  %v1242_v45 = vadd.f32 %v1241_v44, %v904_v43  ;;  %v1764_v46 = vpop.f32.mrf.mxu0 }
 0x12f   :  { %v1844_v47 = vpop.f32.mrf.mxu1 }
 0x130   :  { %1388 = vst [vmem:[%s2528_s6 + $0x120] sm:$0xff] %v1242_v45  ;;  %v1253_v48 = vadd.f32 %v1844_v47, %v1764_v46  ;;  %v907_v49 = vpop.f32.mrf.mxu0 }
 0x131   :  { %v1244_v50 = vpop.f32.mrf.mxu1 }
 0x132   :  { %1391 = vst [vmem:[%s2528_s6 + $0x138] sm:$0xff] %v1253_v48  ;;  %v1245_v51 = vadd.f32 %v1244_v50, %v907_v49  ;;  %v1767_v52 = vpop.f32.mrf.mxu0 }
 0x133   :  { %v1847_v53 = vpop.f32.mrf.mxu1 }
 0x134   :  { %1389 = vst [vmem:[%s2528_s6 + $0x128] sm:$0xff] %v1245_v51  ;;  %v1266_v54 = vadd.f32 %v1847_v53, %v1767_v52  ;;  %v920_v55 = vpop.f32.mrf.mxu0 }
 0x135   :  { %v1257_v14 = vpop.f32.mrf.mxu1 }
 0x136   :  { %1394 = vst [vmem:[%s2528_s6 + $0x150] sm:$0xff] %v1266_v54  ;;  %v1258_v56 = vadd.f32 %v1257_v14, %v920_v55  ;;  %v1768_v57 = vpop.f32.mrf.mxu0 }
 0x137   :  { %v1848_v58 = vpop.f32.mrf.mxu1 }
 0x138   :  { %1392 = vst [vmem:[%s2528_s6 + $0x140] sm:$0xff] %v1258_v56  ;;  %v1269_v59 = vadd.f32 %v1848_v58, %v1768_v57  ;;  %v923_v60 = vpop.f32.mrf.mxu0 }
 0x139   :  { %v1260_v61 = vpop.f32.mrf.mxu1 }
 0x13a   :  { %1395 = vst [vmem:[%s2528_s6 + $0x158] sm:$0xff] %v1269_v59  ;;  %v1261_v62 = vadd.f32 %v1260_v61, %v923_v60  ;;  %v1771_v63 = vpop.f32.mrf.mxu0 }
 0x13b   :  { %v1851_v17 = vpop.f32.mrf.mxu1 }
 0x13c   :  { %1393 = vst [vmem:[%s2528_s6 + $0x148] sm:$0xff] %v1261_v62  ;;  %v1282_v0 = vadd.f32 %v1851_v17, %v1771_v63  ;;  %v936_v1 = vpop.f32.mrf.mxu0 }
 0x13d   :  { %v1273_v2 = vpop.f32.mrf.mxu1 }
 0x13e   :  { %1398 = vst [vmem:[%s2528_s6 + $0x170] sm:$0xff] %v1282_v0  ;;  %v1274_v3 = vadd.f32 %v1273_v2, %v936_v1  ;;  %v1772_v4 = vpop.f32.mrf.mxu0 }
 0x13f   :  { %v1852_v5 = vpop.f32.mrf.mxu1 }
 0x140   :  { %1396 = vst [vmem:[%s2528_s6 + $0x160] sm:$0xff] %v1274_v3  ;;  %v1285_v6 = vadd.f32 %v1852_v5, %v1772_v4  ;;  %v939_v7 = vpop.f32.mrf.mxu0 }
 0x141   :  { %v1276_v8 = vpop.f32.mrf.mxu1 }
 0x142   :  { %1399 = vst [vmem:[%s2528_s6 + $0x178] sm:$0xff] %v1285_v6  ;;  %v1277_v9 = vadd.f32 %v1276_v8, %v939_v7  ;;  %v1775_v10 = vpop.f32.mrf.mxu0 }
 0x143   :  { %v1855_v11 = vpop.f32.mrf.mxu1 }
 0x144   :  { %1397 = vst [vmem:[%s2528_s6 + $0x168] sm:$0xff] %v1277_v9  ;;  %v1298_v12 = vadd.f32 %v1855_v11, %v1775_v10  ;;  %v952_v13 = vpop.f32.mrf.mxu0 }
 0x145   :  { %v1289_v15 = vpop.f32.mrf.mxu1 }
 0x146   :  { %1402 = vst [vmem:[%s2528_s6 + $0x190] sm:$0xff] %v1298_v12  ;;  %v1290_v16 = vadd.f32 %v1289_v15, %v952_v13  ;;  %v1776_v18 = vpop.f32.mrf.mxu0 }
 0x147   :  { %v1856_v19 = vpop.f32.mrf.mxu1 }
 0x148   :  { %1400 = vst [vmem:[%s2528_s6 + $0x180] sm:$0xff] %v1290_v16  ;;  %v1301_v20 = vadd.f32 %v1856_v19, %v1776_v18  ;;  %v955_v21 = vpop.f32.mrf.mxu0 }
 0x149   :  { %v1292_v22 = vpop.f32.mrf.mxu1 }
 0x14a   :  { %1403 = vst [vmem:[%s2528_s6 + $0x198] sm:$0xff] %v1301_v20  ;;  %v1293_v23 = vadd.f32 %v1292_v22, %v955_v21  ;;  %v1779_v24 = vpop.f32.mrf.mxu0 }
 0x14b   :  { %v1859_v25 = vpop.f32.mrf.mxu1 }
 0x14c   :  { %1401 = vst [vmem:[%s2528_s6 + $0x188] sm:$0xff] %v1293_v23  ;;  %v1314_v26 = vadd.f32 %v1859_v25, %v1779_v24  ;;  %v968_v27 = vpop.f32.mrf.mxu0 }
 0x14d   :  { %v1305_v28 = vpop.f32.mrf.mxu1 }
 0x14e   :  { %1406 = vst [vmem:[%s2528_s6 + $0x1b0] sm:$0xff] %v1314_v26  ;;  %v1306_v29 = vadd.f32 %v1305_v28, %v968_v27  ;;  %v1780_v30 = vpop.f32.mrf.mxu0 }
 0x14f   :  { %v1860_v31 = vpop.f32.mrf.mxu1 }
 0x150   :  { %1404 = vst [vmem:[%s2528_s6 + $0x1a0] sm:$0xff] %v1306_v29  ;;  %v1317_v32 = vadd.f32 %v1860_v31, %v1780_v30  ;;  %v971_v33 = vpop.f32.mrf.mxu0 }
 0x151   :  { %v1308_v34 = vpop.f32.mrf.mxu1 }
 0x152   :  { %1407 = vst [vmem:[%s2528_s6 + $0x1b8] sm:$0xff] %v1317_v32  ;;  %v1309_v35 = vadd.f32 %v1308_v34, %v971_v33  ;;  %v1783_v36 = vpop.f32.mrf.mxu0 }
 0x153   :  { %v1863_v37 = vpop.f32.mrf.mxu1 }
 0x154   :  { %1405 = vst [vmem:[%s2528_s6 + $0x1a8] sm:$0xff] %v1309_v35  ;;  %v1330_v38 = vadd.f32 %v1863_v37, %v1783_v36  ;;  %v984_v39 = vpop.f32.mrf.mxu0 }
 0x155   :  { %v1321_v40 = vpop.f32.mrf.mxu1 }
 0x156   :  { %1410 = vst [vmem:[%s2528_s6 + $0x1d0] sm:$0xff] %v1330_v38  ;;  %v1322_v41 = vadd.f32 %v1321_v40, %v984_v39  ;;  %v1784_v42 = vpop.f32.mrf.mxu0 }
 0x157   :  { %v1864_v43 = vpop.f32.mrf.mxu1 }
 0x158   :  { %1408 = vst [vmem:[%s2528_s6 + $0x1c0] sm:$0xff] %v1322_v41  ;;  %v1333_v44 = vadd.f32 %v1864_v43, %v1784_v42  ;;  %v987_v45 = vpop.f32.mrf.mxu0 }
 0x159   :  { %v1324_v46 = vpop.f32.mrf.mxu1 }
 0x15a   :  { %1411 = vst [vmem:[%s2528_s6 + $0x1d8] sm:$0xff] %v1333_v44  ;;  %v1325_v47 = vadd.f32 %v1324_v46, %v987_v45  ;;  %v1787_v48 = vpop.f32.mrf.mxu0 }
 0x15b   :  { %v1867_v49 = vpop.f32.mrf.mxu1 }
 0x15c   :  { %1409 = vst [vmem:[%s2528_s6 + $0x1c8] sm:$0xff] %v1325_v47  ;;  %v1346_v50 = vadd.f32 %v1867_v49, %v1787_v48  ;;  %v1000_v51 = vpop.f32.mrf.mxu0 }
 0x15d   :  { %v1337_v52 = vpop.f32.mrf.mxu1 }
 0x15e   :  { %1414 = vst [vmem:[%s2528_s6 + $0x1f0] sm:$0xff] %v1346_v50  ;;  %v1338_v53 = vadd.f32 %v1337_v52, %v1000_v51  ;;  %v1788_v54 = vpop.f32.mrf.mxu0 }
 0x15f   :  { %v1868_v55 = vpop.f32.mrf.mxu1 }
 0x160   :  { %1412 = vst [vmem:[%s2528_s6 + $0x1e0] sm:$0xff] %v1338_v53  ;;  %v1349_v14 = vadd.f32 %v1868_v55, %v1788_v54  ;;  %v1003_v56 = vpop.f32.mrf.mxu0 }
 0x161   :  { %v1340_v57 = vpop.f32.mrf.mxu1 }
 0x162   :  { %1415 = vst [vmem:[%s2528_s6 + $0x1f8] sm:$0xff] %v1349_v14  ;;  %v1341_v58 = vadd.f32 %v1340_v57, %v1003_v56 }
 0x164   :  { %1413 = vst [vmem:[%s2528_s6 + $0x1e8] sm:$0xff] %v1341_v58 }

// kernel: bottleneck_forward.4
= control target key start
LH: loop header
LB: loop body
LE: loop exit
PB: predicated region body
PF: predicated region fallthrough
CT: control target
= control target key end

     0   :  { %s5486_s21 = smov 0   ;;  %s5488_s22 = smov 0   ;;  %s7124_s0 = inlined_call_operand.vmem [shape: bf16[512,128], index: 0, kind: input, shape index: {}]   ;;  %s7125_s1 = inlined_call_operand.vmem [shape: f32[1,128], index: 1, kind: input, shape index: {}]   ;;  %s7126_s2 = inlined_call_operand.vmem [shape: f32[1,128], index: 2, kind: input, shape index: {}]   ;;  %s7127_s3 = inlined_call_operand.vmem [shape: bf16[3,384,128], index: 3, kind: input, shape index: {}]   ;;  %s7128_s4 = inlined_call_operand.vmem [shape: bf16[512,128], index: 4, kind: output, shape index: {0}]   ;;  %s7129_s5 = inlined_call_operand.vmem [shape: f32[2,1,128], index: 5, kind: output, shape index: {1}]   ;;  %s7130_s6 = inlined_call_operand.vmem [shape: f32[2,1,128], index: 6, kind: output, shape index: {2}]  }
   0x1   :  { %s5490_s23 = smov 0  }
   0x2 LB: > { %s29_s24 = sadd.s32 1, %s5443_s22  ;;  %p3767_p0 = scmp.ge.s32.totalorder %s5447_s23, 1  ;;  %s5447_s23 = sphi %s5490_s23, %s17_s23   ;;  %s5443_s22 = sphi %s5488_s22, %s7406_s22   ;;  %s5439_s21 = sphi %s5486_s21, %s7405_s21  }
   0x3   : > { %p31_p1 = scmp.ge.s32.totalorder %s29_s24, 2  ;;  %p236_p2 = scmp.lt.s32.totalorder %s5447_s23, 3 }
   0x5   : > { %s7408_s24 = smov (%p31_p1, %s29_s24), 0  ;;  %p237_p3 = pnand %p3767_p0, %p236_p2 }
   0x7   : > { %240 = sbr.rel (%p237_p3) target bundleno = 550 (0x226), region = 36 }
   0xc   : > { %v5352_v0 = vld [vmem:[%s7127_s3 + $0x138] sm:$0xff]   ;;  %s3768_s27 = sshll.u32 %s5439_s21, 5  ;;  %v5354_v2 = vld [vmem:[%s7127_s3 + $0x130] sm:$0xff]   ;;  %v5449_v4 = vmov 0.0   ;;  %v5356_v5 = vld [vmem:[%s7127_s3 + $0x128] sm:$0xff]   ;;  %v517_v8 = vlaneseq  ;;  %vm7141_vm2 = vmmov 1  }
   0xd   : > { %v5353_v1 = vld [vmem:[%s7127_s3 + $0xf8] sm:$0xff]   ;;  %p5513_p4 = scmp.lt.s32.totalorder %s3768_s27, 63  ;;  %4758 = vmatprep.subr.bf16.mxu0 %v5352_v0  ;;  %5310 = vmatprep.subr.bf16.mxu1 %v5352_v0  ;;  %v5355_v3 = vld [vmem:[%s7127_s3 + $0xf0] sm:$0xff]   ;;  %306 = vst [vmem:[#allocation2 + $0x10] sm:$0xff] %v5449_v4  ;;  %304 = vst [vmem:[#allocation2] sm:$0xff] %v5449_v4  ;;  %p290_p5 = scmp.lt.s32.totalorder %s5439_s21, 1 }
   0xe   : > { %4759 = vmatpush3.bf16.msra.mxu0 %v5353_v1  ;;  %5318 = vmatpush3.bf16.msra.mxu1 %v5353_v1  ;;  %305 = vst [vmem:[#allocation2 + $0x8] sm:$0xff] %v5449_v4  ;;  %307 = vst [vmem:[#allocation2 + $0x118] sm:$0xff] %v5449_v4  ;;  %v5357_v6 = vld [vmem:[%s7127_s3 + $0xe8] sm:$0xff]   ;;  %v5358_v7 = vld [vmem:[%s7127_s3 + $0x120] sm:$0xff]   ;;  %v5543_v11 = vshrl.u32 %v517_v8, 7 }
   0xf   : > { %308 = vst [vmem:[#allocation2 + $0x120] sm:$0xff] %v5449_v4  ;;  %309 = vst [vmem:[#allocation2 + $0x128] sm:$0xff] %v5449_v4  ;;  %4760 = vmatprep.subr.bf16.mxu0 %v5354_v2  ;;  %5311 = vmatprep.subr.bf16.mxu1 %v5354_v2  ;;  %s7410_s27 = smov (!%p5513_p4, %s3768_s27), 63  ;;  %v5359_v9 = vld [vmem:[%s7127_s3 + $0xe0] sm:$0xff]   ;;  %v5360_v10 = vld [vmem:[%s7127_s3 + $0x118] sm:$0xff]   ;;  %s7412_s21 = smov (!%p290_p5, %s5439_s21), 1 }
  0x10   : > { %s3769_s17 = sshll.u32 %s7410_s27, 2  ;;  %v5361_v12 = vld [vmem:[%s7127_s3 + $0xd8] sm:$0xff]   ;;  %v5362_v13 = vld [vmem:[%s7127_s3 + $0x110] sm:$0xff]   ;;  %v5562_v15 = vld [vmem:[%s7125_s1] ss:$0 sm:$0xff]  ;;  %v554_v16 = vand.u32 15, %v5543_v11  ;;  %s292_s15 = scalar_lea.vmem %s7129_s5, %s7412_s21 }
  0x11   : > { %s5550_s29 = scalar_lea.vmem %s7124_s0, %s3769_s17  ;;  %v542_v17 = vadd.s32 192, %v5543_v11  ;;  %v5571_v22 = vadd.s32 16, %v5543_v11  ;;  %v5576_v23 = vld [vmem:[%s7126_s2] ss:$0 sm:$0xff]  ;;  %v5363_v27 = vld [vmem:[%s7127_s3 + $0xd0] sm:$0xff]   ;;  %v5364_v30 = vld [vmem:[%s7127_s3 + $0x108] sm:$0xff]   ;;  %s6990_s14 = scalar_lea.vmem %s7128_s4, %s3769_s17 }
  0x12   : > { %4761 = vmatpush3.bf16.msra.mxu0 %v5355_v3  ;;  %5319 = vmatpush3.bf16.msra.mxu1 %v5355_v3  ;;  %v4585_v14 = vld [vmem:[%s5550_s29] sm:$0xff]   ;;  %v5568_v21 = vld [vmem:[%s5550_s29 + $0x58] sm:$0xff]   ;;  %vm5589_vm0 = vcmp.gt.s32.totalorder %v554_v16, 0  ;;  %v4728_v38 = vld [vmem:[%s5550_s29 + $0x8] sm:$0xff]   ;;  %v5600_v41 = vadd.s32 208, %v5543_v11  ;;  %s297_s19 = scalar_lea.vmem %s7130_s6, %s7412_s21 }
  0x13   : > { %4762 = vmatprep.subr.bf16.mxu0 %v5356_v5  ;;  %5312 = vmatprep.subr.bf16.mxu1 %v5356_v5  ;;  %v4586_v18 = vunpack.c.l.bf16 %v4585_v14  ;;  %v4587_v19 = vunpack.c.h.bf16 %v4585_v14  ;;  %v4739_v20 = vld [vmem:[%s5550_s29 + $0x60] sm:$0xff]   ;;  %v4631_v26 = vunpack.c.h.bf16 %v5568_v21  ;;  %v722_v35 = vand.u32 15, %v542_v17  ;;  %v4740_v39 = vld [vmem:[%s5550_s29 + $0x68] sm:$0xff]   ;;  %v4729_v0 = vld [vmem:[%s5550_s29 + $0x10] sm:$0xff]  }
  0x14   : > { %v4634_v24 = vunpack.c.l.bf16 %v4739_v20  ;;  %v4635_v25 = vunpack.c.h.bf16 %v4739_v20  ;;  %v568_v40 = vand.u32 15, %v5571_v22  ;;  %v4590_v45 = vunpack.c.l.bf16 %v4728_v38  ;;  %v5365_v46 = vld [vmem:[%s7127_s3 + $0xc8] sm:$0xff]   ;;  %v5366_v51 = vld [vmem:[%s7127_s3 + $0x100] sm:$0xff]   ;;  %v4741_v1 = vld [vmem:[%s5550_s29 + $0x70] sm:$0xff]  }
  0x15   : > { %v381_v28 = vmul.f32 %v4586_v18, %v5562_v15  ;;  %v382_v29 = vmul.f32 %v4587_v19, %v5562_v15  ;;  %v404_v34 = vmul.f32 %v4631_v26, %v5562_v15  ;;  %v4591_v49 = vunpack.c.h.bf16 %v4728_v38  ;;  %v5367_v2 = vld [vmem:[%s7127_s3 + $0xc0] sm:$0xff]   ;;  %v5628_v3 = vld [vmem:[%s7127_s3 + $0x178] sm:$0xff]   ;;  %vm5646_vm3 = vmpackc.low %vm7141_vm2, %vm5589_vm0 }
  0x16   : > { %4763 = vmatpush3.bf16.msra.mxu0 %v5357_v6  ;;  %5320 = vmatpush3.bf16.msra.mxu1 %v5357_v6  ;;  %v405_v31 = vmul.f32 %v4634_v24, %v5562_v15  ;;  %v406_v32 = vmul.f32 %v4635_v25, %v5562_v15  ;;  %v4638_v50 = vunpack.c.l.bf16 %v4740_v39  ;;  %v383_v55 = vmul.f32 %v4590_v45, %v5562_v15  ;;  %v5369_v8 = vld [vmem:[%s7127_s3 + $0xb8] sm:$0xff]  }
  0x17   : > { %4764 = vmatprep.subr.bf16.mxu0 %v5358_v7  ;;  %5313 = vmatprep.subr.bf16.mxu1 %v5358_v7  ;;  %v420_v36 = vadd.f32 %v5576_v23, %v381_v28  ;;  %v421_v37 = vadd.f32 %v5576_v23, %v382_v29  ;;  %v443_v44 = vadd.f32 %v5576_v23, %v404_v34  ;;  %v4639_v58 = vunpack.c.h.bf16 %v4740_v39  ;;  %v4730_v19 = vld [vmem:[%s5550_s29 + $0x18] sm:$0xff]  }
  0x18   : > { %v444_v42 = vadd.f32 %v5576_v23, %v405_v31  ;;  %v445_v43 = vadd.f32 %v5576_v23, %v406_v32  ;;  %v384_v57 = vmul.f32 %v4591_v49, %v5562_v15  ;;  %v407_v59 = vmul.f32 %v4638_v50, %v5562_v15  ;;  %v4742_v20 = vld [vmem:[%s5550_s29 + $0x78] sm:$0xff]   ;;  %v5370_v49 = vld [vmem:[%s7127_s3 + $0x170] sm:$0xff]  }
  0x19   : > { %v452_v47 = vmax.f32 %v420_v36, 0.0  ;;  %v453_v48 = vmax.f32 %v421_v37, 0.0  ;;  %v475_v54 = vmax.f32 %v443_v44, 0.0  ;;  %vm5614_vm1 = vcmp.gt.s32.totalorder %v722_v35, 0  ;;  %v5373_v50 = vld [vmem:[%s7127_s3 + $0xb0] sm:$0xff]  }
  0x1a   : > { %4765 = vmatpush3.bf16.msra.mxu0 %v5359_v9  ;;  %5321 = vmatpush3.bf16.msra.mxu1 %v5359_v9  ;;  %v476_v52 = vmax.f32 %v444_v42, 0.0  ;;  %v477_v53 = vmax.f32 %v445_v43, 0.0  ;;  %v422_v62 = vadd.f32 %v5576_v23, %v383_v55  ;;  %v736_v63 = vand.u32 15, %v5600_v41  ;;  %vm5664_vm4 = vmpackc.low %vm7141_vm2, %vm5614_vm1 }
  0x1b   : > { %4766 = vmatprep.subr.bf16.mxu0 %v5360_v10  ;;  %5314 = vmatprep.subr.bf16.mxu1 %v5360_v10  ;;  %484 = vst [vmem:[#allocation2 + $0x18] sm:$0xff] %v452_v47  ;;  %485 = vst [vmem:[#allocation2 + $0x20] sm:$0xff] %v453_v48  ;;  %v1586_v56 = vpack.c.bf16 %v453_v48, %v452_v47  ;;  %v423_v4 = vadd.f32 %v5576_v23, %v384_v57  ;;  %v4594_v7 = vunpack.c.l.bf16 %v4729_v0  ;;  %v7206_v44 = vmov 0 }
  0x1c   : > { %508 = vst [vmem:[#allocation2 + $0xd8] sm:$0xff] %v476_v52  ;;  %509 = vst [vmem:[#allocation2 + $0xe0] sm:$0xff] %v477_v53  ;;  %v1598_v60 = vpack.c.bf16 %v477_v53, %v476_v52  ;;  %v408_v5 = vmul.f32 %v4639_v58, %v5562_v15  ;;  %v446_v6 = vadd.f32 %v5576_v23, %v407_v59  ;;  %v454_v9 = vmax.f32 %v422_v62, 0.0 }
  0x1d   : > { %507 = vst [vmem:[#allocation2 + $0xd0] sm:$0xff] %v475_v54  ;;  %v4595_v10 = vunpack.c.h.bf16 %v4729_v0  ;;  %1827 = vmatprep.mubr.bf16.mxu0 %v1586_v56  ;;  %v455_v14 = vmax.f32 %v423_v4, 0.0  ;;  %v385_v18 = vmul.f32 %v4594_v7, %v5562_v15  ;;  %v4599_v32 = vunpack.c.h.bf16 %v4730_v19  ;;  %v4731_v54 = vld [vmem:[%s5550_s29 + $0x20] sm:$0xff]  }
  0x1e   : > { %4767 = vmatpush3.bf16.msra.mxu0 %v5361_v12  ;;  %5322 = vmatpush3.bf16.msra.mxu1 %v5361_v12  ;;  %v4642_v12 = vunpack.c.l.bf16 %v4741_v1  ;;  %v447_v16 = vadd.f32 %v5576_v23, %v408_v5  ;;  %v478_v17 = vmax.f32 %v446_v6, 0.0  ;;  %486 = vst [vmem:[#allocation2 + $0x28] sm:$0xff] %v454_v9  ;;  %v4646_v38 = vunpack.c.l.bf16 %v4742_v20  ;;  %v5371_v5 = vld [vmem:[%s7127_s3 + $0x168] sm:$0xff]  }
  0x1f   : > { %4768 = vmatprep.subr.bf16.mxu0 %v5362_v13  ;;  %5315 = vmatprep.subr.bf16.mxu1 %v5362_v13  ;;  %v4643_v13 = vunpack.c.h.bf16 %v4741_v1  ;;  %v386_v24 = vmul.f32 %v4595_v10, %v5562_v15  ;;  %487 = vst [vmem:[#allocation2 + $0x30] sm:$0xff] %v455_v14  ;;  %v1587_v29 = vpack.c.bf16 %v455_v14, %v454_v9  ;;  %v7207_v44 = vsel %vm5664_vm4, 4294967295, %v7206_v44  ;;  %v5377_v1 = vld [vmem:[%s7127_s3 + $0xa8] sm:$0xff]  }
  0x20   : > { %1923 = vmatprep.mubr.bf16.mxu1 %v1598_v60  ;;  %v409_v25 = vmul.f32 %v4642_v12, %v5562_v15  ;;  %510 = vst [vmem:[#allocation2 + $0xe8] sm:$0xff] %v478_v17  ;;  %v5651_v31 = vadd.f32 %v5576_v23, %v385_v18  ;;  %7208 = vst [vmem:[#allocation3_spill] sm:$0xff] %v7207_v44  ;;  %v388_v55 = vmul.f32 %v4599_v32, %v5562_v15  ;;  %v4732_v18 = vld [vmem:[%s5550_s29 + $0x28] sm:$0xff]  }
  0x21   : > { %v410_v26 = vmul.f32 %v4643_v13, %v5562_v15  ;;  %v425_v33 = vadd.f32 %v5576_v23, %v386_v24  ;;  %v4647_v57 = vunpack.c.h.bf16 %v4742_v20  ;;  %v411_v58 = vmul.f32 %v4646_v38, %v5562_v15 }
  0x22   : > { %4769 = vmatpush3.bf16.msra.mxu0 %v5363_v27  ;;  %5323 = vmatpush3.bf16.msra.mxu1 %v5363_v27  ;;  %v4598_v27 = vunpack.c.l.bf16 %v4730_v19  ;;  %v3902_v34 = vld [vmem:[#allocation2 + $0x17] sm:$0xff]  ;;  %v3903_v35 = vld [vmem:[#allocation2 + $0x1f] sm:$0xff]  ;;  %v5656_v36 = vadd.f32 %v5576_v23, %v409_v25  ;;  %vm5690_vm5 = vcmp.gt.s32.totalorder %v568_v40, 0  ;;  %v522_v60 = vadd.s32 32, %v5543_v11 }
  0x23   : > { %4770 = vmatprep.subr.bf16.mxu0 %v5364_v30  ;;  %5316 = vmatprep.subr.bf16.mxu1 %v5364_v30  ;;  %v479_v30 = vmax.f32 %v447_v16, 0.0  ;;  %v5659_v37 = vadd.f32 %v5576_v23, %v410_v26  ;;  %v4039_v39 = vpack.c.bf16 %v3903_v35, %v3902_v34  ;;  %v3927_v43 = vld [vmem:[#allocation2 + $0xdf] sm:$0xff]  ;;  %v5697_v62 = vadd.f32 %v5576_v23, %v388_v55  ;;  %vm5720_vm7 = vmpackc.low %vm7141_vm2, %vm5690_vm5 }
  0x24   : > { %v3926_v42 = vld [vmem:[#allocation2 + $0xd7] sm:$0xff]  ;;  %v387_v47 = vmul.f32 %v4598_v27, %v5562_v15  ;;  %v480_v52 = vmax.f32 %v5656_v36, 0.0  ;;  %v412_v22 = vmul.f32 %v4647_v57, %v5562_v15  ;;  %v5702_v40 = vadd.f32 %v5576_v23, %v411_v58  ;;  %v5372_v27 = vld [vmem:[%s7127_s3 + $0x160] sm:$0xff]  }
  0x25   : > { %511 = vst [vmem:[#allocation2 + $0xf0] sm:$0xff] %v479_v30  ;;  %v1599_v45 = vpack.c.bf16 %v479_v30, %v478_v17  ;;  %v4075_v48 = vpack.c.bf16 %v3927_v43, %v3926_v42  ;;  %v481_v53 = vmax.f32 %v5659_v37, 0.0  ;;  %v3904_v61 = vld [vmem:[#allocation2 + $0x27] sm:$0xff]  ;;  %vm5709_vm6 = vcmp.gt.s32.totalorder %v736_v63, 0 }
  0x26   : > { %4771 = vmatpush3.bf16.msra.mxu0 %v5365_v46  ;;  %5324 = vmatpush3.bf16.msra.mxu1 %v5365_v46  ;;  %v456_v46 = vmax.f32 %v5651_v31, 0.0  ;;  %v5683_v56 = vadd.f32 %v5576_v23, %v387_v47  ;;  %512 = vst [vmem:[#allocation2 + $0xf8] sm:$0xff] %v480_v52  ;;  %v546_v6 = vadd.s32 224, %v5543_v11  ;;  %v4602_v7 = vunpack.c.l.bf16 %v4731_v54  ;;  %vm5735_vm8 = vmpackc.low %vm7141_vm2, %vm5709_vm6  ;;  %v5381_v35 = vld [vmem:[%s7127_s3 + $0xa0] sm:$0xff]  }
  0x27   : > { %4772 = vmatprep.subr.bf16.mxu0 %v5366_v51  ;;  %5317 = vmatprep.subr.bf16.mxu1 %v5366_v51  ;;  %v457_v51 = vmax.f32 %v425_v33, 0.0  ;;  %513 = vst [vmem:[#allocation2 + $0x100] sm:$0xff] %v481_v53  ;;  %v3928_v4 = vld [vmem:[#allocation2 + $0xe7] sm:$0xff]  ;;  %v459_v63 = vmax.f32 %v5697_v62, 0.0  ;;  %v451_v10 = vadd.f32 %v5576_v23, %v412_v22  ;;  %v482_v12 = vmax.f32 %v5702_v40, 0.0 }
  0x28   : > { %488 = vst [vmem:[#allocation2 + $0x38] sm:$0xff] %v456_v46  ;;  %v458_v0 = vmax.f32 %v5683_v56, 0.0  ;;  %v389_v16 = vmul.f32 %v4602_v7, %v5562_v15  ;;  %v7215_v19 = vmov 0  ;;  %v1600_v24 = vpack.c.bf16 %v481_v53, %v480_v52  ;;  %v5375_v56 = vld [vmem:[%s7127_s3 + $0x150] sm:$0xff]  }
  0x29   : > { %489 = vst [vmem:[#allocation2 + $0x40] sm:$0xff] %v457_v51  ;;  %v1588_v14 = vpack.c.bf16 %v457_v51, %v456_v46  ;;  %v7216_v19 = vsel %vm5735_vm8, 4294967295, %v7215_v19  ;;  %v582_v25 = vand.u32 15, %v522_v60  ;;  %491 = vst [vmem:[#allocation2 + $0x50] sm:$0xff] %v459_v63  ;;  %v483_v26 = vmax.f32 %v451_v10, 0.0  ;;  %v4734_v10 = vld [vmem:[%s5550_s29 + $0x38] sm:$0xff]  }
  0x2a   : > { %4773 = vmatpush3.bf16.msra.mxu0 %v5367_v2  ;;  %5325 = vmatpush3.bf16.msra.mxu1 %v5367_v2  ;;  %v3905_v2 = vld [vmem:[#allocation2 + $0x2f] sm:$0xff]  ;;  %490 = vst [vmem:[#allocation2 + $0x48] sm:$0xff] %v458_v0  ;;  %7217 = vst [vmem:[#allocation4_spill] sm:$0xff] %v7216_v19  ;;  %v5743_v30 = vadd.f32 %v5576_v23, %v389_v16  ;;  %v524_v32 = vadd.s32 48, %v5543_v11  ;;  %v548_v34 = vadd.s32 240, %v5543_v11  ;;  %v4606_v33 = vunpack.c.l.bf16 %v4732_v18  ;;  %v3934_v16 = vld [vmem:[#allocation2 + $0x19] sm:$0xff] }
  0x2b   : > { %5166 = vmatprep.subr.bf16.mxu1 %v5628_v3  ;;  %5214 = vmatprep.subr.bf16.mxu0 %v5369_v8  ;;  %v4042_v41 = vpack.c.bf16 %v3905_v2, %v3904_v61  ;;  %514 = vst [vmem:[#allocation2 + $0x108] sm:$0xff] %v482_v12  ;;  %515 = vst [vmem:[#allocation2 + $0x110] sm:$0xff] %v483_v26  ;;  %vm5759_vm9 = vcmp.gt.s32.totalorder %v582_v25, 0  ;;  %v4607_v46 = vunpack.c.h.bf16 %v4732_v18  ;;  %v519_v52 = vadd.s32 8, %v5543_v11  ;;  %v5386_v2 = vld [vmem:[%s7127_s3 + $0x98] sm:$0xff]  }
  0x2c   : > { %v3929_v13 = vld [vmem:[#allocation2 + $0xef] sm:$0xff]  ;;  %v460_v38 = vmax.f32 %v5743_v30, 0.0  ;;  %v391_v47 = vmul.f32 %v4606_v33, %v5562_v15  ;;  %vm5784_vm11 = vmpackc.low %vm7141_vm2, %vm5759_vm9  ;;  %v1589_v58 = vpack.c.bf16 %v459_v63, %v458_v0  ;;  %v596_v59 = vand.u32 15, %v524_v32  ;;  %v5378_v30 = vld [vmem:[%s7127_s3 + $0x140] sm:$0xff]  }
  0x2d   : > { %4040 = vmatmul.mubr.msk.bf16.vlgmr.msra.gmra.mxu0 %vm5646_vm3, %v4039_v39  ;;  %4076 = vmatmul.mubr.msk.bf16.vlgmr.msra.gmra.mxu1 %vm5664_vm4, %v4075_v48  ;;  %v4078_v20 = vpack.c.bf16 %v3929_v13, %v3928_v4  ;;  %v3930_v43 = vld [vmem:[#allocation2 + $0xf7] sm:$0xff]  ;;  %v392_v53 = vmul.f32 %v4607_v46, %v5562_v15  ;;  %v764_v60 = vand.u32 15, %v548_v34  ;;  %v7224_v61 = vmov 0 }
  0x2e   : > { %5215 = vmatpush3.bf16.msra.mxu0 %v5369_v8  ;;  %5167 = vmatpush3.bf16.msra.mxu1 %v5628_v3  ;;  %v4603_v8 = vunpack.c.h.bf16 %v4731_v54  ;;  %492 = vst [vmem:[#allocation2 + $0x58] sm:$0xff] %v460_v38  ;;  %v5779_v54 = vadd.f32 %v5576_v23, %v391_v47  ;;  %v1601_v62 = vpack.c.bf16 %v483_v26, %v482_v12  ;;  %v561_v3 = vand.u32 15, %v519_v52 }
  0x2f   : > { %1835 = vmatprep.mubr.bf16.mxu0 %v1587_v29  ;;  %5168 = vmatprep.subr.bf16.mxu1 %v5370_v49  ;;  %v750_v29 = vand.u32 15, %v546_v6  ;;  %v3906_v36 = vld [vmem:[#allocation2 + $0x37] sm:$0xff]  ;;  %v5798_v22 = vadd.f32 %v5576_v23, %v392_v53  ;;  %vm5815_vm13 = vcmp.gt.s32.totalorder %v596_v59, 0  ;;  %vm5824_vm14 = vcmp.gt.s32.totalorder %v764_v60, 0 }
  0x30   : > { %1931 = vmatprep.mubr.bf16.mxu1 %v1599_v45  ;;  %5216 = vmatprep.subr.bf16.mxu0 %v5373_v50  ;;  %v390_v17 = vmul.f32 %v4603_v8, %v5562_v15  ;;  %v3907_v37 = vld [vmem:[#allocation2 + $0x3f] sm:$0xff]  ;;  %v462_v40 = vmax.f32 %v5779_v54, 0.0  ;;  %v521_v25 = vadd.s32 24, %v5543_v11  ;;  %v523_v26 = vadd.s32 40, %v5543_v11  ;;  %vm5843_vm15 = vmpackc.low %vm7141_vm2, %vm5815_vm13  ;;  %v5389_v59 = vld [vmem:[%s7127_s3 + $0x90] sm:$0xff]  }
  0x31   : > { %v3931_v45 = vld [vmem:[#allocation2 + $0xff] sm:$0xff]  ;;  %vm5764_vm10 = vcmp.gt.s32.totalorder %v750_v29, 0  ;;  %v4045_v51 = vpack.c.bf16 %v3907_v37, %v3906_v36  ;;  %v463_v4 = vmax.f32 %v5798_v22, 0.0  ;;  %v3908_v7 = vld [vmem:[#allocation2 + $0x47] sm:$0xff]  ;;  %v3909_v8 = vld [vmem:[#allocation2 + $0x4f] sm:$0xff]  ;;  %v7231_v32 = vmov 0 }
  0x32   : > { %5217 = vmatpush3.bf16.msra.mxu0 %v5373_v50  ;;  %5169 = vmatpush3.bf16.msra.mxu1 %v5370_v49  ;;  %v5746_v31 = vadd.f32 %v5576_v23, %v390_v17  ;;  %v5374_v49 = vld [vmem:[%s7127_s3 + $0x158] sm:$0xff]   ;;  %v4733_v50 = vld [vmem:[%s5550_s29 + $0x30] sm:$0xff]   ;;  %v4081_v57 = vpack.c.bf16 %v3931_v45, %v3930_v43  ;;  %vm5793_vm12 = vmpackc.low %vm7141_vm2, %vm5764_vm10  ;;  %494 = vst [vmem:[#allocation2 + $0x68] sm:$0xff] %v462_v40  ;;  %v526_v17 = vadd.s32 64, %v5543_v11  ;;  %v7232_v32 = vsel %vm5843_vm15, 4294967295, %v7231_v32 }
  0x33   : > { %5218 = vmatprep.subr.bf16.mxu0 %v5377_v1  ;;  %5170 = vmatprep.subr.bf16.mxu1 %v5371_v5  ;;  %v7225_v61 = vsel %vm5793_vm12, 4294967295, %v7224_v61  ;;  %v4611_v0 = vunpack.c.h.bf16 %v4733_v50  ;;  %v3932_v13 = vld [vmem:[#allocation2 + $0x107] sm:$0xff]  ;;  %495 = vst [vmem:[#allocation2 + $0x70] sm:$0xff] %v463_v4  ;;  %v4048_v34 = vpack.c.bf16 %v3909_v8, %v3908_v7  ;;  %vm5847_vm0 = vcmp.lt.s32.totalorder %v561_v3, 15  ;;  %vm5855_vm1 = vmpackc.low %vm7141_vm2, %vm5824_vm14  ;;  %v5380_v54 = vld [vmem:[%s7127_s3 + $0x38] sm:$0xff]  }
  0x34   : > { %v461_v39 = vmax.f32 %v5746_v31, 0.0  ;;  %7226 = vst [vmem:[#allocation5_spill] sm:$0xff] %v7225_v61  ;;  %v4735_v29 = vld [vmem:[%s5550_s29 + $0x40] sm:$0xff]   ;;  %v4615_v36 = vunpack.c.h.bf16 %v4734_v10  ;;  %v7235_v37 = vmov 0  ;;  %v3936_v45 = vld [vmem:[#allocation2 + $0x29] sm:$0xff]  ;;  %vm5876_vm5 = vmpackc.low %vm5847_vm0, %vm7141_vm2  ;;  %v4630_v60 = vunpack.c.l.bf16 %v5568_v21 }
  0x35   : > { %4043 = vmatmul.mubr.msk.bf16.gmra.mxu0 %vm5720_vm7, %v4042_v41  ;;  %4079 = vmatmul.mubr.msk.bf16.gmra.mxu1 %vm5735_vm8, %v4078_v20  ;;  %v5376_v41 = vld [vmem:[%s7127_s3 + $0x148] sm:$0xff]   ;;  %v394_v63 = vmul.f32 %v4611_v0, %v5562_v15  ;;  %v4614_v20 = vunpack.c.l.bf16 %v4734_v10  ;;  %v7236_v37 = vsel %vm5855_vm1, 4294967295, %v7235_v37  ;;  %v4618_v52 = vunpack.c.l.bf16 %v4735_v29  ;;  %v5379_v0 = vld [vmem:[%s7127_s3 + $0x78] sm:$0xff]  }
  0x36   : > { %1843 = vmatprep.mubr.bf16.mxu0 %v1588_v14  ;;  %5171 = vmatpush3.bf16.msra.mxu1 %v5371_v5  ;;  %493 = vst [vmem:[#allocation2 + $0x60] sm:$0xff] %v461_v39  ;;  %v3933_v14 = vld [vmem:[#allocation2 + $0x10f] sm:$0xff]  ;;  %7237 = vst [vmem:[#allocation6_spill] sm:$0xff] %v7236_v37  ;;  %v1590_v43 = vpack.c.bf16 %v461_v39, %v460_v38  ;;  %v575_v38 = vand.u32 15, %v521_v25  ;;  %v589_v39 = vand.u32 15, %v523_v26  ;;  %v3939_v3 = vld [vmem:[#allocation2 + $0x41] sm:$0xff]  ;;  %v4619_v7 = vunpack.c.h.bf16 %v4735_v29 }
  0x37   : > { %1939 = vmatprep.mubr.bf16.mxu1 %v1600_v24  ;;  %5172 = vmatprep.subr.bf16.mxu1 %v5372_v27  ;;  %v3935_v24 = vld [vmem:[#allocation2 + $0x21] sm:$0xff]  ;;  %v4084_v42 = vpack.c.bf16 %v3933_v14, %v3932_v13  ;;  %v395_v47 = vmul.f32 %v4614_v20, %v5562_v15  ;;  %v525_v10 = vadd.s32 56, %v5543_v11  ;;  %v4737_v14 = vld [vmem:[%s5550_s29 + $0x50] sm:$0xff]   ;;  %v527_v25 = vadd.s32 72, %v5543_v11 }
  0x38   : > { %5219 = vmatpush3.bf16.msra.mxu0 %v5377_v1  ;;  %v4610_v1 = vunpack.c.l.bf16 %v4733_v50  ;;  %v5865_v48 = vpack.c.bf16 %v3935_v24, %v3934_v16  ;;  %v3937_v50 = vld [vmem:[#allocation2 + $0x31] sm:$0xff]  ;;  %v4736_v8 = vld [vmem:[%s5550_s29 + $0x48] sm:$0xff]   ;;  %vm5918_vm9 = vcmp.lt.s32.totalorder %v575_v38, 15  ;;  %vm5922_vm10 = vcmp.lt.s32.totalorder %v589_v39, 15 }
  0x39   : > { %5220 = vmatprep.subr.bf16.mxu0 %v5381_v35  ;;  %v5883_v53 = vadd.f32 %v5576_v23, %v395_v47  ;;  %v4622_v20 = vunpack.c.l.bf16 %v4736_v8  ;;  %v4623_v29 = vunpack.c.h.bf16 %v4736_v8  ;;  %vm5955_vm14 = vmpackc.low %vm5918_vm9, %vm7141_vm2  ;;  %v5383_v38 = vld [vmem:[%s7127_s3 + $0x30] sm:$0xff]   ;;  %v617_v39 = vand.u32 15, %v527_v25  ;;  %v5394_v21 = vld [vmem:[%s7127_s3 + $0x88] sm:$0xff]  }
  0x3a   : > { %5173 = vmatpush3.bf16.msra.mxu1 %v5372_v27  ;;  %v393_v5 = vmul.f32 %v4610_v1, %v5562_v15  ;;  %v5837_v27 = vadd.f32 %v5576_v23, %v394_v63  ;;  %vm5973_vm0 = vmpackc.low %vm5922_vm10, %vm7141_vm2  ;;  %v3940_v8 = vld [vmem:[#allocation2 + $0x49] sm:$0xff]  ;;  %v3941_v63 = vld [vmem:[#allocation2 + $0x51] sm:$0xff] }
  0x3b   : > { %5174 = vmatprep.subr.bf16.mxu1 %v5374_v49  ;;  %v466_v6 = vmax.f32 %v5883_v53, 0.0  ;;  %v400_v47 = vmul.f32 %v4623_v29, %v5562_v15  ;;  %vm6033_vm10 = vcmp.lt.s32.totalorder %v617_v39, 15  ;;  %v7262_v39 = vmov 0  ;;  %v5392_v53 = vld [vmem:[%s7127_s3 + $0x50] sm:$0xff]   ;;  %v4262_v9 = vld [vmem:[#allocation2 + $0x68] sm:$0xff] }
  0x3c   : > { %5221 = vmatpush3.bf16.msra.mxu0 %v5381_v35  ;;  %v5832_v18 = vadd.f32 %v5576_v23, %v393_v5  ;;  %v465_v46 = vmax.f32 %v5837_v27, 0.0  ;;  %v528_v5 = vadd.s32 80, %v5543_v11  ;;  %v5946_v35 = vpack.c.bf16 %v463_v4, %v462_v40  ;;  %v5382_v4 = vld [vmem:[%s7127_s3 + $0x70] sm:$0xff]  }
  0x3d   : > { %4046 = vmatmul.mubr.msk.bf16.gmra.mxu0 %vm5784_vm11, %v4045_v51  ;;  %4082 = vmatmul.mubr.msk.bf16.gmra.mxu1 %vm5793_vm12, %v4081_v57  ;;  %v396_v51 = vmul.f32 %v4615_v36, %v5562_v15  ;;  %v3911_v1 = vld [vmem:[#allocation2 + $0x5f] sm:$0xff]  ;;  %498 = vst [vmem:[#allocation2 + $0x88] sm:$0xff] %v466_v6  ;;  %vm6077_vm12 = vmpackc.low %vm6033_vm10, %vm7141_vm2  ;;  %v4294_v55 = vld [vmem:[#allocation2 + $0x67] sm:$0xff] }
  0x3e   : > { %1851 = vmatprep.mubr.bf16.mxu0 %v1589_v58  ;;  %5175 = vmatpush3.bf16.msra.mxu1 %v5374_v49  ;;  %v464_v33 = vmax.f32 %v5832_v18, 0.0  ;;  %v610_v49 = vand.u32 15, %v526_v17  ;;  %497 = vst [vmem:[#allocation2 + $0x80] sm:$0xff] %v465_v46  ;;  %v397_v58 = vmul.f32 %v4618_v52, %v5562_v15  ;;  %v398_v17 = vmul.f32 %v4619_v7, %v5562_v15  ;;  %v3944_v7 = vld [vmem:[#allocation2 + $0x69] sm:$0xff] }
  0x3f   : > { %1947 = vmatprep.mubr.bf16.mxu1 %v1601_v62  ;;  %5176 = vmatprep.subr.bf16.mxu1 %v5375_v56  ;;  %v5888_v57 = vadd.f32 %v5576_v23, %v396_v51  ;;  %v3910_v62 = vld [vmem:[#allocation2 + $0x57] sm:$0xff]  ;;  %v624_v40 = vand.u32 15, %v528_v5  ;;  %v403_v5 = vmul.f32 %v4630_v60, %v5562_v15  ;;  %v7263_v39 = vsel %vm6077_vm12, 4294967295, %v7262_v39 }
  0x40   : > { %5222 = vmatprep.subr.bf16.mxu0 %v5386_v2  ;;  %496 = vst [vmem:[#allocation2 + $0x78] sm:$0xff] %v464_v33  ;;  %vm5908_vm6 = vcmp.gt.s32.totalorder %v610_v49, 0  ;;  %v5915_v13 = vadd.f32 %v5576_v23, %v397_v58  ;;  %v5929_v24 = vpack.c.bf16 %v3911_v1, %v3910_v62  ;;  %v5949_v36 = vadd.f32 %v5576_v23, %v398_v17  ;;  %v3912_v62 = vld [vmem:[#allocation2 + $0x67] sm:$0xff]  ;;  %v3913_v1 = vld [vmem:[#allocation2 + $0x6f] sm:$0xff] }
  0x41   : > { %5223 = vmatpush3.bf16.msra.mxu0 %v5386_v2  ;;  %v3938_v2 = vld [vmem:[#allocation2 + $0x39] sm:$0xff]  ;;  %v467_v12 = vmax.f32 %v5888_v57, 0.0  ;;  %vm5938_vm13 = vmpackc.low %vm7141_vm2, %vm5908_vm6  ;;  %v7250_v49 = vmov 0  ;;  %v5989_v58 = vadd.f32 %v5576_v23, %v400_v47  ;;  %vm6008_vm6 = vcmp.gt.s32.totalorder %v624_v40, 0  ;;  %v3943_v17 = vld [vmem:[#allocation2 + $0x61] sm:$0xff] }
  0x42   : > { %5177 = vmatpush3.bf16.msra.mxu1 %v5375_v56  ;;  %v5897_v56 = vpack.c.bf16 %v3937_v50, %v3936_v45  ;;  %5224 = vmatprep.subr.bf16.mxu0 %v5389_v59  ;;  %v468_v26 = vmax.f32 %v5915_v13, 0.0  ;;  %v5962_v22 = vpack.c.bf16 %v3939_v3, %v3938_v2  ;;  %v7251_v49 = vsel %vm5973_vm0, 4294967295, %v7250_v49  ;;  %v5397_v57 = vld [vmem:[%s7127_s3 + $0x80] sm:$0xff]  }
  0x43   : > { %5178 = vmatprep.subr.bf16.mxu1 %v5376_v41  ;;  %499 = vst [vmem:[#allocation2 + $0x90] sm:$0xff] %v467_v12  ;;  %v603_v50 = vand.u32 15, %v525_v10  ;;  %v469_v51 = vmax.f32 %v5949_v36, 0.0  ;;  %v529_v10 = vadd.s32 88, %v5543_v11  ;;  %v6029_v25 = vadd.f32 %v5576_v23, %v403_v5 }
  0x44   : > { %500 = vst [vmem:[#allocation2 + $0x98] sm:$0xff] %v468_v26  ;;  %v6031_v29 = vpack.c.bf16 %v3913_v1, %v3912_v62  ;;  %v7258_v40 = vmov 0  ;;  %v6056_v47 = vpack.c.bf16 %v465_v46, %v464_v33  ;;  %v5385_v33 = vld [vmem:[%s7127_s3 + $0x28] sm:$0xff]   ;;  %v532_v5 = vadd.s32 112, %v5543_v11 }
  0x45   : > { %4049 = vmatmul.mubr.msk.bf16.gmra.mxu0 %vm5843_vm15, %v4048_v34  ;;  %4085 = vmatmul.mubr.msk.bf16.gmra.mxu1 %vm5855_vm1, %v4084_v42  ;;  %v7246_v34 = vmov 0  ;;  %v399_v42 = vmul.f32 %v4622_v20, %v5562_v15  ;;  %501 = vst [vmem:[#allocation2 + $0xa0] sm:$0xff] %v469_v51  ;;  %vm6018_vm9 = vcmp.lt.s32.totalorder %v603_v50, 15  ;;  %v5384_v20 = vld [vmem:[%s7127_s3 + $0x68] sm:$0xff]   ;;  %vm6046_vm1 = vmpackc.low %vm7141_vm2, %vm6008_vm6  ;;  %v631_v27 = vand.u32 15, %v529_v10  ;;  %v5388_v10 = vld [vmem:[%s7127_s3 + $0x20] sm:$0xff]  }
  0x46   : > { %1859 = vmatprep.mubr.bf16.mxu0 %v1590_v43  ;;  %5179 = vmatpush3.bf16.msra.mxu1 %v5376_v41  ;;  %v7247_v34 = vsel %vm5938_vm13, 4294967295, %v7246_v34  ;;  %v4626_v43 = vunpack.c.l.bf16 %v4737_v14  ;;  %v3942_v41 = vld [vmem:[#allocation2 + $0x59] sm:$0xff]  ;;  %v7259_v40 = vsel %vm6046_vm1, 4294967295, %v7258_v40  ;;  %vm6064_vm6 = vmpackc.low %vm6018_vm9, %vm7141_vm2  ;;  %v535_v60 = vadd.s32 136, %v5543_v11 }
  0x47   : > { %5182 = vmatprep.mubr.msk.bf16.mxu1 %vm5876_vm5, %v5865_v48  ;;  %5180 = vmatprep.subr.bf16.mxu1 %v5378_v30  ;;  %v5979_v52 = vadd.f32 %v5576_v23, %v399_v42  ;;  %v6068_v18 = vpack.c.bf16 %v3943_v17, %v3942_v41  ;;  %v3914_v1 = vld [vmem:[#allocation2 + $0x77] sm:$0xff]  ;;  %vm977_vm10 = vcmp.lt.s32.totalorder %v631_v27, 15  ;;  %v7266_v17 = vmov 0 }
  0x48   : > { %5225 = vmatpush3.bf16.msra.mxu0 %v5389_v59  ;;  %v4627_v59 = vunpack.c.h.bf16 %v4737_v14  ;;  %v471_v14 = vmax.f32 %v5989_v58, 0.0  ;;  %v5390_v41 = vld [vmem:[%s7127_s3 + $0x58] sm:$0xff]   ;;  %v7268_v42 = vmov 0  ;;  %v652_v27 = vand.u32 15, %v532_v5  ;;  %v5393_v5 = vld [vmem:[%s7127_s3 + $0x10] sm:$0xff]  }
  0x49   : > { %v470_v2 = vmax.f32 %v5979_v52, 0.0  ;;  %5226 = vmatprep.subr.bf16.mxu0 %v5394_v21  ;;  %v7270_v62 = vmov 0  ;;  %v3957_v58 = vld [vmem:[#allocation2 + $0xd1] sm:$0xff] }
  0x4a   : > { %5181 = vmatpush3.bf16.msra.mxu1 %v5378_v30  ;;  %v401_v30 = vmul.f32 %v4626_v43, %v5562_v15  ;;  %v402_v16 = vmul.f32 %v4627_v59, %v5562_v15  ;;  %v531_v43 = vadd.s32 104, %v5543_v11  ;;  %503 = vst [vmem:[#allocation2 + $0xb0] sm:$0xff] %v471_v14 }
  0x4b   : > { %4894 = vmatprep.subr.bf16.mxu1 %v5379_v0  ;;  %v530_v0 = vadd.s32 96, %v5543_v11  ;;  %502 = vst [vmem:[#allocation2 + $0xa8] sm:$0xff] %v470_v2 }
  0x4c   : > { %v6000_v3 = vadd.f32 %v5576_v23, %v401_v30  ;;  %5227 = vmatpush3.bf16.msra.mxu0 %v5394_v21  ;;  %v7260_v30 = vmov 0  ;;  %v645_v59 = vand.u32 15, %v531_v43  ;;  %v3947_v21 = vld [vmem:[#allocation2 + $0x81] sm:$0xff] }
  0x4d   : > { %4052 = vmatmul.mubr.msk.bf16.gmra.mxu0 %vm5938_vm13, %v5929_v24  ;;  %5183 = vmatmul.mubr.msk.bf16.vlgmr.msra.gmra.mxu1 %vm5955_vm14, %v5897_v56  ;;  %v638_v50 = vand.u32 15, %v530_v0  ;;  %v7261_v30 = vsel %vm6064_vm6, 4294967295, %v7260_v30  ;;  %v3915_v0 = vld [vmem:[#allocation2 + $0x7f] sm:$0xff] }
  0x4e   : > { %1867 = vmatprep.mubr.bf16.mxu0 %v5946_v35  ;;  %4895 = vmatpush3.bf16.msra.mxu1 %v5380_v54  ;;  %v7155_v15 = vmax.f32 %v6000_v3, 0.0  ;;  %v6041_v54 = vadd.f32 %v5576_v23, %v402_v16  ;;  %v7147_v23 = vmax.f32 %v6029_v25, 0.0  ;;  %v3946_v16 = vld [vmem:[#allocation2 + $0x79] sm:$0xff]  ;;  %vm979_vm4 = vcmp.lt.s32.totalorder %v645_v59, 15 }
  0x4f   : > { %5186 = vmatprep.mubr.msk.bf16.mxu1 %vm5973_vm0, %v5962_v22  ;;  %4896 = vmatprep.subr.bf16.mxu1 %v5382_v4  ;;  %v6050_v4 = vpack.c.bf16 %v3941_v63, %v3940_v8  ;;  %vm6095_vm9 = vcmp.gt.s32.totalorder %v638_v50, 0  ;;  %v3945_v8 = vld [vmem:[#allocation2 + $0x71] sm:$0xff]  ;;  %v533_v63 = vadd.s32 120, %v5543_v11  ;;  %v6131_v50 = vpack.c.bf16 %v467_v12, %v466_v6  ;;  %v3916_v12 = vld [vmem:[#allocation2 + $0x87] sm:$0xff]  ;;  %v3919_v13 = vld [vmem:[#allocation2 + $0x9f] sm:$0xff] }
  0x50   : > { %504 = vst [vmem:[#allocation2 + $0xb8] sm:$0xff] %v7155_v15  ;;  %v7152_v46 = vmax.f32 %v6041_v54, 0.0  ;;  %506 = vst [vmem:[#allocation2 + $0xc8] sm:$0xff] %v7147_v23  ;;  %v6125_v43 = vpack.c.bf16 %v3945_v8, %v3944_v7  ;;  %v5391_v59 = vld [vmem:[%s7127_s3 + $0x18] sm:$0xff]   ;;  %v3948_v8 = vld [vmem:[#allocation2 + $0x89] sm:$0xff]  ;;  %5228 = vmatprep.subr.bf16.mxu0 %v5397_v57  ;;  %v539_v23 = vadd.s32 168, %v5543_v11 }
  0x51   : > { %vm6114_vm8 = vmpackc.low %vm7141_vm2, %vm6095_vm9  ;;  %5229 = vmatpush3.bf16.msra.mxu0 %v5397_v57  ;;  %v7281_v6 = vmov 0  ;;  %v5396_v7 = vld [vmem:[%s7127_s3 + $0x8] sm:$0xff]   ;;  %v7298_v61 = vmax.f32 %v6041_v54, 0.0 }
  0x52   : > { %4897 = vmatpush3.bf16.msra.mxu1 %v5383_v38  ;;  %v5387_v38 = vld [vmem:[%s7127_s3 + $0x60] sm:$0xff]   ;;  %505 = vst [vmem:[#allocation2 + $0xc0] sm:$0xff] %v7152_v46  ;;  %v7267_v17 = vsel %vm6114_vm8, 4294967295, %v7266_v17  ;;  %vm6139_vm9 = vmpackc.low %vm979_vm4, %vm7141_vm2  ;;  %vm6156_vm4 = vcmp.gt.s32.totalorder %v652_v27, 0  ;;  %v7277_v27 = vmov 0  ;;  %v3952_v36 = vld [vmem:[#allocation2 + $0xa9] sm:$0xff] }
  0x53   : > { %4898 = vmatprep.subr.bf16.mxu1 %v5384_v20  ;;  %v6118_v20 = vpack.c.bf16 %v3915_v0, %v3914_v1  ;;  %v7271_v62 = vsel %vm6139_vm9, 4294967295, %v7270_v62  ;;  %v673_v1 = vand.u32 15, %v535_v60  ;;  %v3917_v0 = vld [vmem:[#allocation2 + $0x8f] sm:$0xff]  ;;  %v3951_v60 = vld [vmem:[#allocation2 + $0xa1] sm:$0xff]  ;;  %v543_v46 = vadd.s32 200, %v5543_v11 }
  0x55   : > { %4055 = vmatmul.mubr.msk.bf16.gmra.mxu0 %vm6046_vm1, %v6031_v29  ;;  %5187 = vmatmul.mubr.msk.bf16.gmra.mxu1 %vm6064_vm6, %v6050_v4  ;;  %vm6121_vm1 = vmpackc.low %vm977_vm10, %vm7141_vm2  ;;  %vm983_vm2 = vcmp.lt.s32.totalorder %v673_v1, 15 }
  0x56   : > { %1875 = vmatprep.mubr.bf16.mxu0 %v6056_v47  ;;  %5190 = vmatprep.mubr.msk.bf16.mxu1 %vm6077_vm12, %v6068_v18  ;;  %v7269_v42 = vsel %vm6121_vm1, 4294967295, %v7268_v42 }
  0x57   : > { %4899 = vmatpush3.bf16.msra.mxu1 %v5385_v33  ;;  %v6133_v33 = vpack.c.bf16 %v3947_v21, %v3946_v16  ;;  %v534_v16 = vadd.s32 128, %v5543_v11  ;;  %v537_v21 = vadd.s32 152, %v5543_v11  ;;  %v3922_v54 = vld [vmem:[#allocation2 + $0xb7] sm:$0xff] }
  0x58   : > { %4900 = vmatprep.subr.bf16.mxu1 %v5387_v38  ;;  %v659_v38 = vand.u32 15, %v533_v63  ;;  %v3949_v63 = vld [vmem:[#allocation2 + $0x91] sm:$0xff] }
  0x59   : > { %v6192_v1 = vpack.c.bf16 %v3949_v63, %v3948_v8  ;;  %v3918_v8 = vld [vmem:[#allocation2 + $0x97] sm:$0xff] }
  0x5a   : > { %vm6166_vm10 = vcmp.lt.s32.totalorder %v659_v38, 15  ;;  %v6182_v38 = vpack.c.bf16 %v3917_v0, %v3916_v12  ;;  %v666_v12 = vand.u32 15, %v534_v16  ;;  %v687_v0 = vand.u32 15, %v537_v21  ;;  %v3953_v63 = vld [vmem:[#allocation2 + $0xb1] sm:$0xff]  ;;  %v3955_v16 = vld [vmem:[#allocation2 + $0xc1] sm:$0xff] }
  0x5b   : > { %4901 = vmatpush3.bf16.msra.mxu1 %v5388_v10  ;;  %v3950_v10 = vld [vmem:[#allocation2 + $0x99] sm:$0xff]  ;;  %v536_v21 = vadd.s32 144, %v5543_v11  ;;  %v6248_v15 = vpack.c.bf16 %v3953_v63, %v3952_v36  ;;  %v7291_v36 = vmov 0  ;;  %v538_v63 = vadd.s32 160, %v5543_v11 }
  0x5c   : > { %4902 = vmatprep.subr.bf16.mxu1 %v5390_v41  ;;  %v5395_v41 = vld [vmem:[%s7127_s3 + $0x48] sm:$0xff]   ;;  %v6205_v57 = vpack.c.bf16 %v3951_v60, %v3950_v10  ;;  %v5399_v60 = vld [vmem:[%s7127_s3] sm:$0xff]  }
  0x5d   : > { %4058 = vmatmul.mubr.msk.bf16.gmra.mxu0 %vm6114_vm8, %v6118_v20  ;;  %5191 = vmatmul.mubr.msk.bf16.gmra.mxu1 %vm6121_vm1, %v6125_v43  ;;  %vm7276_vm8 = vmmov 1   ;;  %v3956_v10 = vld [vmem:[#allocation2 + $0xc9] sm:$0xff]  ;;  %v694_v44 = vand.u32 15, %v538_v63  ;;  %v3923_v63 = vld [vmem:[#allocation2 + $0xbf] sm:$0xff] }
  0x5e   : > { %1883 = vmatprep.mubr.bf16.mxu0 %v6131_v50  ;;  %5194 = vmatprep.mubr.msk.bf16.mxu1 %vm6139_vm9, %v6133_v33  ;;  %vm6178_vm13 = vmpackc.low %vm7276_vm8, %vm6156_vm4  ;;  %v6291_v37 = vpack.c.bf16 %v3957_v58, %v3956_v10  ;;  %v6318_v10 = vld [vmem:[#allocation2 + $0xd0] sm:$0xff] }
  0x5f   : > { %4903 = vmatpush3.bf16.msra.mxu1 %v5391_v59  ;;  %v7278_v27 = vsel %vm6178_vm13, 4294967295, %v7277_v27  ;;  %vm6188_vm15 = vmpackc.low %vm6166_vm10, %vm7276_vm8  ;;  %v7279_v59 = vmov 0  ;;  %vm6226_vm10 = vcmp.lt.s32.totalorder %v687_v0, 15  ;;  %v6240_v0 = vpack.c.bf16 %v3919_v13, %v3918_v8  ;;  %7304 = vst [vmem:[#allocation12_spill] sm:$0xff] %v6318_v10 }
  0x60   : > { %4904 = vmatprep.subr.bf16.mxu1 %v5392_v53  ;;  %v7280_v59 = vsel %vm6188_vm15, 4294967295, %v7279_v59  ;;  %v6198_v53 = vpack.c.bf16 %v469_v51, %v468_v26  ;;  %vm6201_vm4 = vmpackc.low %vm983_vm2, %vm7276_vm8  ;;  %v5398_v26 = vld [vmem:[%s7127_s3 + $0x40] sm:$0xff]   ;;  %v701_v51 = vand.u32 15, %v539_v23  ;;  %vm950_vm2 = vcmp.gt.s32.totalorder %v666_v12, 0  ;;  %v6238_v12 = vld [vmem:[%s7127_s3 + $0x238] sm:$0xff]  }
  0x61   : > { %v7282_v6 = vsel %vm6201_vm4, 4294967295, %v7281_v6  ;;  %v3954_v23 = vld [vmem:[#allocation2 + $0xb9] sm:$0xff]  ;;  %7285 = vst [vmem:[#allocation7_spill] sm:$0xff] %v6240_v0  ;;  %v7289_v8 = vmov 0 }
  0x62   : > { %v6263_v13 = vpack.c.bf16 %v3955_v16, %v3954_v23  ;;  %v3958_v23 = vld [vmem:[#allocation2 + $0xd9] sm:$0xff]  ;;  %v3959_v16 = vld [vmem:[#allocation2 + $0xe1] sm:$0xff] }
  0x63   : > { %4905 = vmatpush3.bf16.msra.mxu1 %v5393_v5  ;;  %v5401_v5 = vld [vmem:[%s7127_s3 + $0x1f8] sm:$0xff]  }
  0x64   : > { %4906 = vmatprep.subr.bf16.mxu1 %v5395_v41  ;;  %v541_v41 = vadd.s32 184, %v5543_v11  ;;  %5030 = vmatprep.subr.bf16.mxu0 %v5401_v5  ;;  %v3921_v5 = vld [vmem:[#allocation2 + $0xaf] sm:$0xff] }
  0x65   : > { %4061 = vmatmul.mubr.msk.bf16.gmra.mxu0 %vm6178_vm13, %v6182_v38  ;;  %5195 = vmatmul.mubr.msk.bf16.gmra.mxu1 %vm6188_vm15, %v6192_v1  ;;  %vm987_vm13 = vcmp.lt.s32.totalorder %v701_v51, 15  ;;  %vm6259_vm15 = vmpackc.low %vm6226_vm10, %vm7276_vm8  ;;  %v680_v51 = vand.u32 15, %v536_v21  ;;  %v547_v21 = vadd.s32 232, %v5543_v11 }
  0x66   : > { %1891 = vmatprep.mubr.bf16.mxu0 %v6198_v53  ;;  %5198 = vmatprep.mubr.msk.bf16.mxu1 %vm6201_vm4, %v6205_v57  ;;  %vm6244_vm4 = vmpackc.low %vm7276_vm8, %vm950_vm2  ;;  %v7290_v8 = vsel %vm6259_vm15, 4294967295, %v7289_v8  ;;  %v715_v52 = vand.u32 15, %v541_v41  ;;  %v7294_v41 = vmov 0 }
  0x67   : > { %4907 = vmatpush3.bf16.msra.mxu1 %v5396_v7  ;;  %v7286_v7 = vmov 0  ;;  %vm6266_vm2 = vmpackc.low %vm987_vm13, %vm7276_vm8  ;;  %vm952_vm13 = vcmp.gt.s32.totalorder %v680_v51, 0  ;;  %v7297_v51 = vmax.f32 %v6000_v3, 0.0  ;;  %v757_v58 = vand.u32 15, %v547_v21  ;;  %v3961_v3 = vld [vmem:[#allocation2 + $0xf1] sm:$0xff]  ;;  %v3963_v21 = vld [vmem:[#allocation2 + $0x101] sm:$0xff] }
  0x68   : > { %4908 = vmatprep.subr.bf16.mxu1 %v5398_v26  ;;  %v7287_v7 = vsel %vm6244_vm4, 4294967295, %v7286_v7  ;;  %v6254_v26 = vpack.c.bf16 %v471_v14, %v470_v2  ;;  %v7292_v36 = vsel %vm6266_vm2, 4294967295, %v7291_v36  ;;  %v729_v2 = vand.u32 15, %v543_v46  ;;  %v3920_v14 = vld [vmem:[#allocation2 + $0xa7] sm:$0xff] }
  0x69   : > { %v545_v46 = vadd.s32 216, %v5543_v11  ;;  %vm989_vm10 = vcmp.lt.s32.totalorder %v715_v52, 15  ;;  %v6297_v19 = vpack.c.bf16 %v7298_v61, %v7297_v51  ;;  %v7300_v52 = vmov 0  ;;  %v3960_v61 = vld [vmem:[#allocation2 + $0xe9] sm:$0xff] }
  0x6a   : > { %7288 = vst [vmem:[#allocation8_spill] sm:$0xff] %v6254_v26  ;;  %v7305_v51 = vmov 0 }
  0x6b   : > { %4909 = vmatpush3.bf16.msra.mxu1 %v5399_v60  ;;  %v6284_v60 = vpack.c.bf16 %v3921_v5, %v3920_v14  ;;  %7299 = vst [vmem:[#allocation11_spill] sm:$0xff] %v6297_v19  ;;  %v743_v14 = vand.u32 15, %v545_v46  ;;  %v7302_v5 = vmov 0  ;;  %v3962_v46 = vld [vmem:[#allocation2 + $0xf9] sm:$0xff] }
  0x6c   : > { %5262 = vmatprep.subr.bf16.mxu1 %v6238_v12 }
  0x6d   : > { %4064 = vmatmul.mubr.msk.bf16.gmra.mxu0 %vm6244_vm4, %v6240_v0  ;;  %5199 = vmatmul.mubr.msk.bf16.gmra.mxu1 %vm6259_vm15, %v6248_v15  ;;  %7293 = vst [vmem:[#allocation9_spill] sm:$0xff] %v6284_v60  ;;  %vm991_vm4 = vcmp.lt.s32.totalorder %v729_v2, 15  ;;  %vm6287_vm15 = vmpackc.low %vm7276_vm8, %vm952_vm13  ;;  %v6304_v2 = vpack.c.bf16 %v3959_v16, %v3958_v23  ;;  %v540_v23 = vadd.s32 176, %v5543_v11  ;;  %v549_v16 = vadd.s32 248, %v5543_v11 }
  0x6e   : > { %1899 = vmatprep.mubr.bf16.mxu0 %v6254_v26  ;;  %5202 = vmatprep.mubr.msk.bf16.mxu1 %vm6266_vm2, %v6263_v13  ;;  %v7295_v41 = vsel %vm6287_vm15, 4294967295, %v7294_v41  ;;  %vm6300_vm2 = vmpackc.low %vm989_vm10, %vm7276_vm8  ;;  %vm954_vm10 = vcmp.gt.s32.totalorder %v694_v44, 0  ;;  %v6330_v44 = vpack.c.bf16 %v3923_v63, %v3922_v54  ;;  %v6337_v11 = vpack.c.bf16 %v3961_v3, %v3960_v61  ;;  %v3924_v63 = vld [vmem:[#allocation2 + $0xc7] sm:$0xff]  ;;  %v3839_v3 = vld [vmem:[#allocation2 + $0x11] sm:$0xff] }
  0x6f   : > { %7296 = vst [vmem:[#allocation10_spill] sm:$0xff] %v7295_v41  ;;  %v7301_v52 = vsel %vm6300_vm2, 4294967295, %v7300_v52  ;;  %vm6307_vm13 = vmpackc.low %vm991_vm4, %vm7276_vm8  ;;  %vm993_vm4 = vcmp.lt.s32.totalorder %v743_v14, 15  ;;  %v6349_v26 = vpack.c.bf16 %v3963_v21, %v3962_v46  ;;  %v708_v54 = vand.u32 15, %v540_v23  ;;  %v3925_v41 = vld [vmem:[#allocation2 + $0xcf] sm:$0xff] }
  0x70   : > { %v7303_v5 = vsel %vm6307_vm13, 4294967295, %v7302_v5  ;;  %7307 = vst [vmem:[#allocation13_spill] sm:$0xff] %v6330_v44  ;;  %vm6333_vm9 = vmpackc.low %vm993_vm4, %vm7276_vm8  ;;  %v771_v0 = vand.u32 15, %v549_v16  ;;  %v3964_v61 = vld [vmem:[#allocation2 + $0x109] sm:$0xff]  ;;  %v6361_v23 = vpack.c.bf16 %v3925_v41, %v3924_v63  ;;  %v3777_v63 = vld [vmem:[#allocation2 + $0x20] sm:$0xff] }
  0x71   : > { %v3807_v41 = vld [vmem:[#allocation2 + $0xf] sm:$0xff] }
  0x74   : > { %v7336_v28 = vld [vmem:[#allocation9_spill] sm:$0xff] }
  0x75   : > { %4067 = vmatmul.mubr.msk.bf16.gmra.mxu0 %vm6287_vm15, %v6284_v60  ;;  %5203 = vmatmul.mubr.msk.bf16.gmra.mxu1 %vm6300_vm2, %v6291_v37  ;;  %vm995_vm15 = vcmp.lt.s32.totalorder %v757_v58, 15  ;;  %vm6326_vm2 = vmpackc.low %vm7276_vm8, %vm954_vm10  ;;  %v7310_v60 = vmax.f32 %v6029_v25, 0.0  ;;  %v7312_v58 = vmov 0  ;;  %v3965_v25 = vld [vmem:[#allocation2 + $0x111] sm:$0xff]  ;;  %vm997_vm10 = vcmp.lt.s32.totalorder %v771_v0, 15  ;;  %v3806_v0 = vld [vmem:[#allocation2 + $0x7] sm:$0xff] }
  0x76   : > { %1907 = vmatprep.mubr.bf16.mxu0 %v6297_v19  ;;  %5206 = vmatprep.mubr.msk.bf16.mxu1 %vm6307_vm13, %v6304_v2  ;;  %v7306_v51 = vsel %vm6326_vm2, 4294967295, %v7305_v51  ;;  %vm6345_vm13 = vmpackc.low %vm995_vm15, %vm7276_vm8  ;;  %vm956_vm15 = vcmp.gt.s32.totalorder %v708_v54, 0  ;;  %v4132_v46 = vpack.c.bf16 %v3965_v25, %v3964_v61  ;;  %v3776_v54 = vld [vmem:[#allocation2 + $0x18] sm:$0xff]  ;;  %v4159_v61 = vpack.c.bf16 %v3807_v41, %v3806_v0  ;;  %v3778_v41 = vld [vmem:[#allocation2 + $0x28] sm:$0xff] }
  0x77   : > { %v6342_v14 = vpack.c.bf16 %v6318_v10, %v7310_v60  ;;  %v7313_v58 = vsel %vm6345_vm13, 4294967295, %v7312_v58  ;;  %v3838_v60 = vld [vmem:[#allocation2 + $0x9] sm:$0xff]  ;;  %vm6364_vm4 = vmpackc.low %vm7276_vm8, %vm956_vm15  ;;  %v7316_v10 = vmov 0  ;;  %v1325_v25 = vpack.c.bf16 %v3777_v63, %v3776_v54  ;;  %v3809_v0 = vld [vmem:[#allocation2 + $0x1f] sm:$0xff] }
  0x78   : > { %v4207_v21 = vpack.c.bf16 %v3839_v3, %v3838_v60  ;;  %v5403_v60 = vld [vmem:[%s7127_s3 + $0x1f0] sm:$0xff]   ;;  %v5410_v63 = vld [vmem:[%s7127_s3 + $0x228] sm:$0xff]   ;;  %vm7320_vm15 = vnez %v7280_v59 }
  0x79   : > { %7311 = vst [vmem:[#allocation14_spill] sm:$0xff] %v6342_v14  ;;  %v5405_v3 = vld [vmem:[%s7127_s3 + $0x230] sm:$0xff]  }
  0x7a   : > { %v3779_v54 = vld [vmem:[#allocation2 + $0x30] sm:$0xff] }
  0x7d   : > { %4070 = vmatmul.mubr.msk.bf16.gmra.mxu0 %vm6326_vm2, %v6330_v44  ;;  %5207 = vmatmul.mubr.msk.bf16.gmra.mxu1 %vm6333_vm9, %v6337_v11  ;;  %vm6369_vm2 = vmpackc.low %vm997_vm10, %vm7276_vm8  ;;  %vm7319_vm8 = vnez %v7271_v62  ;;  %vm7321_vm10 = vnez %v7232_v32 }
  0x7e   : > { %1915 = vmatprep.mubr.bf16.mxu0 %v6342_v14  ;;  %5210 = vmatprep.mubr.msk.bf16.mxu1 %vm6345_vm13, %v6349_v26  ;;  %v7317_v10 = vsel %vm6369_vm2, 4294967295, %v7316_v10  ;;  %v5424_v14 = vld [vmem:[#allocation2 + $0x10] sm:$0xff] }
  0x7f   : > { %7318 = vst [vmem:[#allocation15_spill] sm:$0xff] %v7317_v10  ;;  %v6373_v44 = vpack.c.bf16 %v5424_v14, %v5424_v14  ;;  %v5402_v14 = vld [vmem:[%s7127_s3 + $0x1b8] sm:$0xff]  }
  0x85   : > { %4073 = vmatmul.mubr.msk.bf16.gmra.mxu0 %vm6364_vm4, %v6361_v23  ;;  %5211 = vmatmul.mubr.msk.bf16.gmra.mxu1 %vm6369_vm2, %v4132_v46  ;;  %v5404_v46 = vld [vmem:[%s7127_s3 + $0x1b0] sm:$0xff]  }
  0x86   : > { %5230 = vmatprep.mubr.msk.bf16.mxu0 %vm5876_vm5, %v4207_v21  ;;  %2293 = vmatprep.mubr.bf16.mxu1 %v6373_v44  ;;  %v3808_v21 = vld [vmem:[#allocation2 + $0x17] sm:$0xff] }
  0x8d   : > { %5231 = vmatmul.mubr.msk.bf16.vlgmr.msra.gmra.mxu0 %vm5955_vm14, %v5865_v48  ;;  %4160 = vmatmul.mubr.msk.bf16.vlgmr.msra.gmra.mxu1 %vm5646_vm3, %v4159_v61  ;;  %v5406_v48 = vld [vmem:[%s7127_s3 + $0x1e8] sm:$0xff]   ;;  %v6410_v61 = vpack.c.bf16 %v3779_v54, %v3778_v41  ;;  %v5412_v54 = vld [vmem:[%s7127_s3 + $0x198] sm:$0xff]  }
  0x8e   : > { %5031 = vmatpush3.bf16.msra.mxu0 %v5402_v14  ;;  %5263 = vmatpush3.bf16.msra.mxu1 %v6238_v12  ;;  %v4162_v12 = vpack.c.bf16 %v3809_v0, %v3808_v21  ;;  %v5407_v14 = vld [vmem:[%s7127_s3 + $0x1a8] sm:$0xff]   ;;  %v3781_v21 = vld [vmem:[#allocation2 + $0x40] sm:$0xff]  ;;  %v5411_v0 = vld [vmem:[%s7127_s3 + $0x1d8] sm:$0xff]  }
  0x8f   : > { %2301 = vmatprep.mubr.bf16.mxu1 %v1325_v25  ;;  %5234 = vmatprep.mubr.msk.bf16.mxu0 %vm5973_vm0, %v5897_v56  ;;  %v5408_v56 = vld [vmem:[%s7127_s3 + $0x1e0] sm:$0xff]   ;;  %vm7328_vm0 = vnez %v7303_v5 }
  0x90   : > { %5032 = vmatprep.subr.bf16.mxu0 %v5403_v60  ;;  %5264 = vmatprep.subr.bf16.mxu1 %v5405_v3  ;;  %v5415_v25 = vld [vmem:[%s7127_s3 + $0x220] sm:$0xff]  }
  0x91   : > { %v3810_v60 = vld [vmem:[#allocation2 + $0x27] sm:$0xff] }
  0x92   : > { %5033 = vmatpush3.bf16.msra.mxu0 %v5404_v46  ;;  %5265 = vmatpush3.bf16.msra.mxu1 %v5405_v3  ;;  %v3811_v3 = vld [vmem:[#allocation2 + $0x2f] sm:$0xff]  ;;  %v3780_v46 = vld [vmem:[#allocation2 + $0x38] sm:$0xff] }
  0x93   : > { %5034 = vmatprep.subr.bf16.mxu0 %v5406_v48  ;;  %5266 = vmatprep.subr.bf16.mxu1 %v5410_v63  ;;  %v6439_v48 = vpack.c.bf16 %v3811_v3, %v3810_v60  ;;  %v6441_v41 = vpack.c.bf16 %v3781_v21, %v3780_v46  ;;  %v3783_v60 = vld [vmem:[#allocation2 + $0x50] sm:$0xff]  ;;  %v5416_v3 = vld [vmem:[%s7127_s3 + $0x1c8] sm:$0xff]  }
  0x94   : > { %v5417_v21 = vld [vmem:[%s7127_s3 + $0x188] sm:$0xff]  }
  0x95   : > { %5235 = vmatmul.mubr.msk.bf16.gmra.mxu0 %vm6064_vm6, %v5962_v22  ;;  %4163 = vmatmul.mubr.msk.bf16.gmra.mxu1 %vm5720_vm7, %v4162_v12  ;;  %v5409_v22 = vld [vmem:[%s7127_s3 + $0x1a0] sm:$0xff]   ;;  %v5421_v12 = vld [vmem:[%s7127_s3 + $0x210] sm:$0xff]   ;;  %vm7327_vm6 = vnez %v7259_v40  ;;  %v3804_v40 = vld [vmem:[#allocation2 + $0xf8] sm:$0xff] }
  0x96   : > { %5238 = vmatprep.mubr.msk.bf16.mxu0 %vm6077_vm12, %v6050_v4  ;;  %2309 = vmatprep.mubr.bf16.mxu1 %v6410_v61  ;;  %v5420_v4 = vld [vmem:[%s7127_s3 + $0x218] sm:$0xff]   ;;  %vm7326_vm12 = vnez %v7301_v52 }
  0x97   : > { %5035 = vmatpush3.bf16.msra.mxu0 %v5407_v14  ;;  %5267 = vmatpush3.bf16.msra.mxu1 %v5410_v63  ;;  %v5413_v63 = vld [vmem:[%s7127_s3 + $0x1d0] sm:$0xff]  }
  0x98   : > { %5036 = vmatprep.subr.bf16.mxu0 %v5408_v56  ;;  %5268 = vmatprep.subr.bf16.mxu1 %v5415_v25  ;;  %v3812_v14 = vld [vmem:[#allocation2 + $0x37] sm:$0xff]  ;;  %v3813_v56 = vld [vmem:[#allocation2 + $0x3f] sm:$0xff] }
  0x9b   : > { %5037 = vmatpush3.bf16.msra.mxu0 %v5409_v22  ;;  %5269 = vmatpush3.bf16.msra.mxu1 %v5415_v25  ;;  %v3782_v25 = vld [vmem:[#allocation2 + $0x48] sm:$0xff]  ;;  %v4168_v22 = vpack.c.bf16 %v3813_v56, %v3812_v14  ;;  %v3785_v14 = vld [vmem:[#allocation2 + $0x60] sm:$0xff] }
  0x9c   : > { %5038 = vmatprep.subr.bf16.mxu0 %v5411_v0  ;;  %5270 = vmatprep.subr.bf16.mxu1 %v5420_v4  ;;  %v1328_v46 = vpack.c.bf16 %v3783_v60, %v3782_v25  ;;  %v5418_v0 = vld [vmem:[%s7127_s3 + $0x1c0] sm:$0xff]   ;;  %v7341_v60 = vld [vmem:[#allocation3_spill] sm:$0xff] }
  0x9d   : > { %5239 = vmatmul.mubr.msk.bf16.gmra.mxu0 %vm6121_vm1, %v6068_v18  ;;  %4166 = vmatmul.mubr.msk.bf16.gmra.mxu1 %vm5784_vm11, %v6439_v48  ;;  %v5414_v18 = vld [vmem:[%s7127_s3 + $0x190] sm:$0xff]   ;;  %vm7325_vm1 = vnez %v7292_v36 }
  0x9e   : > { %5242 = vmatprep.mubr.msk.bf16.mxu0 %vm7319_vm8, %v6125_v43  ;;  %2317 = vmatprep.mubr.bf16.mxu1 %v6441_v41  ;;  %v5422_v43 = vld [vmem:[%s7127_s3 + $0x208] sm:$0xff]   ;;  %vm7322_vm8 = vnez %v7282_v6 }
  0x9f   : > { %5039 = vmatpush3.bf16.msra.mxu0 %v5412_v54  ;;  %5271 = vmatpush3.bf16.msra.mxu1 %v5420_v4  ;;  %v5423_v4 = vld [vmem:[%s7127_s3 + $0x200] sm:$0xff]  }
  0xa0   : > { %5040 = vmatprep.subr.bf16.mxu0 %v5413_v63  ;;  %5272 = vmatprep.subr.bf16.mxu1 %v5421_v12  ;;  %v3814_v54 = vld [vmem:[#allocation2 + $0x47] sm:$0xff]  ;;  %v3815_v63 = vld [vmem:[#allocation2 + $0x4f] sm:$0xff] }
  0xa1   : > { %v4171_v56 = vpack.c.bf16 %v3815_v63, %v3814_v54 }
  0xa3   : > { %5041 = vmatpush3.bf16.msra.mxu0 %v5414_v18  ;;  %5273 = vmatpush3.bf16.msra.mxu1 %v5421_v12  ;;  %v3784_v12 = vld [vmem:[#allocation2 + $0x58] sm:$0xff] }
  0xa4   : > { %5042 = vmatprep.subr.bf16.mxu0 %v5416_v3  ;;  %5274 = vmatprep.subr.bf16.mxu1 %v5422_v43  ;;  %v1329_v18 = vpack.c.bf16 %v3785_v14, %v3784_v12  ;;  %v3832_v3 = vld [vmem:[#allocation2 + $0xd7] sm:$0xff] }
  0xa5   : > { %5243 = vmatmul.mubr.msk.bf16.gmra.mxu0 %vm7320_vm15, %v6133_v33  ;;  %4169 = vmatmul.mubr.msk.bf16.gmra.mxu1 %vm7321_vm10, %v4168_v22  ;;  %v5419_v33 = vld [vmem:[%s7127_s3 + $0x180] sm:$0xff]   ;;  %vm7324_vm15 = vnez %v7247_v34  ;;  %v3802_v34 = vld [vmem:[#allocation2 + $0xe8] sm:$0xff] }
  0xa6   : > { %5246 = vmatprep.mubr.msk.bf16.mxu0 %vm7322_vm8, %v6192_v1  ;;  %2325 = vmatprep.mubr.bf16.mxu1 %v1328_v46  ;;  %vm7323_vm8 = vnez %v7290_v8  ;;  %v7339_v1 = vld [vmem:[#allocation13_spill] sm:$0xff] }
  0xa7   : > { %5043 = vmatpush3.bf16.msra.mxu0 %v5417_v21  ;;  %5275 = vmatpush3.bf16.msra.mxu1 %v5422_v43  ;;  %v4296_v43 = vld [vmem:[#allocation2 + $0x77] sm:$0xff]  ;;  %v3833_v21 = vld [vmem:[#allocation2 + $0xdf] sm:$0xff] }
  0xa8   : > { %5044 = vmatprep.subr.bf16.mxu0 %v5418_v0  ;;  %5276 = vmatprep.subr.bf16.mxu1 %v5423_v4  ;;  %v4266_v0 = vld [vmem:[#allocation2 + $0x88] sm:$0xff] }
  0xab   : > { %5045 = vmatpush3.bf16.msra.mxu0 %v5419_v33  ;;  %5277 = vmatpush3.bf16.msra.mxu1 %v5423_v4  ;;  %v4267_v4 = vld [vmem:[#allocation2 + $0x90] sm:$0xff] }
  0xac   : > { %v3803_v33 = vld [vmem:[#allocation2 + $0xf0] sm:$0xff] }
  0xad   : > { %5247 = vmatmul.mubr.msk.bf16.gmra.mxu0 %vm7323_vm8, %v6205_v57  ;;  %4172 = vmatmul.mubr.msk.bf16.gmra.mxu1 %vm7324_vm15, %v4171_v56  ;;  %v7340_v57 = vld [vmem:[#allocation14_spill] sm:$0xff] }
  0xae   : > { %5250 = vmatprep.mubr.msk.bf16.mxu0 %vm7325_vm1, %v6248_v15  ;;  %2333 = vmatprep.mubr.bf16.mxu1 %v1329_v18  ;;  %vm7329_vm1 = vnez %v7267_v17  ;;  %v4292_v15 = vld [vmem:[#allocation2 + $0x57] sm:$0xff]  ;;  %v4318_v17 = vld [vmem:[#allocation2 + $0x29] sm:$0xff] }
  0xb5   : > { %5251 = vmatmul.mubr.msk.bf16.gmra.mxu0 %vm7326_vm12, %v6263_v13  ;;  %4175 = vmatmul.mubr.msk.bf16.gmra.mxu1 %vm7327_vm6, %v5929_v24  ;;  %v7333_v24 = vld [vmem:[#allocation10_spill] sm:$0xff]  ;;  %v4265_v13 = vld [vmem:[#allocation2 + $0x80] sm:$0xff] }
  0xb6   : > { %5254 = vmatprep.mubr.msk.bf16.mxu0 %vm7328_vm0, %v6291_v37  ;;  %2341 = vmatprep.mubr.bf16.mxu1 %v5946_v35  ;;  %vm7330_vm0 = vnez %v7278_v27  ;;  %v7332_v37 = vld [vmem:[#allocation7_spill] sm:$0xff]  ;;  %v7335_v35 = vld [vmem:[#allocation8_spill] sm:$0xff] }
  0xb7   : > { %v4322_v27 = vld [vmem:[#allocation2 + $0x49] sm:$0xff] }
  0xbd   : > { %5255 = vmatmul.mubr.msk.bf16.gmra.mxu0 %vm6333_vm9, %v6304_v2  ;;  %4178 = vmatmul.mubr.msk.bf16.gmra.mxu1 %vm7329_vm1, %v6031_v29  ;;  %v4293_v29 = vld [vmem:[#allocation2 + $0x5f] sm:$0xff] }
  0xbe   : > { %5258 = vmatprep.mubr.msk.bf16.mxu0 %vm6345_vm13, %v6337_v11  ;;  %2349 = vmatprep.mubr.bf16.mxu1 %v6056_v47  ;;  %vm7331_vm13 = vnez %v7287_v7  ;;  %v7338_v47 = vld [vmem:[#allocation11_spill] sm:$0xff]  ;;  %v3800_v2 = vld [vmem:[#allocation2 + $0xd8] sm:$0xff]  ;;  %v3801_v11 = vld [vmem:[#allocation2 + $0xe0] sm:$0xff] }
  0xbf   : > { %v4327_v7 = vld [vmem:[#allocation2 + $0x71] sm:$0xff] }
  0xc5   : > { %5259 = vmatmul.mubr.msk.bf16.gmra.mxu0 %vm6369_vm2, %v6349_v26  ;;  %4181 = vmatmul.mubr.msk.bf16.gmra.mxu1 %vm7330_vm0, %v6118_v20  ;;  %vm7334_vm2 = vnez %v7333_v24  ;;  %v4263_v20 = vld [vmem:[#allocation2 + $0x70] sm:$0xff]  ;;  %v4264_v26 = vld [vmem:[#allocation2 + $0x78] sm:$0xff] }
  0xc6   : > { %3022 = vmatprep.mubr.bf16.mxu0 %v6410_v61  ;;  %2357 = vmatprep.mubr.bf16.mxu1 %v6131_v50  ;;  %v4432_v50 = vpack.c.bf16 %v4293_v29, %v4292_v15  ;;  %v6567_v15 = vpack.c.bf16 %v3803_v33, %v3802_v34 }
  0xcd   : > { %4424 = vmatmul.mubr.msk.bf16.vlgmr.msra.gmra.mxu0 %vm5646_vm3, %v6439_v48  ;;  %4184 = vmatmul.mubr.msk.bf16.gmra.mxu1 %vm7331_vm13, %v6182_v38  ;;  %vm7337_vm3 = vnez %v7306_v51  ;;  %v2785_v38 = vpack.c.bf16 %v4263_v20, %v4262_v9  ;;  %v2786_v48 = vpack.c.bf16 %v4265_v13, %v4264_v26  ;;  %v3835_v13 = vld [vmem:[#allocation2 + $0xef] sm:$0xff] }
  0xce   : > { %3030 = vmatprep.mubr.bf16.mxu0 %v6441_v41  ;;  %2365 = vmatprep.mubr.bf16.mxu1 %v6198_v53  ;;  %v4295_v53 = vld [vmem:[#allocation2 + $0x6f] sm:$0xff]  ;;  %v6553_v41 = vpack.c.bf16 %v3801_v11, %v3800_v2  ;;  %v4268_v2 = vld [vmem:[#allocation2 + $0x98] sm:$0xff]  ;;  %v4269_v11 = vld [vmem:[#allocation2 + $0xa0] sm:$0xff] }
  0xcf   : > { %v4435_v61 = vpack.c.bf16 %v4295_v53, %v4294_v55  ;;  %v3834_v55 = vld [vmem:[#allocation2 + $0xe7] sm:$0xff] }
  0xd0   : > { %v4298_v53 = vld [vmem:[#allocation2 + $0x87] sm:$0xff] }
  0xd5   : > { %4427 = vmatmul.mubr.msk.bf16.gmra.mxu0 %vm5720_vm7, %v4168_v22  ;;  %4187 = vmatmul.mubr.msk.bf16.gmra.mxu1 %vm7334_vm2, %v7332_v37  ;;  %vm7342_vm7 = vnez %v7341_v60  ;;  %v4297_v22 = vld [vmem:[#allocation2 + $0x7f] sm:$0xff]  ;;  %v6565_v37 = vpack.c.bf16 %v3833_v21, %v3832_v3  ;;  %v2788_v21 = vpack.c.bf16 %v4269_v11, %v4268_v2  ;;  %v4342_v60 = vld [vmem:[#allocation2 + $0xe9] sm:$0xff] }
  0xd6   : > { %3038 = vmatprep.mubr.bf16.mxu0 %v1328_v46  ;;  %2373 = vmatprep.mubr.bf16.mxu1 %v7335_v35  ;;  %v2787_v35 = vpack.c.bf16 %v4267_v4, %v4266_v0 }
  0xdd   : > { %4430 = vmatmul.mubr.msk.bf16.gmra.mxu0 %vm5784_vm11, %v4171_v56  ;;  %4190 = vmatmul.mubr.msk.bf16.gmra.mxu1 %vm7337_vm3, %v7336_v28  ;;  %v4438_v56 = vpack.c.bf16 %v4297_v22, %v4296_v43 }
  0xde   : > { %3046 = vmatprep.mubr.bf16.mxu0 %v1329_v18  ;;  %2381 = vmatprep.mubr.bf16.mxu1 %v7338_v47 }
  0xe5   : > { %4433 = vmatmul.mubr.msk.bf16.gmra.mxu0 %vm7321_vm10, %v4432_v50  ;;  %4193 = vmatmul.mubr.msk.bf16.gmra.mxu1 %vm6364_vm4, %v7339_v1  ;;  %vm7359_vm10 = vnez %v7282_v6 }
  0xe6   : > { %3054 = vmatprep.mubr.bf16.mxu0 %v2785_v38  ;;  %2389 = vmatprep.mubr.bf16.mxu1 %v7340_v57  ;;  %v7344_v38 = vld [vmem:[#allocation4_spill] sm:$0xff]  ;;  %v4299_v57 = vld [vmem:[#allocation2 + $0x8f] sm:$0xff] }
  0xe7   : > { %vm7345_vm11 = vnez %v7344_v38  ;;  %v4441_v43 = vpack.c.bf16 %v4299_v57, %v4298_v53  ;;  %v4271_v53 = vld [vmem:[#allocation2 + $0xb0] sm:$0xff] }
  0xe8   : > { %v4347_v38 = vld [vmem:[#allocation2 + $0x111] sm:$0xff] }
  0xed   : > { %v4774_v25 = vpop.f32.mrf.mxu0  ;;  %4436 = vmatmul.mubr.msk.bf16.gmra.mxu0 %vm7324_vm15, %v4435_v61  ;;  %v4846_v32 = vpop.f32.mrf.mxu1  ;;  %4196 = vmatmul.mubr.msk.bf16.gmra.mxu1 %vm7342_vm7, %v6361_v23  ;;  %vm7358_vm15 = vnez %v7280_v59 }
  0xee   : > { %3062 = vmatprep.mubr.bf16.mxu0 %v2786_v48  ;;  %2397 = vmatprep.mubr.bf16.mxu1 %v6553_v41 }
  0xef   : > { %v4775_v46 = vpop.f32.mrf.mxu0  ;;  %v4847_v63 = vpop.f32.mrf.mxu1 }
  0xf0   : > { %v6561_v54 = vadd.f32 %v4775_v46, %v4774_v25  ;;  %v6563_v12 = vadd.f32 %v4847_v63, %v4846_v32  ;;  %v3805_v25 = vld [vmem:[#allocation2 + $0x100] sm:$0xff]  ;;  %v6583_v46 = vpack.c.bf16 %v3835_v13, %v3834_v55  ;;  %v4270_v55 = vld [vmem:[#allocation2 + $0xa8] sm:$0xff]  ;;  %v4319_v13 = vld [vmem:[#allocation2 + $0x31] sm:$0xff] }
  0xf1   : > { %v4777_v14 = vpop.f32.mrf.mxu0  ;;  %v4849_v18 = vpop.f32.mrf.mxu1  ;;  %v6585_v4 = vpack.c.bf16 %v3805_v25, %v3804_v40 }
  0xf3   : > { %v4778_v28 = vpop.f32.mrf.mxu0  ;;  %v4850_v47 = vpop.f32.mrf.mxu1 }
  0xf4   : > { %v6569_v29 = vadd.f32 %v4778_v28, %v4777_v14  ;;  %v6571_v9 = vadd.f32 %v4850_v47, %v4849_v18  ;;  %v7346_v18 = vld [vmem:[#allocation5_spill] sm:$0xff]  ;;  %v4300_v28 = vld [vmem:[#allocation2 + $0x97] sm:$0xff] }
  0xf5   : > { %v4780_v20 = vpop.f32.mrf.mxu0  ;;  %4439 = vmatmul.mubr.msk.bf16.gmra.mxu0 %vm7327_vm6, %v4438_v56  ;;  %v4852_v50 = vpop.f32.mrf.mxu1  ;;  %4199 = vmatmul.mubr.msk.bf16.gmra.mxu1 %vm7345_vm11, %v6565_v37  ;;  %vm7347_vm6 = vnez %v7346_v18  ;;  %v4301_v47 = vld [vmem:[#allocation2 + $0x9f] sm:$0xff] }
  0xf6   : > { %7343 = vst [vmem:[#allocation7_spill] sm:$0xff] %v6571_v9  ;;  %3070 = vmatprep.mubr.bf16.mxu0 %v2787_v35  ;;  %2405 = vmatprep.mubr.bf16.mxu1 %v6567_v15  ;;  %v3836_v35 = vld [vmem:[#allocation2 + $0xf7] sm:$0xff]  ;;  %v4349_v18 = vld [vmem:[#allocation2 + $0x121] sm:$0xff] }
  0xf7   : > { %v4781_v26 = vpop.f32.mrf.mxu0  ;;  %v4853_v48 = vpop.f32.mrf.mxu1 }
  0xf8   : > { %v6579_v61 = vadd.f32 %v4781_v26, %v4780_v20  ;;  %v6581_v32 = vadd.f32 %v4853_v48, %v4852_v50  ;;  %v3837_v50 = vld [vmem:[#allocation2 + $0xff] sm:$0xff]  ;;  %v4444_v48 = vpack.c.bf16 %v4301_v47, %v4300_v28  ;;  %v4303_v28 = vld [vmem:[#allocation2 + $0xaf] sm:$0xff] }
  0xf9   : > { %v4783_v3 = vpop.f32.mrf.mxu0  ;;  %v4855_v22 = vpop.f32.mrf.mxu1  ;;  %v6601_v25 = vpack.c.bf16 %v3837_v50, %v3836_v35  ;;  %v4302_v35 = vld [vmem:[#allocation2 + $0xa7] sm:$0xff]  ;;  %v4320_v47 = vld [vmem:[#allocation2 + $0x39] sm:$0xff] }
  0xfb   : > { %v4784_v0 = vpop.f32.mrf.mxu0  ;;  %v4856_v34 = vpop.f32.mrf.mxu1 }
  0xfc   : > { %v6587_v63 = vadd.f32 %v4784_v0, %v4783_v3  ;;  %v6589_v33 = vadd.f32 %v4856_v34, %v4855_v22  ;;  %v2789_v3 = vpack.c.bf16 %v4271_v53, %v4270_v55  ;;  %v4471_v22 = vpack.c.bf16 %v4319_v13, %v4318_v17  ;;  %v4321_v55 = vld [vmem:[#allocation2 + $0x41] sm:$0xff]  ;;  %v4272_v53 = vld [vmem:[#allocation2 + $0xb8] sm:$0xff] }
  0xfd   : > { %v4786_v14 = vpop.f32.mrf.mxu0  ;;  %4442 = vmatmul.mubr.msk.bf16.gmra.mxu0 %vm7329_vm1, %v4441_v43  ;;  %v4858_v56 = vpop.f32.mrf.mxu1  ;;  %4202 = vmatmul.mubr.msk.bf16.gmra.mxu1 %vm7347_vm6, %v6583_v46 }
  0xfe   : > { %3078 = vmatprep.mubr.bf16.mxu0 %v2788_v21  ;;  %2413 = vmatprep.mubr.bf16.mxu1 %v6585_v4 }
  0xff   : > { %v4787_v20 = vpop.f32.mrf.mxu0  ;;  %v4859_v26 = vpop.f32.mrf.mxu1 }
 0x100   : > { %v6597_v57 = vadd.f32 %v4787_v20, %v4786_v14  ;;  %v6599_v2 = vadd.f32 %v4859_v26, %v4858_v56  ;;  %v7350_v56 = vld [vmem:[#allocation6_spill] sm:$0xff]  ;;  %v4273_v26 = vld [vmem:[#allocation2 + $0xc0] sm:$0xff] }
 0x101   : > { %v4789_v11 = vpop.f32.mrf.mxu0  ;;  %v4861_v40 = vpop.f32.mrf.mxu1  ;;  %vm7351_vm1 = vnez %v7350_v56 }
 0x102   : > { %7348 = vst [vmem:[#allocation10_spill] sm:$0xff] %v6599_v2 }
 0x103   : > { %v4790_v43 = vpop.f32.mrf.mxu0  ;;  %v4862_v0 = vpop.f32.mrf.mxu1 }
 0x104   : > { %v6603_v21 = vadd.f32 %v4790_v43, %v4789_v11  ;;  %v6605_v34 = vadd.f32 %v4862_v0, %v4861_v40  ;;  %v4323_v11 = vld [vmem:[#allocation2 + $0x51] sm:$0xff]  ;;  %v4447_v43 = vpack.c.bf16 %v4303_v28, %v4302_v35  ;;  %v4325_v28 = vld [vmem:[#allocation2 + $0x61] sm:$0xff] }
 0x105   : > { %v4792_v14 = vpop.f32.mrf.mxu0  ;;  %4445 = vmatmul.mubr.msk.bf16.gmra.mxu0 %vm7330_vm0, %v4444_v48  ;;  %v4864_v20 = vpop.f32.mrf.mxu1  ;;  %4205 = vmatmul.mubr.msk.bf16.gmra.mxu1 %vm7351_vm1, %v6601_v25  ;;  %v4477_v10 = vpack.c.bf16 %v4323_v11, %v4322_v27  ;;  %vm7355_vm0 = vnez %v7263_v39 }
 0x106   : > { %7349 = vst [vmem:[#allocation8_spill] sm:$0xff] %v6605_v34  ;;  %3086 = vmatprep.mubr.bf16.mxu0 %v2789_v3  ;;  %5278 = vmatprep.mubr.msk.bf16.mxu1 %vm5876_vm5, %v4471_v22  ;;  %v4474_v3 = vpack.c.bf16 %v4321_v55, %v4320_v47  ;;  %v2790_v34 = vpack.c.bf16 %v4273_v26, %v4272_v53  ;;  %vm7352_vm5 = vnez %v7251_v49  ;;  %v4326_v55 = vld [vmem:[#allocation2 + $0x69] sm:$0xff] }
 0x107   : > { %v4793_v50 = vpop.f32.mrf.mxu0  ;;  %v4865_v13 = vpop.f32.mrf.mxu1 }
 0x108   : > { %v4794_v17 = vadd.f32 %v4793_v50, %v4792_v14  ;;  %v6614_v48 = vadd.f32 %v4865_v13, %v4864_v20  ;;  %v7353_v13 = vld [vmem:[#allocation12_spill] sm:$0xff] }
 0x109   : > { %v4795_v40 = vpop.f32.mrf.mxu0  ;;  %v4867_v0 = vpop.f32.mrf.mxu1 }
 0x10b   : > { %v4796_v2 = vpop.f32.mrf.mxu0  ;;  %v4868_v9 = vpop.f32.mrf.mxu1 }
 0x10c   : > { %v4797_v56 = vadd.f32 %v4796_v2, %v4795_v40  ;;  %v6616_v31 = vadd.f32 %v4868_v9, %v4867_v0  ;;  %v4324_v2 = vld [vmem:[#allocation2 + $0x59] sm:$0xff]  ;;  %v4274_v9 = vld [vmem:[#allocation2 + $0xc8] sm:$0xff] }
 0x10d   : > { %v4798_v22 = vpop.f32.mrf.mxu0  ;;  %4448 = vmatmul.mubr.msk.bf16.gmra.mxu0 %vm7331_vm13, %v4447_v43  ;;  %v5184_v14 = vpop.f32.mrf.mxu1  ;;  %5279 = vmatmul.mubr.msk.bf16.vlgmr.msra.gmra.mxu1 %vm5955_vm14, %v4474_v3  ;;  %vm7354_vm14 = vnez %v7261_v30  ;;  %vm7357_vm13 = vnez %v7271_v62 }
 0x10e   : > { %3094 = vmatprep.mubr.bf16.mxu0 %v2790_v34  ;;  %v6623_v20 = vadd.f32 %v5184_v14, %v6579_v61  ;;  %5282 = vmatprep.mubr.msk.bf16.mxu1 %vm7352_vm5, %v4477_v10  ;;  %v4480_v34 = vpack.c.bf16 %v4325_v28, %v4324_v2  ;;  %v2791_v61 = vpack.c.bf16 %v7353_v13, %v4274_v9  ;;  %v4329_v14 = vld [vmem:[#allocation2 + $0x81] sm:$0xff]  ;;  %v4330_v2 = vld [vmem:[#allocation2 + $0x89] sm:$0xff]  ;;  %v4331_v28 = vld [vmem:[#allocation2 + $0x91] sm:$0xff] }
 0x10f   : > { %v4799_v35 = vpop.f32.mrf.mxu0  ;;  %v1990_v50 = vpop.f32.mrf.mxu1  ;;  %v4483_v10 = vpack.c.bf16 %v4327_v7, %v4326_v55  ;;  %v4489_v55 = vpack.c.bf16 %v4331_v28, %v4330_v2  ;;  %v4332_v13 = vld [vmem:[#allocation2 + $0x99] sm:$0xff]  ;;  %v4337_v28 = vld [vmem:[#allocation2 + $0xc1] sm:$0xff] }
 0x110   : > { %v4800_v47 = vadd.f32 %v4799_v35, %v4798_v22  ;;  %v6628_v53 = vadd.f32 %v6561_v54, %v1990_v50  ;;  %v4328_v22 = vld [vmem:[#allocation2 + $0x79] sm:$0xff] }
 0x111   : > { %v4801_v45 = vpop.f32.mrf.mxu0  ;;  %v5185_v26 = vpop.f32.mrf.mxu1  ;;  %v4486_v30 = vpack.c.bf16 %v4329_v14, %v4328_v22  ;;  %v4336_v2 = vld [vmem:[#allocation2 + $0xb9] sm:$0xff] }
 0x112   : > { %v6632_v27 = vadd.f32 %v5185_v26, %v6587_v63  ;;  %v4498_v59 = vpack.c.bf16 %v4337_v28, %v4336_v2  ;;  %v4314_v28 = vld [vmem:[#allocation2 + $0x107] sm:$0xff] }
 0x113   : > { %v4802_v49 = vpop.f32.mrf.mxu0  ;;  %v1993_v40 = vpop.f32.mrf.mxu1 }
 0x114   : > { %v4803_v11 = vadd.f32 %v4802_v49, %v4801_v45  ;;  %v6635_v43 = vadd.f32 %v6569_v29, %v1993_v40  ;;  %v4335_v40 = vld [vmem:[#allocation2 + $0xb1] sm:$0xff] }
 0x115   : > { %v4804_v0 = vpop.f32.mrf.mxu0  ;;  %4451 = vmatmul.mubr.msk.bf16.gmra.mxu0 %vm7334_vm2, %v7339_v1  ;;  %v5188_v54 = vpop.f32.mrf.mxu1  ;;  %5283 = vmatmul.mubr.msk.bf16.gmra.mxu1 %vm7354_vm14, %v4480_v34  ;;  %vm7356_vm2 = vnez %v7269_v42 }
 0x116   : > { %3102 = vmatprep.mubr.bf16.mxu0 %v2791_v61  ;;  %v6642_v3 = vadd.f32 %v5188_v54, %v4794_v17  ;;  %5286 = vmatprep.mubr.msk.bf16.mxu1 %vm7355_vm0, %v4483_v10  ;;  %v4334_v10 = vld [vmem:[#allocation2 + $0xa9] sm:$0xff] }
 0x117   : > { %v4805_v63 = vpop.f32.mrf.mxu0  ;;  %v2006_v35 = vpop.f32.mrf.mxu1 }
 0x118   : > { %v4806_v29 = vadd.f32 %v4805_v63, %v4804_v0  ;;  %v6647_v24 = vadd.f32 %v6597_v57, %v2006_v35  ;;  %v4495_v63 = vpack.c.bf16 %v4335_v40, %v4334_v10  ;;  %v4282_v10 = vld [vmem:[#allocation2 + $0x108] sm:$0xff]  ;;  %v4283_v40 = vld [vmem:[#allocation2 + $0x110] sm:$0xff] }
 0x119   : > { %v4807_v1 = vpop.f32.mrf.mxu0  ;;  %v5189_v9 = vpop.f32.mrf.mxu1 }
 0x11a   : > { %v6649_v50 = vadd.f32 %v5189_v9, %v4797_v56  ;;  %v4338_v9 = vld [vmem:[#allocation2 + $0xc9] sm:$0xff] }
 0x11b   : > { %v4808_v17 = vpop.f32.mrf.mxu0  ;;  %v2009_v45 = vpop.f32.mrf.mxu1 }
 0x11c   : > { %v4809_v7 = vadd.f32 %v4808_v17, %v4807_v1  ;;  %v6652_v39 = vadd.f32 %v6603_v21, %v2009_v45  ;;  %v4333_v21 = vld [vmem:[#allocation2 + $0xa1] sm:$0xff] }
 0x11d   : > { %v4810_v26 = vpop.f32.mrf.mxu0  ;;  %4454 = vmatmul.mubr.msk.bf16.gmra.mxu0 %vm7337_vm3, %v6361_v23  ;;  %v5192_v34 = vpop.f32.mrf.mxu1  ;;  %5287 = vmatmul.mubr.msk.bf16.gmra.mxu1 %vm7356_vm2, %v4486_v30  ;;  %v4492_v42 = vpack.c.bf16 %v4333_v21, %v4332_v13  ;;  %v4339_v30 = vld [vmem:[#allocation2 + $0xd1] sm:$0xff]  ;;  %v4340_v21 = vld [vmem:[#allocation2 + $0xd9] sm:$0xff] }
 0x11e   : > { %3110 = vmatprep.mubr.bf16.mxu0 %v6553_v41  ;;  %v6660_v57 = vadd.f32 %v5192_v34, %v4806_v29  ;;  %5290 = vmatprep.mubr.msk.bf16.mxu1 %vm7357_vm13, %v4489_v55  ;;  %v4501_v45 = vpack.c.bf16 %v4339_v30, %v4338_v9  ;;  %v4344_v9 = vld [vmem:[#allocation2 + $0xf9] sm:$0xff]  ;;  %v4345_v30 = vld [vmem:[#allocation2 + $0x101] sm:$0xff] }
 0x11f   : > { %v4811_v56 = vpop.f32.mrf.mxu0  ;;  %v2022_v49 = vpop.f32.mrf.mxu1  ;;  %v4510_v52 = vpack.c.bf16 %v4345_v30, %v4344_v9  ;;  %v7365_v9 = vld [vmem:[#allocation15_spill] sm:$0xff] }
 0x120   : > { %v4812_v61 = vadd.f32 %v4811_v56, %v4810_v26  ;;  %v6664_v51 = vadd.f32 %v4800_v47, %v2022_v49  ;;  %v4341_v49 = vld [vmem:[#allocation2 + $0xe1] sm:$0xff] }
 0x121   : > { %v4813_v23 = vpop.f32.mrf.mxu0  ;;  %v5193_v0 = vpop.f32.mrf.mxu1  ;;  %v4504_v8 = vpack.c.bf16 %v4341_v49, %v4340_v21 }
 0x122   : > { %v6666_v54 = vadd.f32 %v5193_v0, %v4809_v7 }
 0x123   : > { %v4814_v41 = vpop.f32.mrf.mxu0  ;;  %v2025_v14 = vpop.f32.mrf.mxu1 }
 0x124   : > { %v4815_v22 = vadd.f32 %v4814_v41, %v4813_v23  ;;  %v6668_v29 = vadd.f32 %v4803_v11, %v2025_v14 }
 0x125   : > { %v4816_v62 = vpop.f32.mrf.mxu0  ;;  %4457 = vmatmul.mubr.msk.bf16.gmra.mxu0 %vm6364_vm4, %v6565_v37  ;;  %v5196_v35 = vpop.f32.mrf.mxu1  ;;  %5291 = vmatmul.mubr.msk.bf16.gmra.mxu1 %vm7358_vm15, %v4492_v42  ;;  %vm7360_vm4 = vnez %v7292_v36 }
 0x126   : > { %3118 = vmatprep.mubr.bf16.mxu0 %v6567_v15  ;;  %5294 = vmatprep.mubr.msk.bf16.mxu1 %vm7359_vm10, %v4495_v63 }
 0x127   : > { %v4817_v47 = vpop.f32.mrf.mxu0  ;;  %v2038_v11 = vpop.f32.mrf.mxu1 }
 0x128   : > { %v4818_v1 = vadd.f32 %v4817_v47, %v4816_v62  ;;  %v6678_v17 = vadd.f32 %v4812_v61, %v2038_v11 }
 0x129   : > { %v4819_v16 = vpop.f32.mrf.mxu0  ;;  %v5197_v55 = vpop.f32.mrf.mxu1 }
 0x12a   : > { %v6680_v37 = vadd.f32 %v5196_v35, %v4818_v1  ;;  %v4315_v1 = vld [vmem:[#allocation2 + $0x10f] sm:$0xff] }
 0x12b   : > { %v4820_v7 = vpop.f32.mrf.mxu0  ;;  %v2041_v26 = vpop.f32.mrf.mxu1 }
 0x12c   : > { %v4821_v15 = vadd.f32 %v4820_v7, %v4819_v16  ;;  %v6682_v34 = vadd.f32 %v4815_v22, %v2041_v26  ;;  %v2795_v22 = vpack.c.bf16 %v4283_v40, %v4282_v10  ;;  %v4465_v7 = vpack.c.bf16 %v4315_v1, %v4314_v28  ;;  %v4317_v40 = vld [vmem:[#allocation2 + $0x11f] sm:$0xff] }
 0x12d   : > { %v4822_v6 = vpop.f32.mrf.mxu0  ;;  %4460 = vmatmul.mubr.msk.bf16.gmra.mxu0 %vm7342_vm7, %v6583_v46  ;;  %v5200_v13 = vpop.f32.mrf.mxu1  ;;  %5295 = vmatmul.mubr.msk.bf16.gmra.mxu1 %vm7323_vm8, %v4498_v59  ;;  %v4343_v46 = vld [vmem:[#allocation2 + $0xf1] sm:$0xff]  ;;  %vm7361_vm8 = vnez %v7303_v5  ;;  %v4346_v59 = vld [vmem:[#allocation2 + $0x109] sm:$0xff] }
 0x12e   : > { %v6687_v56 = vadd.f32 %v5197_v55, %v4821_v15  ;;  %3126 = vmatprep.mubr.bf16.mxu0 %v6585_v4  ;;  %5298 = vmatprep.mubr.msk.bf16.mxu1 %vm7360_vm4, %v4501_v45  ;;  %v4507_v4 = vpack.c.bf16 %v4343_v46, %v4342_v60  ;;  %v4348_v60 = vld [vmem:[#allocation2 + $0x119] sm:$0xff] }
 0x12f   : > { %v4823_v61 = vpop.f32.mrf.mxu0  ;;  %v2054_v0 = vpop.f32.mrf.mxu1 }
 0x130   : > { %v4824_v23 = vadd.f32 %v4823_v61, %v4822_v6  ;;  %v4513_v6 = vpack.c.bf16 %v4347_v38, %v4346_v59  ;;  %v7367_v59 = vld [vmem:[#allocation10_spill] sm:$0xff] }
 0x131   : > { %v4825_v42 = vpop.f32.mrf.mxu0  ;;  %v5201_v63 = vpop.f32.mrf.mxu1 }
 0x132   : > { %v6694_v41 = vadd.f32 %v4824_v23, %v2054_v0 }
 0x133   : > { %v4826_v14 = vpop.f32.mrf.mxu0  ;;  %v2057_v35 = vpop.f32.mrf.mxu1 }
 0x134   : > { %v4827_v62 = vadd.f32 %v4826_v14, %v4825_v42  ;;  %v4516_v14 = vpack.c.bf16 %v4349_v18, %v4348_v60 }
 0x135   : > { %v4828_v47 = vpop.f32.mrf.mxu0  ;;  %4463 = vmatmul.mubr.msk.bf16.gmra.mxu0 %vm7345_vm11, %v6601_v25  ;;  %v5204_v2 = vpop.f32.mrf.mxu1  ;;  %5299 = vmatmul.mubr.msk.bf16.gmra.mxu1 %vm7326_vm12, %v4504_v8  ;;  %vm7362_vm12 = vnez %v7313_v58 }
 0x136   : > { %v6699_v36 = vadd.f32 %v4827_v62, %v2057_v35  ;;  %3134 = vmatprep.mubr.bf16.mxu0 %v2795_v22  ;;  %5302 = vmatprep.mubr.msk.bf16.mxu1 %vm7361_vm8, %v4507_v4  ;;  %v7363_v35 = vld [vmem:[#allocation7_spill] sm:$0xff] }
 0x137   : > { %v4829_v11 = vpop.f32.mrf.mxu0  ;;  %v2070_v55 = vpop.f32.mrf.mxu1 }
 0x138   : > { %v4830_v16 = vadd.f32 %v4829_v11, %v4828_v47 }
 0x139   : > { %v4831_v25 = vpop.f32.mrf.mxu0  ;;  %v5205_v15 = vpop.f32.mrf.mxu1 }
 0x13a   : > { %v6705_v45 = vadd.f32 %v5200_v13, %v4830_v16  ;;  %v4316_v13 = vld [vmem:[#allocation2 + $0x117] sm:$0xff] }
 0x13b   : > { %v4832_v26 = vpop.f32.mrf.mxu0  ;;  %v2073_v61 = vpop.f32.mrf.mxu1  ;;  %v4468_v8 = vpack.c.bf16 %v4317_v40, %v4316_v13 }
 0x13c   : > { %v4833_v21 = vadd.f32 %v4832_v26, %v4831_v25 }
 0x13d   : > { %v4834_v49 = vpop.f32.mrf.mxu0  ;;  %4466 = vmatmul.mubr.msk.bf16.gmra.mxu0 %vm7347_vm6, %v4465_v7  ;;  %v5208_v10 = vpop.f32.mrf.mxu1  ;;  %5303 = vmatmul.mubr.msk.bf16.gmra.mxu1 %vm6333_vm9, %v4510_v52  ;;  %vm7366_vm9 = vnez %v7365_v9 }
 0x13e   : > { %v6709_v5 = vadd.f32 %v5201_v63, %v4833_v21  ;;  %3142 = vmatprep.mubr.bf16.mxu0 %v6373_v44  ;;  %v6715_v23 = vadd.f32 %v5208_v10, %v6581_v32  ;;  %5306 = vmatprep.mubr.msk.bf16.mxu1 %vm7362_vm12, %v4513_v6 }
 0x13f   : > { %v4835_v0 = vpop.f32.mrf.mxu0  ;;  %v2086_v42 = vpop.f32.mrf.mxu1 }
 0x140   : > { %v4836_v46 = vadd.f32 %v4835_v0, %v4834_v49  ;;  %v6720_v63 = vadd.f32 %v6563_v12, %v2086_v42  ;;  %v7369_v49 = vld [vmem:[#allocation8_spill] sm:$0xff] }
 0x141   : > { %v4837_v19 = vpop.f32.mrf.mxu0  ;;  %v5209_v44 = vpop.f32.mrf.mxu1 }
 0x142   : > { %v6722_v22 = vadd.f32 %v4836_v46, %v2070_v55  ;;  %v6725_v32 = vadd.f32 %v5209_v44, %v6589_v33 }
 0x143   : > { %v4838_v4 = vpop.f32.mrf.mxu0  ;;  %v2089_v58 = vpop.f32.mrf.mxu1 }
 0x144   : > { %v4839_v62 = vadd.f32 %v4838_v4, %v4837_v19  ;;  %v6728_v47 = vadd.f32 %v7363_v35, %v2089_v58 }
 0x145   : > { %v4840_v28 = vpop.f32.mrf.mxu0  ;;  %4469 = vmatmul.mubr.msk.bf16.gmra.mxu0 %vm7351_vm1, %v4468_v8  ;;  %v5212_v11 = vpop.f32.mrf.mxu1  ;;  %5307 = vmatmul.mubr.msk.bf16.gmra.mxu1 %vm7366_vm9, %v4516_v14 }
 0x146   : > { %v6732_v12 = vadd.f32 %v4839_v62, %v2073_v61  ;;  %v6737_v30 = vadd.f32 %v5212_v11, %v6614_v48 }
 0x147   : > { %v4841_v33 = vpop.f32.mrf.mxu0  ;;  %v2102_v55 = vpop.f32.mrf.mxu1 }
 0x148   : > { %v4842_v16 = vadd.f32 %v4841_v33, %v4840_v28  ;;  %v6740_v38 = vadd.f32 %v7367_v59, %v2102_v55 }
 0x149   : > { %v4843_v25 = vpop.f32.mrf.mxu0  ;;  %v5213_v52 = vpop.f32.mrf.mxu1 }
 0x14a   : > { %v6742_v7 = vadd.f32 %v5204_v2, %v4842_v16  ;;  %v6745_v26 = vadd.f32 %v5213_v52, %v6616_v31 }
 0x14b   : > { %v4844_v6 = vpop.f32.mrf.mxu0  ;;  %v2105_v61 = vpop.f32.mrf.mxu1 }
 0x14c   : > { %7368 = vst [vmem:[#allocation9_spill] sm:$0xff] %v6745_v26  ;;  %v4845_v21 = vadd.f32 %v4844_v6, %v4843_v25  ;;  %v6748_v10 = vadd.f32 %v7369_v49, %v2105_v61 }
 0x14d   : > { %v5232_v48 = vpop.f32.mrf.mxu0  ;;  %v4910_v40 = vpop.f32.mrf.mxu1 }
 0x14e   : > { %v6750_v13 = vadd.f32 %v5205_v15, %v4845_v21 }
 0x14f   : > { %v2456_v0 = vpop.f32.mrf.mxu0  ;;  %v4911_v60 = vpop.f32.mrf.mxu1 }
 0x150   : > { %v4912_v18 = vadd.f32 %v4911_v60, %v4910_v40 }
 0x151   : > { %v5233_v46 = vpop.f32.mrf.mxu0  ;;  %v4913_v2 = vpop.f32.mrf.mxu1 }
 0x152   : > { %v2296_v42 = vadd.f32 %v4912_v18, %v6628_v53 }
 0x153   : > { %v2459_v19 = vpop.f32.mrf.mxu0  ;;  %v4914_v31 = vpop.f32.mrf.mxu1 }
 0x154   : > { %v6753_v8 = vadd.f32 %v2456_v0, %v2296_v42  ;;  %v4915_v44 = vadd.f32 %v4914_v31, %v4913_v2 }
 0x155   : > { %v5236_v14 = vpop.f32.mrf.mxu0  ;;  %v4916_v4 = vpop.f32.mrf.mxu1 }
 0x156   : > { %v2299_v62 = vadd.f32 %v4915_v44, %v6635_v43 }
 0x157   : > { %v2472_v58 = vpop.f32.mrf.mxu0  ;;  %v4917_v15 = vpop.f32.mrf.mxu1 }
 0x158   : > { %v6756_v35 = vadd.f32 %v2459_v19, %v2299_v62  ;;  %v4918_v28 = vadd.f32 %v4917_v15, %v4916_v4 }
 0x159   : > { %v5237_v1 = vpop.f32.mrf.mxu0  ;;  %v4919_v11 = vpop.f32.mrf.mxu1 }
 0x15a   : > { %v2304_v9 = vadd.f32 %v4918_v28, %v6623_v20 }
 0x15b   : > { %v2475_v33 = vpop.f32.mrf.mxu0  ;;  %v4920_v53 = vpop.f32.mrf.mxu1 }
 0x15c   : > { %v4921_v16 = vadd.f32 %v4920_v53, %v4919_v11  ;;  %v6759_v59 = vadd.f32 %v5232_v48, %v2304_v9 }
 0x15d   : > { %v5240_v55 = vpop.f32.mrf.mxu0  ;;  %v4922_v25 = vpop.f32.mrf.mxu1 }
 0x15e   : > { %v2307_v52 = vadd.f32 %v4921_v16, %v6632_v27 }
 0x15f   : > { %v2488_v6 = vpop.f32.mrf.mxu0  ;;  %v4923_v43 = vpop.f32.mrf.mxu1 }
 0x160   : > { %v4924_v21 = vadd.f32 %v4923_v43, %v4922_v25  ;;  %v6762_v49 = vadd.f32 %v5233_v46, %v2307_v52 }
 0x161   : > { %v5241_v61 = vpop.f32.mrf.mxu0  ;;  %v4925_v40 = vpop.f32.mrf.mxu1 }
 0x162   : > { %v2312_v0 = vadd.f32 %v4924_v21, %v6647_v24 }
 0x163   : > { %v2491_v60 = vpop.f32.mrf.mxu0  ;;  %v4926_v20 = vpop.f32.mrf.mxu1 }
 0x164   : > { %v4927_v18 = vadd.f32 %v4926_v20, %v4925_v40  ;;  %v6767_v42 = vadd.f32 %v2472_v58, %v2312_v0 }
 0x165   : > { %v6765_v2 = vpop.f32.mrf.mxu0  ;;  %v4928_v48 = vpop.f32.mrf.mxu1 }
 0x166   : > { %v2315_v19 = vadd.f32 %v4927_v18, %v6652_v39 }
 0x167   : > { %v2504_v27 = vpop.f32.mrf.mxu0  ;;  %v4929_v31 = vpop.f32.mrf.mxu1 }
 0x168   : > { %v4930_v44 = vadd.f32 %v4929_v31, %v4928_v48  ;;  %v6772_v46 = vadd.f32 %v2475_v33, %v2315_v19 }
 0x169   : > { %v6770_v4 = vpop.f32.mrf.mxu0  ;;  %v4931_v62 = vpop.f32.mrf.mxu1 }
 0x16a   : > { %v2320_v24 = vadd.f32 %v4930_v44, %v6642_v3 }
 0x16b   : > { %v2507_v15 = vpop.f32.mrf.mxu0  ;;  %v4932_v28 = vpop.f32.mrf.mxu1 }
 0x16c   : > { %v4933_v11 = vadd.f32 %v4932_v28, %v4931_v62  ;;  %v6777_v58 = vadd.f32 %v5236_v14, %v2320_v24 }
 0x16d   : > { %v6775_v9 = vpop.f32.mrf.mxu0  ;;  %v4934_v53 = vpop.f32.mrf.mxu1 }
 0x16e   : > { %v2323_v39 = vadd.f32 %v4933_v11, %v6649_v50 }
 0x16f   : > { %v6780_v16 = vpop.f32.mrf.mxu0  ;;  %v4935_v25 = vpop.f32.mrf.mxu1 }
 0x170   : > { %v4936_v52 = vadd.f32 %v4935_v25, %v4934_v53  ;;  %v6784_v33 = vadd.f32 %v5237_v1, %v2323_v39 }
 0x171   : > { %v6782_v43 = vpop.f32.mrf.mxu0  ;;  %v4937_v21 = vpop.f32.mrf.mxu1 }
 0x172   : > { %v2328_v3 = vadd.f32 %v4936_v52, %v6664_v51 }
 0x173   : > { %v6787_v40 = vpop.f32.mrf.mxu0  ;;  %v4938_v0 = vpop.f32.mrf.mxu1 }
 0x174   : > { %v4939_v20 = vadd.f32 %v4938_v0, %v4937_v21  ;;  %v6791_v18 = vadd.f32 %v2488_v6, %v2328_v3 }
 0x175   : > { %v6789_v14 = vpop.f32.mrf.mxu0  ;;  %v4940_v50 = vpop.f32.mrf.mxu1 }
 0x176   : > { %v2331_v48 = vadd.f32 %v4939_v20, %v6668_v29 }
 0x177   : > { %v6794_v19 = vpop.f32.mrf.mxu0  ;;  %v4941_v31 = vpop.f32.mrf.mxu1 }
 0x178   : > { %v4942_v44 = vadd.f32 %v4941_v31, %v4940_v50  ;;  %v6798_v62 = vadd.f32 %v2491_v60, %v2331_v48 }
 0x179   : > { %v6796_v1 = vpop.f32.mrf.mxu0  ;;  %v4943_v51 = vpop.f32.mrf.mxu1 }
 0x17a   : > { %v2336_v24 = vadd.f32 %v4942_v44, %v6660_v57 }
 0x17b   : > { %v6801_v28 = vpop.f32.mrf.mxu0  ;;  %v4944_v11 = vpop.f32.mrf.mxu1 }
 0x17c   : > { %v4945_v53 = vadd.f32 %v4944_v11, %v4943_v51  ;;  %v6805_v39 = vadd.f32 %v5240_v55, %v2336_v24 }
 0x17d   : > { %v6803_v6 = vpop.f32.mrf.mxu0  ;;  %v4946_v29 = vpop.f32.mrf.mxu1 }
 0x17e   : > { %v2339_v25 = vadd.f32 %v4945_v53, %v6666_v54 }
 0x17f   : > { %v6808_v52 = vpop.f32.mrf.mxu0  ;;  %v4947_v21 = vpop.f32.mrf.mxu1 }
 0x180   : > { %v4948_v3 = vadd.f32 %v4947_v21, %v4946_v29  ;;  %v6812_v0 = vadd.f32 %v5241_v61, %v2339_v25 }
 0x181   : > { %v6810_v60 = vpop.f32.mrf.mxu0  ;;  %v4949_v57 = vpop.f32.mrf.mxu1 }
 0x182   : > { %v2344_v20 = vadd.f32 %v4948_v3, %v6678_v17 }
 0x183   : > { %v6815_v50 = vpop.f32.mrf.mxu0  ;;  %v4950_v48 = vpop.f32.mrf.mxu1 }
 0x184   : > { %v4951_v31 = vadd.f32 %v4950_v48, %v4949_v57  ;;  %v6819_v44 = vadd.f32 %v2504_v27, %v2344_v20 }
 0x185   : > { %v6817_v55 = vpop.f32.mrf.mxu0  ;;  %v4952_v54 = vpop.f32.mrf.mxu1 }
 0x186   : > { %7370 = vst [vmem:[#allocation11_spill] sm:$0xff] %v6817_v55  ;;  %v2347_v51 = vadd.f32 %v4951_v31, %v6682_v34 }
 0x187   : > { %v6822_v24 = vpop.f32.mrf.mxu0  ;;  %v4953_v11 = vpop.f32.mrf.mxu1 }
 0x188   : > { %v4954_v53 = vadd.f32 %v4953_v11, %v4952_v54  ;;  %v6826_v29 = vadd.f32 %v2507_v15, %v2347_v51 }
 0x189   : > { %v6824_v61 = vpop.f32.mrf.mxu0  ;;  %v4955_v17 = vpop.f32.mrf.mxu1 }
 0x18a   : > { %7371 = vst [vmem:[#allocation13_spill] sm:$0xff] %v6824_v61  ;;  %v2352_v25 = vadd.f32 %v4954_v53, %v6680_v37 }
 0x18b   : > { %v6829_v21 = vpop.f32.mrf.mxu0  ;;  %v4956_v3 = vpop.f32.mrf.mxu1 }
 0x18c   : > { %v4957_v57 = vadd.f32 %v4956_v3, %v4955_v17  ;;  %v6832_v20 = vadd.f32 %v6765_v2, %v2352_v25 }
 0x18d   : > { %v5046_v27 = vpop.f32.mrf.mxu0  ;;  %v4958_v34 = vpop.f32.mrf.mxu1 }
 0x18e   : > { %v2355_v48 = vadd.f32 %v4957_v57, %v6687_v56 }
 0x18f   : > { %v5047_v31 = vpop.f32.mrf.mxu0  ;;  %v4959_v54 = vpop.f32.mrf.mxu1 }
 0x190   : > { %v6835_v11 = vadd.f32 %v5047_v31, %v5046_v27  ;;  %v4960_v15 = vadd.f32 %v4959_v54, %v4958_v34  ;;  %v6840_v37 = vadd.f32 %v6770_v4, %v2355_v48 }
 0x191   : > { %v6837_v51 = vpop.f32.mrf.mxu0  ;;  %v4961_v53 = vpop.f32.mrf.mxu1 }
 0x192   : > { %v2360_v17 = vadd.f32 %v4960_v15, %v6694_v41 }
 0x193   : > { %v6843_v3 = vpop.f32.mrf.mxu0  ;;  %v4962_v2 = vpop.f32.mrf.mxu1 }
 0x194   : > { %v4963_v25 = vadd.f32 %v4962_v2, %v4961_v53  ;;  %v6848_v56 = vadd.f32 %v6780_v16, %v2360_v17 }
 0x195   : > { %v6845_v61 = vpop.f32.mrf.mxu0  ;;  %v4964_v57 = vpop.f32.mrf.mxu1 }
 0x196   : > { %v2363_v27 = vadd.f32 %v4963_v25, %v6699_v36 }
 0x197   : > { %v6851_v34 = vpop.f32.mrf.mxu0  ;;  %v4965_v31 = vpop.f32.mrf.mxu1 }
 0x198   : > { %v4966_v4 = vadd.f32 %v4965_v31, %v4964_v57  ;;  %v6856_v41 = vadd.f32 %v6787_v40, %v2363_v27 }
 0x199   : > { %v6853_v48 = vpop.f32.mrf.mxu0  ;;  %v4967_v54 = vpop.f32.mrf.mxu1 }
 0x19a   : > { %7372 = vst [vmem:[#allocation14_spill] sm:$0xff] %v6856_v41  ;;  %v2368_v15 = vadd.f32 %v4966_v4, %v6705_v45 }
 0x19b   : > { %v6859_v53 = vpop.f32.mrf.mxu0  ;;  %v4968_v2 = vpop.f32.mrf.mxu1 }
 0x19c   : > { %v4969_v16 = vadd.f32 %v4968_v2, %v4967_v54  ;;  %v6864_v36 = vadd.f32 %v6775_v9, %v2368_v15 }
 0x19d   : > { %v6861_v17 = vpop.f32.mrf.mxu0  ;;  %v4970_v25 = vpop.f32.mrf.mxu1 }
 0x19e   : > { %v2371_v57 = vadd.f32 %v4969_v16, %v6709_v5 }
 0x19f   : > { %v6867_v31 = vpop.f32.mrf.mxu0  ;;  %v4971_v55 = vpop.f32.mrf.mxu1 }
 0x1a0   : > { %v4972_v40 = vadd.f32 %v4971_v55, %v4970_v25  ;;  %v6872_v45 = vadd.f32 %v6782_v43, %v2371_v57 }
 0x1a1   : > { %v6869_v27 = vpop.f32.mrf.mxu0  ;;  %v4973_v4 = vpop.f32.mrf.mxu1 }
 0x1a2   : > { %7373 = vst [vmem:[#allocation3_spill] sm:$0xff] %v6872_v45  ;;  %v2376_v54 = vadd.f32 %v4972_v40, %v6722_v22 }
 0x1a3   : > { %v6875_v2 = vpop.f32.mrf.mxu0  ;;  %v4974_v26 = vpop.f32.mrf.mxu1 }
 0x1a4   : > { %v4975_v9 = vadd.f32 %v4974_v26, %v4973_v4  ;;  %v6880_v5 = vadd.f32 %v6794_v19, %v2376_v54 }
 0x1a5   : > { %v6877_v15 = vpop.f32.mrf.mxu0  ;;  %v4976_v16 = vpop.f32.mrf.mxu1 }
 0x1a6   : > { %7374 = vst [vmem:[#allocation4_spill] sm:$0xff] %v6880_v5  ;;  %v2379_v55 = vadd.f32 %v4975_v9, %v6732_v12 }
 0x1a7   : > { %v6883_v25 = vpop.f32.mrf.mxu0  ;;  %v4977_v41 = vpop.f32.mrf.mxu1 }
 0x1a8   : > { %v4978_v43 = vadd.f32 %v4977_v41, %v4976_v16  ;;  %v6888_v22 = vadd.f32 %v6801_v28, %v2379_v55 }
 0x1a9   : > { %v6885_v57 = vpop.f32.mrf.mxu0  ;;  %v4979_v40 = vpop.f32.mrf.mxu1 }
 0x1aa   : > { %7375 = vst [vmem:[#allocation5_spill] sm:$0xff] %v6888_v22  ;;  %v2384_v26 = vadd.f32 %v4978_v43, %v6742_v7 }
 0x1ab   : > { %v6891_v4 = vpop.f32.mrf.mxu0  ;;  %v4980_v45 = vpop.f32.mrf.mxu1 }
 0x1ac   : > { %v4981_v19 = vadd.f32 %v4980_v45, %v4979_v40  ;;  %v6896_v12 = vadd.f32 %v6789_v14, %v2384_v26 }
 0x1ad   : > { %v6893_v54 = vpop.f32.mrf.mxu0  ;;  %v4982_v9 = vpop.f32.mrf.mxu1 }
 0x1ae   : > { %7376 = vst [vmem:[#allocation12_spill] sm:$0xff] %v6896_v12  ;;  %v2387_v41 = vadd.f32 %v4981_v19, %v6750_v13 }
 0x1af   : > { %v6899_v16 = vpop.f32.mrf.mxu0  ;;  %v4983_v5 = vpop.f32.mrf.mxu1 }
 0x1b0   : > { %v4984_v28 = vadd.f32 %v4983_v5, %v4982_v9  ;;  %v6904_v7 = vadd.f32 %v6796_v1, %v2387_v41 }
 0x1b1   : > { %v6901_v55 = vpop.f32.mrf.mxu0  ;;  %v4985_v43 = vpop.f32.mrf.mxu1 }
 0x1b2   : > { %7377 = vst [vmem:[#allocation7_spill] sm:$0xff] %v6904_v7  ;;  %v2392_v45 = vadd.f32 %v4984_v28, %v6720_v63 }
 0x1b3   : > { %v6907_v40 = vpop.f32.mrf.mxu0  ;;  %v4986_v22 = vpop.f32.mrf.mxu1 }
 0x1b4   : > { %v4987_v14 = vadd.f32 %v4986_v22, %v4985_v43  ;;  %v6912_v13 = vadd.f32 %v6808_v52, %v2392_v45 }
 0x1b5   : > { %v6909_v26 = vpop.f32.mrf.mxu0  ;;  %v4988_v19 = vpop.f32.mrf.mxu1 }
 0x1b6   : > { %7378 = vst [vmem:[#allocation6_spill] sm:$0xff] %v6912_v13  ;;  %v2395_v5 = vadd.f32 %v4987_v14, %v6728_v47 }
 0x1b7   : > { %v6915_v9 = vpop.f32.mrf.mxu0  ;;  %v4989_v12 = vpop.f32.mrf.mxu1 }
 0x1b8   : > { %v4990_v1 = vadd.f32 %v4989_v12, %v4988_v19  ;;  %v6920_v63 = vadd.f32 %v6815_v50, %v2395_v5 }
 0x1b9   : > { %v6917_v41 = vpop.f32.mrf.mxu0  ;;  %v4991_v28 = vpop.f32.mrf.mxu1 }
 0x1ba   : > { %7379 = vst [vmem:[#allocation15_spill] sm:$0xff] %v6920_v63  ;;  %v2400_v22 = vadd.f32 %v4990_v1, %v6715_v23 }
 0x1bb   : > { %v6923_v43 = vpop.f32.mrf.mxu0  ;;  %v4992_v7 = vpop.f32.mrf.mxu1 }
 0x1bc   : > { %v4993_v52 = vadd.f32 %v4992_v7, %v4991_v28  ;;  %v6928_v47 = vadd.f32 %v6803_v6, %v2400_v22 }
 0x1bd   : > { %v6925_v45 = vpop.f32.mrf.mxu0  ;;  %v4994_v14 = vpop.f32.mrf.mxu1 }
 0x1be   : > { %7380 = vst [vmem:[#allocation10_spill] sm:$0xff] %v6928_v47  ;;  %v2403_v12 = vadd.f32 %v4993_v52, %v6725_v32 }
 0x1bf   : > { %v6931_v19 = vpop.f32.mrf.mxu0  ;;  %v4995_v13 = vpop.f32.mrf.mxu1 }
 0x1c0   : > { %v4996_v50 = vadd.f32 %v4995_v13, %v4994_v14  ;;  %v6936_v23 = vadd.f32 %v6810_v60, %v2403_v12 }
 0x1c1   : > { %v6933_v5 = vpop.f32.mrf.mxu0  ;;  %v4997_v1 = vpop.f32.mrf.mxu1 }
 0x1c2   : > { %7381 = vst [vmem:[#allocation8_spill] sm:$0xff] %v6936_v23  ;;  %v2408_v7 = vadd.f32 %v4996_v50, %v6740_v38 }
 0x1c3   : > { %v6939_v28 = vpop.f32.mrf.mxu0  ;;  %v4998_v63 = vpop.f32.mrf.mxu1 }
 0x1c4   : > { %v4999_v6 = vadd.f32 %v4998_v63, %v4997_v1  ;;  %v6944_v32 = vadd.f32 %v6822_v24, %v2408_v7 }
 0x1c5   : > { %v6941_v22 = vpop.f32.mrf.mxu0  ;;  %v5000_v52 = vpop.f32.mrf.mxu1 }
 0x1c6   : > { %7382 = vst [vmem:[#allocation16_spill] sm:$0xff] %v6944_v32  ;;  %v2411_v13 = vadd.f32 %v4999_v6, %v6748_v10 }
 0x1c7   : > { %v6947_v14 = vpop.f32.mrf.mxu0  ;;  %v5001_v47 = vpop.f32.mrf.mxu1 }
 0x1c8   : > { %v5002_v60 = vadd.f32 %v5001_v47, %v5000_v52  ;;  %v6952_v38 = vadd.f32 %v6829_v21, %v2411_v13  ;;  %v5054_v47 = vadd.f32 %v6851_v34, %v6845_v61  ;;  %v5057_v21 = vadd.f32 %v6859_v53, %v6853_v48 }
 0x1c9   : > { %v6949_v12 = vpop.f32.mrf.mxu0  ;;  %v6954_v50 = vpop.f32.mrf.mxu1 }
 0x1ca   : > { %7383 = vst [vmem:[#allocation17_spill] sm:$0xff] %v6952_v38  ;;  %7384 = vst [vmem:[#allocation18_spill] sm:$0xff] %v6954_v50  ;;  %v6957_v63 = vadd.f32 %v5002_v60, %v6737_v30 }
 0x1cb   : > { %v6959_v1 = vpop.f32.mrf.mxu0  ;;  %v6961_v24 = vpop.f32.mrf.mxu1 }
 0x1cc   : > { %7385 = vst [vmem:[#allocation19_spill] sm:$0xff] %v6957_v63  ;;  %7386 = vst [vmem:[#allocation20_spill] sm:$0xff] %v6961_v24  ;;  %v5051_v63 = vadd.f32 %v6843_v3, %v6837_v51 }
 0x1cd   : > { %v6963_v7 = vpop.f32.mrf.mxu0  ;;  %v5280_v10 = vpop.f32.mrf.mxu1 }
 0x1ce   : > { %v3194_v13 = vadd.f32 %v5280_v10, %v5054_v47 }
 0x1cf   : > { %v6967_v6 = vpop.f32.mrf.mxu0  ;;  %v3185_v52 = vpop.f32.mrf.mxu1 }
 0x1d0   : > { %v3186_v30 = vadd.f32 %v6835_v11, %v3185_v52  ;;  %v3314_v24 = vadd.f32 %v3194_v13, %v6759_v59  ;;  %v5066_v11 = vadd.f32 %v6883_v25, %v6877_v15  ;;  %v5069_v15 = vadd.f32 %v6891_v4, %v6885_v57 }
 0x1d1   : > { %v6972_v60 = vpop.f32.mrf.mxu0  ;;  %v5281_v38 = vpop.f32.mrf.mxu1 }
 0x1d2   : > { %v3312_v32 = vadd.f32 %v3186_v30, %v6753_v8  ;;  %v3197_v23 = vadd.f32 %v5281_v38, %v5057_v21  ;;  %v3544_v30 = vmul.f32 %v3314_v24, %v3314_v24 }
 0x1d3   : > { %v6977_v61 = vpop.f32.mrf.mxu0  ;;  %v3188_v34 = vpop.f32.mrf.mxu1 }
 0x1d4   : > { %v3315_v50 = vadd.f32 %v3197_v23, %v6762_v49  ;;  %v3189_v48 = vadd.f32 %v5051_v63, %v3188_v34  ;;  %v5060_v49 = vadd.f32 %v6867_v31, %v6861_v17  ;;  %v3542_v38 = vmul.f32 %v3312_v32, %v3312_v32 }
 0x1d5   : > { %v6981_v53 = vpop.f32.mrf.mxu0  ;;  %v5284_v8 = vpop.f32.mrf.mxu1 }
 0x1d6   : > { %v4656_v51 = vpack.c.bf16 %v3315_v50, %v3314_v24  ;;  %v3313_v3 = vadd.f32 %v3189_v48, %v6756_v35  ;;  %v3210_v25 = vadd.f32 %v5284_v8, %v5066_v11  ;;  %v5063_v35 = vadd.f32 %v6875_v2, %v6869_v27 }
 0x1d7   : > { %v6993_v59 = vpop.f32.mrf.mxu0  ;;  %v3201_v23 = vpop.f32.mrf.mxu1  ;;  %v3545_v4 = vmul.f32 %v3315_v50, %v3315_v50 }
 0x1d8   : > { %4743 = vst [vmem:[%s6990_s14 + $0x8] sm:$0xff] %v4656_v51   ;;  %v4651_v63 = vpack.c.bf16 %v3313_v3, %v3312_v32  ;;  %v3504_v10 = vadd.f32 %v3313_v3, %v3312_v32  ;;  %v3543_v47 = vmul.f32 %v3313_v3, %v3313_v3  ;;  %v3202_v21 = vadd.f32 %v5060_v49, %v3201_v23 }
 0x1d9   : > { %v7000_v52 = vpop.f32.mrf.mxu0  ;;  %v5285_v13 = vpop.f32.mrf.mxu1  ;;  %v3318_v48 = vadd.f32 %v3210_v25, %v6777_v58  ;;  %v5078_v49 = vadd.f32 %v6915_v9, %v6909_v26 }
 0x1da   : > { %4652 = vst [vmem:[%s6990_s14] sm:$0xff] %v4651_v63   ;;  %v3505_v17 = vadd.f32 %v3504_v10, %v3314_v24  ;;  %v3574_v31 = vadd.f32 %v3543_v47, %v3542_v38  ;;  %v3213_v34 = vadd.f32 %v5285_v13, %v5069_v15  ;;  %v3316_v32 = vadd.f32 %v3202_v21, %v6767_v42 }
 0x1db   : > { %v7005_v57 = vpop.f32.mrf.mxu0  ;;  %v3204_v11 = vpop.f32.mrf.mxu1  ;;  %v5072_v24 = vadd.f32 %v6899_v16, %v6893_v54  ;;  %v5081_v63 = vadd.f32 %v6923_v43, %v6917_v41  ;;  %v5075_v13 = vadd.f32 %v6907_v40, %v6901_v55 }
 0x1dc   : > { %v3575_v8 = vadd.f32 %v3574_v31, %v3544_v30  ;;  %v3506_v51 = vadd.f32 %v3505_v17, %v3315_v50  ;;  %v3319_v27 = vadd.f32 %v3213_v34, %v6784_v33  ;;  %v3205_v2 = vadd.f32 %v5063_v35, %v3204_v11 }
 0x1dd   : > { %v7010_v3 = vpop.f32.mrf.mxu0  ;;  %v5288_v15 = vpop.f32.mrf.mxu1  ;;  %v3546_v58 = vmul.f32 %v3316_v32, %v3316_v32  ;;  %v3548_v17 = vmul.f32 %v3318_v48, %v3318_v48 }
 0x1de   : > { %v3507_v23 = vadd.f32 %v3506_v51, %v3316_v32  ;;  %v3576_v25 = vadd.f32 %v3575_v8, %v3545_v4  ;;  %v4666_v42 = vpack.c.bf16 %v3319_v27, %v3318_v48  ;;  %v3317_v50 = vadd.f32 %v3205_v2, %v6772_v46 }
 0x1df   : > { %v7016_v38 = vpop.f32.mrf.mxu0  ;;  %v3217_v33 = vpop.f32.mrf.mxu1  ;;  %v3226_v54 = vadd.f32 %v5288_v15, %v5078_v49  ;;  %v3549_v51 = vmul.f32 %v3319_v27, %v3319_v27 }
 0x1e0   : > { %v3577_v10 = vadd.f32 %v3576_v25, %v3546_v58  ;;  %4745 = vst [vmem:[%s6990_s14 + $0x18] sm:$0xff] %v4666_v42   ;;  %v3218_v16 = vadd.f32 %v5072_v24, %v3217_v33  ;;  %v4661_v26 = vpack.c.bf16 %v3317_v50, %v3316_v32  ;;  %v3508_v9 = vadd.f32 %v3507_v23, %v3317_v50 }
 0x1e1   : > { %v7022_v47 = vpop.f32.mrf.mxu0  ;;  %v3547_v35 = vmul.f32 %v3317_v50, %v3317_v50  ;;  %v5289_v21 = vpop.f32.mrf.mxu1  ;;  %v3322_v4 = vadd.f32 %v3226_v54, %v6805_v39  ;;  %v5084_v24 = vadd.f32 %v6931_v19, %v6925_v45 }
 0x1e2   : > { %v3229_v30 = vadd.f32 %v5289_v21, %v5081_v63  ;;  %4744 = vst [vmem:[%s6990_s14 + $0x10] sm:$0xff] %v4661_v26   ;;  %v3509_v31 = vadd.f32 %v3508_v9, %v3318_v48  ;;  %v3320_v43 = vadd.f32 %v3218_v16, %v6791_v18  ;;  %v5090_v48 = vadd.f32 %v6947_v14, %v6941_v22 }
 0x1e3   : > { %v7026_v46 = vpop.f32.mrf.mxu0  ;;  %v3578_v41 = vadd.f32 %v3577_v10, %v3547_v35  ;;  %v3220_v34 = vpop.f32.mrf.mxu1 }
 0x1e4   : > { %v3323_v32 = vadd.f32 %v3229_v30, %v6812_v0  ;;  %v3221_v11 = vadd.f32 %v5075_v13, %v3220_v34  ;;  %v3510_v40 = vadd.f32 %v3509_v31, %v3319_v27  ;;  %v5093_v0 = vadd.f32 %v6959_v1, %v6949_v12 }
 0x1e5   : > { %v7032_v8 = vpop.f32.mrf.mxu0  ;;  %v3579_v55 = vadd.f32 %v3578_v41, %v3548_v17  ;;  %v5292_v2 = vpop.f32.mrf.mxu1  ;;  %v3550_v23 = vmul.f32 %v3320_v43, %v3320_v43  ;;  %v3552_v12 = vmul.f32 %v3322_v4, %v3322_v4  ;;  %v5096_v31 = vadd.f32 %v6967_v6, %v6963_v7 }
 0x1e6   : > { %v4676_v18 = vpack.c.bf16 %v3323_v32, %v3322_v4  ;;  %v3321_v49 = vadd.f32 %v3221_v11, %v6798_v62  ;;  %v3511_v15 = vadd.f32 %v3510_v40, %v3320_v43  ;;  %v3242_v45 = vadd.f32 %v5292_v2, %v5090_v48 }
 0x1e7   : > { %v7039_v39 = vpop.f32.mrf.mxu0  ;;  %v3580_v58 = vadd.f32 %v3579_v55, %v3549_v51  ;;  %v3233_v27 = vpop.f32.mrf.mxu1  ;;  %v5087_v62 = vadd.f32 %v6939_v28, %v6933_v5  ;;  %v3553_v30 = vmul.f32 %v3323_v32, %v3323_v32  ;;  %v5102_v41 = vadd.f32 %v6993_v59, %v6981_v53 }
 0x1e8   : > { %4747 = vst [vmem:[%s6990_s14 + $0x28] sm:$0xff] %v4676_v18   ;;  %v4671_v25 = vpack.c.bf16 %v3321_v49, %v3320_v43  ;;  %v3551_v42 = vmul.f32 %v3321_v49, %v3321_v49  ;;  %v3234_v19 = vadd.f32 %v5084_v24, %v3233_v27  ;;  %v3512_v14 = vadd.f32 %v3511_v15, %v3321_v49 }
 0x1e9   : > { %v5115_v50 = vpop.f32.mrf.mxu0  ;;  %v3581_v22 = vadd.f32 %v3580_v58, %v3550_v23  ;;  %v5293_v33 = vpop.f32.mrf.mxu1  ;;  %v3326_v9 = vadd.f32 %v3242_v45, %v6832_v20  ;;  %v5099_v2 = vadd.f32 %v6977_v61, %v6972_v60  ;;  %v7387_v23 = vld [vmem:[#allocation3_spill] sm:$0xff] }
 0x1ea   : > { %4746 = vst [vmem:[%s6990_s14 + $0x20] sm:$0xff] %v4671_v25   ;;  %v3245_v63 = vadd.f32 %v5293_v33, %v5093_v0  ;;  %v3513_v1 = vadd.f32 %v3512_v14, %v3322_v4  ;;  %v3324_v16 = vadd.f32 %v3234_v19, %v6819_v44  ;;  %v5108_v19 = vadd.f32 %v7016_v38, %v7010_v3 }
 0x1eb   : > { %v5116_v10 = vpop.f32.mrf.mxu0  ;;  %v3582_v54 = vadd.f32 %v3581_v22, %v3551_v42  ;;  %v3236_v26 = vpop.f32.mrf.mxu1  ;;  %v5114_v22 = vadd.f32 %v7039_v39, %v7032_v8  ;;  %v5111_v8 = vadd.f32 %v7026_v46, %v7022_v47 }
 0x1ec   : > { %v3327_v35 = vadd.f32 %v3245_v63, %v6840_v37  ;;  %v3237_v21 = vadd.f32 %v5087_v62, %v3236_v26  ;;  %v3514_v5 = vadd.f32 %v3513_v1, %v3323_v32  ;;  %v5105_v37 = vadd.f32 %v7005_v57, %v7000_v52 }
 0x1ed   : > { %v7050_v13 = vpop.f32.mrf.mxu0  ;;  %v3583_v17 = vadd.f32 %v3582_v54, %v3552_v12  ;;  %v5296_v28 = vpop.f32.mrf.mxu1  ;;  %v3554_v4 = vmul.f32 %v3324_v16, %v3324_v16  ;;  %v3556_v57 = vmul.f32 %v3326_v9, %v3326_v9 }
 0x1ee   : > { %v4686_v44 = vpack.c.bf16 %v3327_v35, %v3326_v9  ;;  %v3325_v43 = vadd.f32 %v3237_v21, %v6826_v29  ;;  %v3515_v34 = vadd.f32 %v3514_v5, %v3324_v16  ;;  %v3258_v7 = vadd.f32 %v5296_v28, %v5102_v41  ;;  %v7389_v28 = vld [vmem:[#allocation4_spill] sm:$0xff] }
 0x1ef   : > { %v7057_v20 = vpop.f32.mrf.mxu0  ;;  %v3584_v11 = vadd.f32 %v3583_v17, %v3553_v30  ;;  %v3249_v32 = vpop.f32.mrf.mxu1  ;;  %v3557_v42 = vmul.f32 %v3327_v35, %v3327_v35 }
 0x1f0   : > { %4749 = vst [vmem:[%s6990_s14 + $0x38] sm:$0xff] %v4686_v44   ;;  %v4681_v51 = vpack.c.bf16 %v3325_v43, %v3324_v16  ;;  %v3555_v55 = vmul.f32 %v3325_v43, %v3325_v43  ;;  %v3250_v6 = vadd.f32 %v5096_v31, %v3249_v32  ;;  %v3516_v59 = vadd.f32 %v3515_v34, %v3325_v43  ;;  %v7390_v44 = vld [vmem:[#allocation12_spill] sm:$0xff] }
 0x1f1   : > { %v7062_v40 = vpop.f32.mrf.mxu0  ;;  %v3585_v53 = vadd.f32 %v3584_v11, %v3554_v4  ;;  %v5297_v29 = vpop.f32.mrf.mxu1  ;;  %v3330_v15 = vadd.f32 %v3258_v7, %v6864_v36  ;;  %v5117_v36 = vadd.f32 %v5116_v10, %v5115_v50  ;;  %v5120_v46 = vadd.f32 %v7057_v20, %v7050_v13 }
 0x1f2   : > { %4748 = vst [vmem:[%s6990_s14 + $0x30] sm:$0xff] %v4681_v51   ;;  %v3261_v24 = vadd.f32 %v5297_v29, %v5105_v37  ;;  %v3517_v48 = vadd.f32 %v3516_v59, %v3326_v9  ;;  %v3328_v49 = vadd.f32 %v3250_v6, %v6848_v56  ;;  %v7388_v56 = vld [vmem:[#allocation14_spill] sm:$0xff]  ;;  %v7391_v37 = vld [vmem:[#allocation7_spill] sm:$0xff] }
 0x1f3   : > { %v7067_v52 = vpop.f32.mrf.mxu0  ;;  %v3586_v18 = vadd.f32 %v3585_v53, %v3555_v55  ;;  %v3252_v0 = vpop.f32.mrf.mxu1  ;;  %v3560_v50 = vmul.f32 %v3330_v15, %v3330_v15  ;;  %v7392_v53 = vld [vmem:[#allocation5_spill] sm:$0xff] }
 0x1f4   : > { %v3331_v58 = vadd.f32 %v3261_v24, %v7387_v23  ;;  %v3253_v27 = vadd.f32 %v5099_v2, %v3252_v0  ;;  %v3518_v60 = vadd.f32 %v3517_v48, %v3327_v35  ;;  %v3558_v12 = vmul.f32 %v3328_v49, %v3328_v49 }
 0x1f5   : > { %v5124_v25 = vpop.f32.mrf.mxu0  ;;  %v3587_v45 = vadd.f32 %v3586_v18, %v3556_v57  ;;  %v5300_v61 = vpop.f32.mrf.mxu1  ;;  %v5123_v20 = vadd.f32 %v7067_v52, %v7062_v40 }
 0x1f6   : > { %v4696_v14 = vpack.c.bf16 %v3331_v58, %v3330_v15  ;;  %v3329_v33 = vadd.f32 %v3253_v27, %v7388_v56  ;;  %v3519_v63 = vadd.f32 %v3518_v60, %v3328_v49  ;;  %v3274_v9 = vadd.f32 %v5300_v61, %v5114_v22  ;;  %v7393_v22 = vld [vmem:[#allocation6_spill] sm:$0xff] }
 0x1f7   : > { %v5125_v62 = vpop.f32.mrf.mxu0  ;;  %v3588_v1 = vadd.f32 %v3587_v45, %v3557_v42  ;;  %v3265_v54 = vpop.f32.mrf.mxu1  ;;  %v3561_v32 = vmul.f32 %v3331_v58, %v3331_v58 }
 0x1f8   : > { %4751 = vst [vmem:[%s6990_s14 + $0x48] sm:$0xff] %v4696_v14   ;;  %v4691_v16 = vpack.c.bf16 %v3329_v33, %v3328_v49  ;;  %v3559_v26 = vmul.f32 %v3329_v33, %v3329_v33  ;;  %v3266_v35 = vadd.f32 %v5108_v19, %v3265_v54  ;;  %v3520_v38 = vadd.f32 %v3519_v63, %v3329_v33  ;;  %v7394_v33 = vld [vmem:[#allocation18_spill] sm:$0xff] }
 0x1f9   : > { %v5127_v21 = vpop.f32.mrf.mxu0  ;;  %v3589_v3 = vadd.f32 %v3588_v1, %v3558_v12  ;;  %v5301_v30 = vpop.f32.mrf.mxu1  ;;  %v3334_v43 = vadd.f32 %v3274_v9, %v7390_v44  ;;  %v5126_v7 = vadd.f32 %v5125_v62, %v5124_v25  ;;  %v7395_v62 = vld [vmem:[#allocation20_spill] sm:$0xff]  ;;  %v7396_v63 = vld [vmem:[#allocation10_spill] sm:$0xff] }
 0x1fa   : > { %4750 = vst [vmem:[%s6990_s14 + $0x40] sm:$0xff] %v4691_v16   ;;  %v3277_v39 = vadd.f32 %v5301_v30, %v5117_v36  ;;  %v3521_v10 = vadd.f32 %v3520_v38, %v3330_v15  ;;  %v3332_v31 = vadd.f32 %v3266_v35, %v7389_v28  ;;  %v5005_v36 = vadd.f32 %v7395_v62, %v7394_v33  ;;  %v7397_v1 = vld [vmem:[#allocation8_spill] sm:$0xff]  ;;  %v7398_v38 = vld [vmem:[#allocation15_spill] sm:$0xff]  ;;  %v7399_v28 = vld [vmem:[#allocation9_spill] sm:$0xff] }
 0x1fb   : > { %v5128_v17 = vpop.f32.mrf.mxu0  ;;  %v3590_v5 = vadd.f32 %v3589_v3, %v3559_v26  ;;  %v3268_v41 = vpop.f32.mrf.mxu1  ;;  %v3564_v60 = vmul.f32 %v3334_v43, %v3334_v43 }
 0x1fc   : > { %v3335_v34 = vadd.f32 %v3277_v39, %v7391_v37  ;;  %v3269_v4 = vadd.f32 %v5111_v8, %v3268_v41  ;;  %v3522_v55 = vadd.f32 %v3521_v10, %v3331_v58  ;;  %v3562_v24 = vmul.f32 %v3332_v31, %v3332_v31 }
 0x1fd   : > { %v5130_v11 = vpop.f32.mrf.mxu0  ;;  %v3591_v51 = vadd.f32 %v3590_v5, %v3560_v50  ;;  %v5304_v47 = vpop.f32.mrf.mxu1  ;;  %v5129_v48 = vadd.f32 %v5128_v17, %v5127_v21 }
 0x1fe   : > { %v4706_v6 = vpack.c.bf16 %v3335_v34, %v3334_v43  ;;  %v3333_v59 = vadd.f32 %v3269_v4, %v7392_v53  ;;  %v3523_v2 = vadd.f32 %v3522_v55, %v3332_v31  ;;  %v3290_v15 = vadd.f32 %v5304_v47, %v5126_v7 }
 0x1ff   : > { %v5131_v29 = vpop.f32.mrf.mxu0  ;;  %v3592_v57 = vadd.f32 %v3591_v51, %v3561_v32  ;;  %v3281_v18 = vpop.f32.mrf.mxu1  ;;  %v3565_v40 = vmul.f32 %v3335_v34, %v3335_v34 }
 0x200   : > { %4753 = vst [vmem:[%s6990_s14 + $0x58] sm:$0xff] %v4706_v6   ;;  %v4701_v49 = vpack.c.bf16 %v3333_v59, %v3332_v31  ;;  %v3563_v0 = vmul.f32 %v3333_v59, %v3333_v59  ;;  %v3282_v23 = vadd.f32 %v5120_v46, %v3281_v18  ;;  %v3524_v42 = vadd.f32 %v3523_v2, %v3333_v59  ;;  %v7400_v6 = vld [vmem:[#allocation16_spill] sm:$0xff]  ;;  %v7401_v2 = vld [vmem:[#allocation19_spill] sm:$0xff] }
 0x201   : > { %v5133_v58 = vpop.f32.mrf.mxu0  ;;  %v3593_v27 = vadd.f32 %v3592_v57, %v3562_v24  ;;  %v5305_v13 = vpop.f32.mrf.mxu1  ;;  %v3338_v12 = vadd.f32 %v3290_v15, %v7396_v63  ;;  %v5132_v21 = vadd.f32 %v5131_v29, %v5130_v11  ;;  %v2419_v31 = vadd.f32 %v5005_v36, %v7399_v28  ;;  %v7402_v24 = vld [vmem:[#allocation11_spill] sm:$0xff] }
 0x202   : > { %4752 = vst [vmem:[%s6990_s14 + $0x50] sm:$0xff] %v4701_v49   ;;  %v3293_v25 = vadd.f32 %v5305_v13, %v5129_v48  ;;  %v3525_v61 = vadd.f32 %v3524_v42, %v3334_v43  ;;  %v3336_v14 = vadd.f32 %v3282_v23, %v7393_v22  ;;  %v2577_v57 = vadd.f32 %v7402_v24, %v7401_v2  ;;  %v7403_v48 = vld [vmem:[#allocation13_spill] sm:$0xff] }
 0x203   : > { %v5134_v45 = vpop.f32.mrf.mxu0  ;;  %v3594_v19 = vadd.f32 %v3593_v27, %v3563_v0  ;;  %v3284_v56 = vpop.f32.mrf.mxu1  ;;  %v3568_v32 = vmul.f32 %v3338_v12, %v3338_v12  ;;  %v2580_v18 = vadd.f32 %v7403_v48, %v2419_v31  ;;  %v7404_v42 = vld [vmem:[#allocation17_spill] sm:$0xff] }
 0x204   : > { %v3339_v54 = vadd.f32 %v3293_v25, %v7397_v1  ;;  %v3285_v16 = vadd.f32 %v5123_v20, %v3284_v56  ;;  %v3526_v9 = vadd.f32 %v3525_v61, %v3335_v34  ;;  %v3566_v17 = vmul.f32 %v3336_v14, %v3336_v14 }
 0x205   : > { %v5136_v26 = vpop.f32.mrf.mxu0  ;;  %v3595_v52 = vadd.f32 %v3594_v19, %v3564_v60  ;;  %v5308_v35 = vpop.f32.mrf.mxu1  ;;  %v5135_v51 = vadd.f32 %v5134_v45, %v5133_v58 }
 0x206   : > { %v4716_v3 = vpack.c.bf16 %v3339_v54, %v3338_v12  ;;  %v3337_v30 = vadd.f32 %v3285_v16, %v7398_v38  ;;  %v3527_v39 = vadd.f32 %v3526_v9, %v3336_v14  ;;  %v3569_v0 = vmul.f32 %v3339_v54, %v3339_v54 }
 0x207   : > { %v5137_v8 = vpop.f32.mrf.mxu0  ;;  %v3596_v50 = vadd.f32 %v3595_v52, %v3565_v40  ;;  %v3297_v5 = vpop.f32.mrf.mxu1 }
 0x208   : > { %v5138_v10 = vadd.f32 %v5137_v8, %v5136_v26  ;;  %4755 = vst [vmem:[%s6990_s14 + $0x68] sm:$0xff] %v4716_v3   ;;  %v4711_v41 = vpack.c.bf16 %v3337_v30, %v3336_v14  ;;  %v3567_v44 = vmul.f32 %v3337_v30, %v3337_v30  ;;  %v3298_v43 = vadd.f32 %v5132_v21, %v3297_v5 }
 0x209   : > { %v5139_v37 = vpop.f32.mrf.mxu0  ;;  %v3597_v34 = vadd.f32 %v3596_v50, %v3566_v17  ;;  %v3528_v4 = vadd.f32 %v3527_v39, %v3337_v30  ;;  %v5309_v11 = vpop.f32.mrf.mxu1 }
 0x20a   : > { %4754 = vst [vmem:[%s6990_s14 + $0x60] sm:$0xff] %v4711_v41   ;;  %v3306_v55 = vadd.f32 %v5308_v35, %v5138_v10  ;;  %v3340_v53 = vadd.f32 %v3298_v43, %v7400_v6 }
 0x20b   : > { %v5140_v47 = vpop.f32.mrf.mxu0  ;;  %v3529_v46 = vadd.f32 %v3528_v4, %v3338_v12  ;;  %v3598_v7 = vadd.f32 %v3597_v34, %v3567_v44  ;;  %v3300_v29 = vpop.f32.mrf.mxu1 }
 0x20c   : > { %v5141_v59 = vadd.f32 %v5140_v47, %v5139_v37  ;;  %v3301_v49 = vadd.f32 %v5135_v51, %v3300_v29  ;;  %v3342_v27 = vadd.f32 %v3306_v55, %v2577_v57  ;;  %v3570_v25 = vmul.f32 %v3340_v53, %v3340_v53 }
 0x20d   : > { %v3599_v15 = vadd.f32 %v3598_v7, %v3568_v32  ;;  %v3530_v23 = vadd.f32 %v3529_v46, %v3339_v54 }
 0x20e   : > { %v3309_v58 = vadd.f32 %v5309_v11, %v5141_v59  ;;  %v3341_v13 = vadd.f32 %v3301_v49, %v7404_v42  ;;  %v3572_v33 = vmul.f32 %v3342_v27, %v3342_v27 }
 0x20f   : > { %v3531_v20 = vadd.f32 %v3530_v23, %v3340_v53  ;;  %v3600_v45 = vadd.f32 %v3599_v15, %v3569_v0 }
 0x210   : > { %v3343_v60 = vadd.f32 %v3309_v58, %v2580_v18  ;;  %v4721_v61 = vpack.c.bf16 %v3341_v13, %v3340_v53  ;;  %v3571_v19 = vmul.f32 %v3341_v13, %v3341_v13 }
 0x211   : > { %v3601_v22 = vadd.f32 %v3600_v45, %v3570_v25  ;;  %v3532_v56 = vadd.f32 %v3531_v20, %v3341_v13 }
 0x212   : > { %v4726_v14 = vpack.c.bf16 %v3343_v60, %v3342_v27  ;;  %4756 = vst [vmem:[%s6990_s14 + $0x70] sm:$0xff] %v4721_v61   ;;  %v3573_v63 = vmul.f32 %v3343_v60, %v3343_v60 }
 0x213   : > { %v3533_v62 = vadd.f32 %v3532_v56, %v3342_v27  ;;  %v3602_v36 = vadd.f32 %v3601_v22, %v3571_v19 }
 0x214   : > { %4757 = vst [vmem:[%s6990_s14 + $0x78] sm:$0xff] %v4726_v14  }
 0x215   : > { %v3534_v12 = vadd.f32 %v3533_v62, %v3343_v60  ;;  %v3603_v1 = vadd.f32 %v3602_v36, %v3572_v33 }
 0x217   : > { %v3535_v54 = vrot.slane %v3534_v12, 4  ;;  %v3604_v16 = vadd.f32 %v3603_v1, %v3573_v63 }
 0x219   : > { %v3536_v26 = vadd.f32 %v3535_v54, %v3534_v12  ;;  %v3605_v40 = vrot.slane %v3604_v16, 4 }
 0x21b   : > { %v3537_v52 = vrot.slane %v3536_v26, 2  ;;  %v3606_v9 = vadd.f32 %v3605_v40, %v3604_v16 }
 0x21d   : > { %v3538_v35 = vadd.f32 %v3537_v52, %v3536_v26  ;;  %v3607_v21 = vrot.slane %v3606_v9, 2 }
 0x21f   : > { %v3539_v3 = vrot.slane %v3538_v35, 1  ;;  %v3608_v38 = vadd.f32 %v3607_v21, %v3606_v9 }
 0x221   : > { %v3540_v30 = vadd.f32 %v3539_v3, %v3538_v35  ;;  %v3609_v8 = vrot.slane %v3608_v38, 1 }
 0x223   : > { %3541 = vst [vmem:[%s292_s15] sm:$0x1] %v3540_v30  ;;  %v3610_v39 = vadd.f32 %v3609_v8, %v3608_v38 }
 0x225   : > { %3611 = vst [vmem:[%s297_s19] sm:$0x1] %v3610_v39 }
 0x226 PF: > { %s17_s23 = sadd.s32 1, %s5447_s23   ;;  %s7405_s21 = smov %s5443_s22 }
 0x227   : > { %p14_p6 = scmp.ge.s32.totalorder %s17_s23, 4   ;;  %s7406_s22 = smov %s7408_s24 }
 0x229   :  { %16 = sbr.rel (!%p14_p6) target bundleno = 2 (0x2), region = 105 }

</bundles_post_ra>
